<compile_context>
chip_gen: v6e
topology: v6e:2x2x1
jax: 0.10.0
libtpu: 0.0.40
codegen_flags: <defaults>
</compile_context>

<pallas_src>
import math
import numpy as np
import jax
import jax.numpy as jnp
from jax.experimental import pallas as pl
from jax.experimental.pallas import tpu as pltpu

# ----- module configuration (from CNNTripletVisualR.__init__) ----------------
FV = 15            # BatchNorm1d(15)  -> number of feature vectors
L = 245            # LayerNorm(245)   -> feature length
EPS_LN = 1e-5
EPS_BN = 1e-5

CONV_CFG = [       # (C_in, C_out, K, stride) for self.convs
    (1, 8, 5, 3),
    (8, 16, 3, 2),
    (16, 16, 3, 1),
    (16, 16, 3, 1),
]
POOL_CFG = [(3, 2), (3, 2), (3, 1)]     # MaxPool1d after conv1..conv3

ROW_QUANTUM = 120       # lcm(8 sublanes, FV=15): keeps the fv pattern tile-periodic
MAX_TILE_ROWS = 1920    # ~25 MiB working set at this size; fits all generations


def conv_out_len(lin, k, s):
    return (lin - k) // s + 1


def _round_up(a, b):
    return ((a + b - 1) // b) * b


def _stage_dims():
    """Padded (to 128) per-stage output widths of the fused conv+pool stages."""
    lcur = L
    dims = []
    for i, (cin, cout, kk, s) in enumerate(CONV_CFG[:3]):
        lconv = conv_out_len(lcur, kk, s)
        pk, ps = POOL_CFG[i]
        lpool = conv_out_len(lconv, pk, ps)
        dims.append(_round_up(cout * lpool, 128))
        lcur = lpool
    return tuple(dims), lcur


SEG, _L_AFTER_POOL3 = _stage_dims()     # (384, 256, 128), 5
assert SEG == (384, 256, 128) and _L_AFTER_POOL3 == 5


# ----- glue: lower Conv1d / MaxPool1d to dense matrices (parameter setup) ----
def toeplitz_matmul_form(w, b, lin, stride):
    """Conv1d(Cin,Cout,K,stride), no padding -> (Cin*Lin, Cout*Lout) matrix."""
    cout, cin, k = w.shape
    lout = conv_out_len(lin, k, stride)
    m = np.zeros((cin * lin, cout * lout), np.float32)
    for o in range(cout):
        for c in range(cin):
            for t in range(lout):
                for j in range(k):
                    m[c * lin + stride * t + j, o * lout + t] = w[o, c, j]
    bflat = np.repeat(np.asarray(b, np.float32), lout)[None, :]   # (1, Cout*Lout)
    return m, bflat, lout


def maxpool_selectors(c, lin, k, stride):
    """MaxPool1d(k,stride) -> k selection matrices (C*Lin, C*Lout)."""
    lout = conv_out_len(lin, k, stride)
    q = np.zeros((k, c * lin, c * lout), np.float32)
    for j in range(k):
        for ch in range(c):
            for t in range(lout):
                q[j, ch * lin + stride * t + j, ch * lout + t] = 1.0
    return q, lout


def _pad2d(a, rows, cols):
    out = np.zeros((rows, cols), np.float32)
    out[:a.shape[0], :a.shape[1]] = a
    return out


def build_params(key):
    keys = jax.random.split(key, 5)

    def init_conv(k, cout, cin, kk):
        fan_in = cin * kk
        bound = 1.0 / math.sqrt(fan_in)
        kw, kb = jax.random.split(k)
        w = np.asarray(jax.random.uniform(kw, (cout, cin, kk), jnp.float32, -bound, bound))
        b = np.asarray(jax.random.uniform(kb, (cout,), jnp.float32, -bound, bound))
        return w, b

    # ---- conv+pool stages 1..3, fused into single wide 128-padded matmuls ----
    lcur = L
    kin_pad = L                         # padded input feature width of this stage
    wide_ws, stage_bs = [], []
    for i, (cin, cout, kk, s) in enumerate(CONV_CFG[:3]):
        w, b = init_conv(keys[i], cout, cin, kk)
        m, bflat, lconv = toeplitz_matmul_form(w, b, lcur, s)
        pk, ps = POOL_CFG[i]
        q, lpool = maxpool_selectors(cout, lconv, pk, ps)
        kout = cout * lpool
        nseg = _round_up(kout, 128)
        assert nseg == SEG[i]
        # shifted copies concatenated along N; padded K rows / N cols are zero.
        shifted = [_pad2d(m @ q[j], kin_pad, nseg) for j in range(pk)]
        wide_ws.append(np.concatenate(shifted, axis=1))          # (kin_pad, pk*nseg)
        # conv bias is identical for every pool shift -> add once, after the max.
        stage_bs.append(_pad2d(bflat @ q[0], 1, nseg))            # (1, nseg)
        lcur = lpool
        kin_pad = nseg
    assert lcur == 5 and kin_pad == SEG[2]

    # ---- conv4 (no pool) + energy concat + Conv1d(16,32,4), all fused ---------
    cin4, cout4, kk4, s4 = CONV_CFG[3]
    w4, b4 = init_conv(keys[3], cout4, cin4, kk4)
    m4, b4flat, l4 = toeplitz_matmul_form(w4, b4, lcur, s4)       # (80, 48), (1,48)
    assert l4 == 3

    c = 16
    s_mat = np.zeros((c * 3, c * 4), np.float32)                  # place conv4 out
    e_mask = np.zeros((1, c * 4), np.float32)                     # place energy
    for ch in range(c):
        for l in range(3):
            s_mat[ch * 3 + l, ch * 4 + l] = 1.0
        e_mask[0, ch * 4 + 3] = 1.0

    wf, bf = init_conv(keys[4], 32, 16, 4)
    wf_mat = wf.transpose(1, 2, 0).reshape(c * 4, 32)             # (64, 32)

    w_tail = _pad2d(m4 @ s_mat @ wf_mat, SEG[2], 32)              # (128, 32)
    b_tail = b4flat @ s_mat @ wf_mat + bf[None, :]                # (1, 32)
    e_row = e_mask @ wf_mat                                       # (1, 32)

    # ---- eval-mode BatchNorm1d(15) on the energy, folded into per-fv tables --
    bn_w, bn_b = np.ones(FV, np.float32), np.zeros(FV, np.float32)
    bn_rm, bn_rv = np.zeros(FV, np.float32), np.ones(FV, np.float32)
    bn_scale = bn_w / np.sqrt(bn_rv + EPS_BN)
    bn_shift = bn_b - bn_rm * bn_scale
    e_scale_tab = bn_scale[:, None] * e_row                       # (FV, 32)
    e_shift_tab = bn_shift[:, None] * e_row                       # (FV, 32)

    return {
        # LayerNorm(245): torch default affine init (weight=1, bias=0)
        "ln_g": jnp.ones((1, L), jnp.float32),
        "ln_b": jnp.zeros((1, L), jnp.float32),
        # matmul-chain weights in bf16 (MXU native, half the weight DMA bytes)
        "W1": jnp.asarray(wide_ws[0], jnp.bfloat16),   # (245, 1152)
        "b1": jnp.asarray(stage_bs[0], jnp.float32),   # (1, 384)
        "W2": jnp.asarray(wide_ws[1], jnp.bfloat16),   # (384, 768)
        "b2": jnp.asarray(stage_bs[1], jnp.float32),   # (1, 256)
        "W3": jnp.asarray(wide_ws[2], jnp.bfloat16),   # (256, 384)
        "b3": jnp.asarray(stage_bs[2], jnp.float32),   # (1, 128)
        "Wt": jnp.asarray(w_tail, jnp.bfloat16),       # (128, 32)
        "bt": jnp.asarray(b_tail, jnp.float32),        # (1, 32) (folded into eshift)
        "e_scale_tab": jnp.asarray(e_scale_tab, jnp.float32),   # (FV, 32)
        "e_shift_tab": jnp.asarray(e_shift_tab, jnp.float32),   # (FV, 32)
    }


# ----- the Pallas kernel ------------------------------------------------------
def cnn_triplet_kernel(x_ref, lng_ref, lnb_ref,
                       w1_ref, b1_ref, w2_ref, b2_ref, w3_ref, b3_ref,
                       wt_ref, escale_ref, eshift_ref,
                       o_ref):
    x = x_ref[...]                                            # (T, 245) f32

    # energy = sum(x**2) on the RAW input (BN affine folded into escale/eshift)
    energy = jnp.sum(x * x, axis=-1, keepdims=True)           # (T, 1) f32

    # LayerNorm(245) in f32
    mu = jnp.mean(x, axis=-1, keepdims=True)
    var = jnp.mean((x - mu) ** 2, axis=-1, keepdims=True)
    h = (x - mu) * jax.lax.rsqrt(var + EPS_LN) * lng_ref[...] + lnb_ref[...]
    h = h.astype(jnp.bfloat16)

    # fused Conv1d + MaxPool1d stage: ONE wide matmul, then a max over three
    # 128-aligned column slices (pool shifts), then the shared conv bias.
    def conv_pool(v, w_ref, b_ref, nseg):
        wide = jnp.dot(v, w_ref[...], preferred_element_type=jnp.float32)  # (T, 3*nseg)
        pooled = jnp.maximum(jnp.maximum(wide[:, :nseg], wide[:, nseg:2 * nseg]),
                             wide[:, 2 * nseg:3 * nseg])
        return (pooled + b_ref[...]).astype(jnp.bfloat16)

    h = conv_pool(h, w1_ref, b1_ref, SEG[0])      # (T, 384)  conv1+pool1 (320 real)
    h = conv_pool(h, w2_ref, b2_ref, SEG[1])      # (T, 256)  conv2+pool2 (144 real)
    h = conv_pool(h, w3_ref, b3_ref, SEG[2])      # (T, 128)  conv3+pool3 ( 80 real)

    # fused conv4 -> cat(energy) -> Conv1d(16,32,4); conv bias + BN shift are in eshift
    out = jnp.dot(h, wt_ref[...], preferred_element_type=jnp.float32)
    o_ref[...] = out + energy * escale_ref[...] + eshift_ref[...]     # (T, 32) f32


# ----- wrapper ----------------------------------------------------------------
def cnn_triplet_visual_r(pen1fea, referfea, pen2fea, params):
    x = jnp.concatenate([pen1fea, referfea, pen2fea], axis=0)   # (3b, FV, 245)
    b3 = x.shape[0]
    n = b3 * FV
    x2d = x.reshape(n, L)                                       # row = b*FV + fv

    # Row tile: multiple of lcm(8, FV)=120 so the per-row fv pattern is identical
    # in every tile.  Aim for >=2 grid tiles (both TensorCores on v7x) while
    # keeping tiles as large as possible (cap 1920 rows) to amortize grid-step
    # overhead on v5e/v6e.
    n_q = _round_up(n, ROW_QUANTUM)
    blocks = n_q // ROW_QUANTUM
    max_bpt = MAX_TILE_ROWS // ROW_QUANTUM
    bpt = 1 if blocks < 2 else min(max_bpt, max(1, blocks // 2))
    tile_n = bpt * ROW_QUANTUM
    npad = _round_up(n, tile_n)
    if npad != n:
        x2d = jnp.pad(x2d, ((0, npad - n), (0, 0)))
    num_tiles = npad // tile_n

    # Tile-shaped BN/energy tables (constant across tiles); fold b_tail in too.
    reps = tile_n // FV
    escale_tile = jnp.tile(params["e_scale_tab"], (reps, 1))                   # (tile_n, 32)
    eshift_tile = jnp.tile(params["e_shift_tab"], (reps, 1)) + params["bt"]    # (tile_n, 32)

    def rep(shape):
        nd = len(shape)
        return pl.BlockSpec(tuple(shape), lambda i, _nd=nd: (0,) * _nd)   # grid-invariant

    in_specs = [
        pl.BlockSpec((tile_n, L), lambda i: (i, 0)),
        rep((1, L)), rep((1, L)),
        rep(params["W1"].shape), rep(params["b1"].shape),
        rep(params["W2"].shape), rep(params["b2"].shape),
        rep(params["W3"].shape), rep(params["b3"].shape),
        rep(params["Wt"].shape),
        rep((tile_n, 32)), rep((tile_n, 32)),
    ]

    macs = (L * 3 * SEG[0] + SEG[0] * 3 * SEG[1] + SEG[1] * 3 * SEG[2] + SEG[2] * 32)
    flops = 2 * npad * macs
    weight_bytes = sum(int(np.prod(params[k].shape)) * params[k].dtype.itemsize
                       for k in ("W1", "b1", "W2", "b2", "W3", "b3", "Wt"))
    bytes_accessed = int(npad * (L + 32) * 4 + weight_bytes)

    out = pl.pallas_call(
        cnn_triplet_kernel,
        out_shape=jax.ShapeDtypeStruct((npad, 32), jnp.float32),
        grid=(num_tiles,),
        in_specs=in_specs,
        out_specs=pl.BlockSpec((tile_n, 32), lambda i: (i, 0)),
        compiler_params=pltpu.CompilerParams(
            dimension_semantics=("parallel",),
            vmem_limit_bytes=48 * 1024 * 1024),
        cost_estimate=pl.CostEstimate(
            flops=int(flops), transcendentals=int(npad),
            bytes_accessed=bytes_accessed),
    )(x2d, params["ln_g"], params["ln_b"],
      params["W1"], params["b1"], params["W2"], params["b2"],
      params["W3"], params["b3"], params["Wt"],
      escale_tile, eshift_tile)

    out = out[:n].reshape(b3, FV, 32)
    b = b3 // 3
    return out[:b], out[b:2 * b], out[2 * b:]      # torch.chunk(out, 3) along dim 0


if __name__ == "__main__":
    key = jax.random.PRNGKey(0)
    kp, k1, k2, k3 = jax.random.split(key, 4)
    params = build_params(kp)

    batch = 2
    pen1fea = jax.random.normal(k1, (batch, FV, L), jnp.float32)
    referfea = jax.random.normal(k2, (batch, FV, L), jnp.float32)
    pen2fea = jax.random.normal(k3, (batch, FV, L), jnp.float32)

    fwd = jax.jit(lambda a, r, c: cnn_triplet_visual_r(a, r, c, params))
    y0, y1, y2 = fwd(pen1fea, referfea, pen2fea)
    jax.block_until_ready((y0, y1, y2))

    assert y0.shape == (batch, FV, 32)
    assert y1.shape == (batch, FV, 32)
    assert y2.shape == (batch, FV, 32)
    assert jnp.all(jnp.isfinite(y0)) and jnp.all(jnp.isfinite(y1)) and jnp.all(jnp.isfinite(y2))
    print("KERNEL_OK")
</pallas_src>

<mosaic_0001>
module attributes {stable_mosaic.version = 11 : i64} {
  func.func @cnn_triplet_kernel(%arg0: i32, %arg1: memref<120x245xf32, #tpu.memory_space<vmem>>, %arg2: memref<1x245xf32, #tpu.memory_space<vmem>>, %arg3: memref<1x245xf32, #tpu.memory_space<vmem>>, %arg4: memref<245x1152xbf16, #tpu.memory_space<vmem>>, %arg5: memref<1x384xf32, #tpu.memory_space<vmem>>, %arg6: memref<384x768xbf16, #tpu.memory_space<vmem>>, %arg7: memref<1x256xf32, #tpu.memory_space<vmem>>, %arg8: memref<256x384xbf16, #tpu.memory_space<vmem>>, %arg9: memref<1x128xf32, #tpu.memory_space<vmem>>, %arg10: memref<128x32xbf16, #tpu.memory_space<vmem>>, %arg11: memref<120x32xf32, #tpu.memory_space<vmem>>, %arg12: memref<120x32xf32, #tpu.memory_space<vmem>>, %arg13: memref<120x32xf32, #tpu.memory_space<vmem>>) attributes {dimension_semantics = [#tpu.dimension_semantics<parallel>], iteration_bounds = array<i64: 1>, scalar_prefetch = 0 : i64, scratch_operands = 0 : i64, tpu.core_type = #tpu.core_type<tc>, window_params = [{transform_indices = @transform_0, window_bounds = array<i64: 120, 245>}, {pipeline_mode = #tpu.pipeline_mode<synchronous>, transform_indices = @transform_1, window_bounds = array<i64: 1, 245>}, {pipeline_mode = #tpu.pipeline_mode<synchronous>, transform_indices = @transform_2, window_bounds = array<i64: 1, 245>}, {pipeline_mode = #tpu.pipeline_mode<synchronous>, transform_indices = @transform_3, window_bounds = array<i64: 245, 1152>}, {pipeline_mode = #tpu.pipeline_mode<synchronous>, transform_indices = @transform_4, window_bounds = array<i64: 1, 384>}, {pipeline_mode = #tpu.pipeline_mode<synchronous>, transform_indices = @transform_5, window_bounds = array<i64: 384, 768>}, {pipeline_mode = #tpu.pipeline_mode<synchronous>, transform_indices = @transform_6, window_bounds = array<i64: 1, 256>}, {pipeline_mode = #tpu.pipeline_mode<synchronous>, transform_indices = @transform_7, window_bounds = array<i64: 256, 384>}, {pipeline_mode = #tpu.pipeline_mode<synchronous>, transform_indices = @transform_8, window_bounds = array<i64: 1, 128>}, {pipeline_mode = #tpu.pipeline_mode<synchronous>, transform_indices = @transform_9, window_bounds = array<i64: 128, 32>}, {pipeline_mode = #tpu.pipeline_mode<synchronous>, transform_indices = @transform_10, window_bounds = array<i64: 120, 32>}, {pipeline_mode = #tpu.pipeline_mode<synchronous>, transform_indices = @transform_11, window_bounds = array<i64: 120, 32>}, {transform_indices = @transform_12, window_bounds = array<i64: 120, 32>}]} {
    %c0 = arith.constant 0 : index
    %c0_0 = arith.constant 0 : index
    %0 = vector.load %arg1[%c0, %c0_0] : memref<120x245xf32, #tpu.memory_space<vmem>>, vector<120x245xf32>
    %1 = arith.mulf %0, %0 : vector<120x245xf32>
    %cst = arith.constant dense<0.000000e+00> : vector<120xf32>
    %2 = vector.multi_reduction <add>, %1, %cst [1] : vector<120x245xf32> to vector<120xf32>
    %3 = vector.shape_cast %2 : vector<120xf32> to vector<120x1xf32>
    %cst_1 = arith.constant dense<0.000000e+00> : vector<120xf32>
    %4 = vector.multi_reduction <add>, %0, %cst_1 [1] : vector<120x245xf32> to vector<120xf32>
    %5 = vector.shape_cast %4 : vector<120xf32> to vector<120x1xf32>
    %cst_2 = arith.constant 2.450000e+02 : f32
    %6 = vector.broadcast %cst_2 : f32 to vector<120x1xf32>
    %7 = arith.divf %5, %6 : vector<120x1xf32>
    %8 = vector.broadcast %7 : vector<120x1xf32> to vector<120x245xf32>
    %9 = arith.subf %0, %8 : vector<120x245xf32>
    %10 = arith.mulf %9, %9 : vector<120x245xf32>
    %cst_3 = arith.constant dense<0.000000e+00> : vector<120xf32>
    %11 = vector.multi_reduction <add>, %10, %cst_3 [1] : vector<120x245xf32> to vector<120xf32>
    %12 = vector.shape_cast %11 : vector<120xf32> to vector<120x1xf32>
    %cst_4 = arith.constant 2.450000e+02 : f32
    %13 = vector.broadcast %cst_4 : f32 to vector<120x1xf32>
    %14 = arith.divf %12, %13 : vector<120x1xf32>
    %15 = vector.broadcast %7 : vector<120x1xf32> to vector<120x245xf32>
    %16 = arith.subf %0, %15 : vector<120x245xf32>
    %cst_5 = arith.constant 9.99999974E-6 : f32
    %17 = vector.broadcast %cst_5 : f32 to vector<120x1xf32>
    %18 = arith.addf %14, %17 : vector<120x1xf32>
    %19 = math.rsqrt %18 : vector<120x1xf32>
    %20 = vector.broadcast %19 : vector<120x1xf32> to vector<120x245xf32>
    %21 = arith.mulf %16, %20 : vector<120x245xf32>
    %c0_6 = arith.constant 0 : index
    %c0_7 = arith.constant 0 : index
    %22 = vector.load %arg2[%c0_6, %c0_7] : memref<1x245xf32, #tpu.memory_space<vmem>>, vector<1x245xf32>
    %23 = vector.broadcast %22 : vector<1x245xf32> to vector<120x245xf32>
    %24 = arith.mulf %21, %23 : vector<120x245xf32>
    %c0_8 = arith.constant 0 : index
    %c0_9 = arith.constant 0 : index
    %25 = vector.load %arg3[%c0_8, %c0_9] : memref<1x245xf32, #tpu.memory_space<vmem>>, vector<1x245xf32>
    %26 = vector.broadcast %25 : vector<1x245xf32> to vector<120x245xf32>
    %27 = arith.addf %24, %26 : vector<120x245xf32>
    %28 = arith.truncf %27 : vector<120x245xf32> to vector<120x245xbf16>
    %c0_10 = arith.constant 0 : index
    %c0_11 = arith.constant 0 : index
    %29 = vector.load %arg4[%c0_10, %c0_11] : memref<245x1152xbf16, #tpu.memory_space<vmem>>, vector<245x1152xbf16>
    %cst_12 = arith.constant dense<0.000000e+00> : vector<120x1152xf32>
    %30 = tpu.matmul %28, %29, %cst_12 {dimension_numbers = #tpu.dot_dimension_numbers<[1], [0], [0], [1], [0, 0, 1, 1], [], []>} : vector<120x245xbf16>, vector<245x1152xbf16>, vector<120x1152xf32> -> vector<120x1152xf32>
    %31 = vector.extract_strided_slice %30 {offsets = [0, 0], sizes = [120, 384], strides = [1, 1]} : vector<120x1152xf32> to vector<120x384xf32>
    %32 = vector.extract_strided_slice %30 {offsets = [0, 384], sizes = [120, 384], strides = [1, 1]} : vector<120x1152xf32> to vector<120x384xf32>
    %33 = arith.maximumf %31, %32 : vector<120x384xf32>
    %34 = vector.extract_strided_slice %30 {offsets = [0, 768], sizes = [120, 384], strides = [1, 1]} : vector<120x1152xf32> to vector<120x384xf32>
    %35 = arith.maximumf %33, %34 : vector<120x384xf32>
    %c0_13 = arith.constant 0 : index
    %c0_14 = arith.constant 0 : index
    %36 = vector.load %arg5[%c0_13, %c0_14] : memref<1x384xf32, #tpu.memory_space<vmem>>, vector<1x384xf32>
    %37 = vector.broadcast %36 : vector<1x384xf32> to vector<120x384xf32>
    %38 = arith.addf %35, %37 : vector<120x384xf32>
    %39 = arith.truncf %38 : vector<120x384xf32> to vector<120x384xbf16>
    %c0_15 = arith.constant 0 : index
    %c0_16 = arith.constant 0 : index
    %40 = vector.load %arg6[%c0_15, %c0_16] : memref<384x768xbf16, #tpu.memory_space<vmem>>, vector<384x768xbf16>
    %cst_17 = arith.constant dense<0.000000e+00> : vector<120x768xf32>
    %41 = tpu.matmul %39, %40, %cst_17 {dimension_numbers = #tpu.dot_dimension_numbers<[1], [0], [0], [1], [0, 0, 1, 1], [], []>} : vector<120x384xbf16>, vector<384x768xbf16>, vector<120x768xf32> -> vector<120x768xf32>
    %42 = vector.extract_strided_slice %41 {offsets = [0, 0], sizes = [120, 256], strides = [1, 1]} : vector<120x768xf32> to vector<120x256xf32>
    %43 = vector.extract_strided_slice %41 {offsets = [0, 256], sizes = [120, 256], strides = [1, 1]} : vector<120x768xf32> to vector<120x256xf32>
    %44 = arith.maximumf %42, %43 : vector<120x256xf32>
    %45 = vector.extract_strided_slice %41 {offsets = [0, 512], sizes = [120, 256], strides = [1, 1]} : vector<120x768xf32> to vector<120x256xf32>
    %46 = arith.maximumf %44, %45 : vector<120x256xf32>
    %c0_18 = arith.constant 0 : index
    %c0_19 = arith.constant 0 : index
    %47 = vector.load %arg7[%c0_18, %c0_19] : memref<1x256xf32, #tpu.memory_space<vmem>>, vector<1x256xf32>
    %48 = vector.broadcast %47 : vector<1x256xf32> to vector<120x256xf32>
    %49 = arith.addf %46, %48 : vector<120x256xf32>
    %50 = arith.truncf %49 : vector<120x256xf32> to vector<120x256xbf16>
    %c0_20 = arith.constant 0 : index
    %c0_21 = arith.constant 0 : index
    %51 = vector.load %arg8[%c0_20, %c0_21] : memref<256x384xbf16, #tpu.memory_space<vmem>>, vector<256x384xbf16>
    %cst_22 = arith.constant dense<0.000000e+00> : vector<120x384xf32>
    %52 = tpu.matmul %50, %51, %cst_22 {dimension_numbers = #tpu.dot_dimension_numbers<[1], [0], [0], [1], [0, 0, 1, 1], [], []>} : vector<120x256xbf16>, vector<256x384xbf16>, vector<120x384xf32> -> vector<120x384xf32>
    %53 = vector.extract_strided_slice %52 {offsets = [0, 0], sizes = [120, 128], strides = [1, 1]} : vector<120x384xf32> to vector<120x128xf32>
    %54 = vector.extract_strided_slice %52 {offsets = [0, 128], sizes = [120, 128], strides = [1, 1]} : vector<120x384xf32> to vector<120x128xf32>
    %55 = arith.maximumf %53, %54 : vector<120x128xf32>
    %56 = vector.extract_strided_slice %52 {offsets = [0, 256], sizes = [120, 128], strides = [1, 1]} : vector<120x384xf32> to vector<120x128xf32>
    %57 = arith.maximumf %55, %56 : vector<120x128xf32>
    %c0_23 = arith.constant 0 : index
    %c0_24 = arith.constant 0 : index
    %58 = vector.load %arg9[%c0_23, %c0_24] : memref<1x128xf32, #tpu.memory_space<vmem>>, vector<1x128xf32>
    %59 = vector.broadcast %58 : vector<1x128xf32> to vector<120x128xf32>
    %60 = arith.addf %57, %59 : vector<120x128xf32>
    %61 = arith.truncf %60 : vector<120x128xf32> to vector<120x128xbf16>
    %c0_25 = arith.constant 0 : index
    %c0_26 = arith.constant 0 : index
    %62 = vector.load %arg10[%c0_25, %c0_26] : memref<128x32xbf16, #tpu.memory_space<vmem>>, vector<128x32xbf16>
    %cst_27 = arith.constant dense<0.000000e+00> : vector<120x32xf32>
    %63 = tpu.matmul %61, %62, %cst_27 {dimension_numbers = #tpu.dot_dimension_numbers<[1], [0], [0], [1], [0, 0, 1, 1], [], []>} : vector<120x128xbf16>, vector<128x32xbf16>, vector<120x32xf32> -> vector<120x32xf32>
    %c0_28 = arith.constant 0 : index
    %c0_29 = arith.constant 0 : index
    %64 = vector.load %arg11[%c0_28, %c0_29] : memref<120x32xf32, #tpu.memory_space<vmem>>, vector<120x32xf32>
    %65 = vector.broadcast %3 : vector<120x1xf32> to vector<120x32xf32>
    %66 = arith.mulf %65, %64 : vector<120x32xf32>
    %67 = arith.addf %63, %66 : vector<120x32xf32>
    %c0_30 = arith.constant 0 : index
    %c0_31 = arith.constant 0 : index
    %68 = vector.load %arg12[%c0_30, %c0_31] : memref<120x32xf32, #tpu.memory_space<vmem>>, vector<120x32xf32>
    %69 = arith.addf %67, %68 : vector<120x32xf32>
    %c0_32 = arith.constant 0 : index
    %c0_33 = arith.constant 0 : index
    %70 = vector.load %arg13[%c0_32, %c0_33] : memref<120x32xf32, #tpu.memory_space<vmem>>, vector<120x32xf32>
    tpu.vector_store %arg13[%c0_32, %c0_33], %69 {strides = array<i32>} : memref<120x32xf32, #tpu.memory_space<vmem>>, vector<120x32xf32>,
    return
  }
  func.func @transform_0(%arg0: i32) -> (i32, i32) {
    %c0_i32 = arith.constant 0 : i32
    %c0_i32_0 = arith.constant 0 : i32
    return %arg0, %c0_i32 : i32, i32
  }
  func.func @transform_1(%arg0: i32) -> (i32, i32) {
    %c0_i32 = arith.constant 0 : i32
    %c0_i32_0 = arith.constant 0 : i32
    %c0_i32_1 = arith.constant 0 : i32
    return %c0_i32, %c0_i32_0 : i32, i32
  }
  func.func @transform_2(%arg0: i32) -> (i32, i32) {
    %c0_i32 = arith.constant 0 : i32
    %c0_i32_0 = arith.constant 0 : i32
    %c0_i32_1 = arith.constant 0 : i32
    return %c0_i32, %c0_i32_0 : i32, i32
  }
  func.func @transform_3(%arg0: i32) -> (i32, i32) {
    %c0_i32 = arith.constant 0 : i32
    %c0_i32_0 = arith.constant 0 : i32
    %c0_i32_1 = arith.constant 0 : i32
    return %c0_i32, %c0_i32_0 : i32, i32
  }
  func.func @transform_4(%arg0: i32) -> (i32, i32) {
    %c0_i32 = arith.constant 0 : i32
    %c0_i32_0 = arith.constant 0 : i32
    %c0_i32_1 = arith.constant 0 : i32
    return %c0_i32, %c0_i32_0 : i32, i32
  }
  func.func @transform_5(%arg0: i32) -> (i32, i32) {
    %c0_i32 = arith.constant 0 : i32
    %c0_i32_0 = arith.constant 0 : i32
    %c0_i32_1 = arith.constant 0 : i32
    return %c0_i32, %c0_i32_0 : i32, i32
  }
  func.func @transform_6(%arg0: i32) -> (i32, i32) {
    %c0_i32 = arith.constant 0 : i32
    %c0_i32_0 = arith.constant 0 : i32
    %c0_i32_1 = arith.constant 0 : i32
    return %c0_i32, %c0_i32_0 : i32, i32
  }
  func.func @transform_7(%arg0: i32) -> (i32, i32) {
    %c0_i32 = arith.constant 0 : i32
    %c0_i32_0 = arith.constant 0 : i32
    %c0_i32_1 = arith.constant 0 : i32
    return %c0_i32, %c0_i32_0 : i32, i32
  }
  func.func @transform_8(%arg0: i32) -> (i32, i32) {
    %c0_i32 = arith.constant 0 : i32
    %c0_i32_0 = arith.constant 0 : i32
    %c0_i32_1 = arith.constant 0 : i32
    return %c0_i32, %c0_i32_0 : i32, i32
  }
  func.func @transform_9(%arg0: i32) -> (i32, i32) {
    %c0_i32 = arith.constant 0 : i32
    %c0_i32_0 = arith.constant 0 : i32
    %c0_i32_1 = arith.constant 0 : i32
    return %c0_i32, %c0_i32_0 : i32, i32
  }
  func.func @transform_10(%arg0: i32) -> (i32, i32) {
    %c0_i32 = arith.constant 0 : i32
    %c0_i32_0 = arith.constant 0 : i32
    %c0_i32_1 = arith.constant 0 : i32
    return %c0_i32, %c0_i32_0 : i32, i32
  }
  func.func @transform_11(%arg0: i32) -> (i32, i32) {
    %c0_i32 = arith.constant 0 : i32
    %c0_i32_0 = arith.constant 0 : i32
    %c0_i32_1 = arith.constant 0 : i32
    return %c0_i32, %c0_i32_0 : i32, i32
  }
  func.func @transform_12(%arg0: i32) -> (i32, i32) {
    %c0_i32 = arith.constant 0 : i32
    %c0_i32_0 = arith.constant 0 : i32
    return %arg0, %c0_i32 : i32, i32
  }
}

</mosaic_0001>

<bundles_post_ra>
// kernel: tile.15
= control target key start
LH: loop header
LB: loop body
LE: loop exit
PB: predicated region body
PF: predicated region fallthrough
CT: control target
= control target key end

     0   :  { %vm3_vm0 = vcmask 261120   ;;  %s232_s0 = inlined_call_operand.vmem [shape: f32[8,15,32], index: 0, kind: input, shape index: {}]   ;;  %s233_s1 = inlined_call_operand.vmem [shape: f32[120,32], index: 1, kind: output, shape index: {}]  }
   0x1   :  { %v2_v0 = vld [vmem:[%s232_s0] sm:$0xff]   ;;  %v80_v1 = vld [vmem:[%s232_s0 + $0x8] sm:$0x7f]   ;;  %v82_v2 = vld [vmem:[%s232_s0 + $0x10] sm:$0xff]  }
   0x2   :  { %4 = vst.msk [vmem:[%s233_s1] sm:$0xff] %vm3_vm0, %v2_v0   ;;  %81 = vst.msk [vmem:[%s233_s1 + $0x8] sm:$0x7f] %vm3_vm0, %v80_v1   ;;  %v84_v3 = vld [vmem:[%s232_s0 + $0x18] sm:$0x7f]   ;;  %v86_v4 = vld [vmem:[%s232_s0 + $0x20] sm:$0xff]  }
   0x3   :  { %83 = vst.msk [vmem:[%s233_s1 + $0xf] sm:$0xff] %vm3_vm0, %v82_v2   ;;  %v88_v5 = vld [vmem:[%s232_s0 + $0x28] sm:$0x7f]   ;;  %85 = vst.msk [vmem:[%s233_s1 + $0x17] sm:$0x7f] %vm3_vm0, %v84_v3   ;;  %v90_v6 = vld [vmem:[%s232_s0 + $0x30] sm:$0xff]  }
   0x4   :  { %87 = vst.msk [vmem:[%s233_s1 + $0x1e] sm:$0xff] %vm3_vm0, %v86_v4   ;;  %89 = vst.msk [vmem:[%s233_s1 + $0x26] sm:$0x7f] %vm3_vm0, %v88_v5   ;;  %v92_v7 = vld [vmem:[%s232_s0 + $0x38] sm:$0x7f]   ;;  %v94_v8 = vld [vmem:[%s232_s0 + $0x40] sm:$0xff]  }
   0x5   :  { %91 = vst.msk [vmem:[%s233_s1 + $0x2d] sm:$0xff] %vm3_vm0, %v90_v6   ;;  %93 = vst.msk [vmem:[%s233_s1 + $0x35] sm:$0x7f] %vm3_vm0, %v92_v7   ;;  %v96_v9 = vld [vmem:[%s232_s0 + $0x48] sm:$0x7f]   ;;  %v98_v10 = vld [vmem:[%s232_s0 + $0x50] sm:$0xff]  }
   0x6   :  { %95 = vst.msk [vmem:[%s233_s1 + $0x3c] sm:$0xff] %vm3_vm0, %v94_v8   ;;  %v100_v11 = vld [vmem:[%s232_s0 + $0x58] sm:$0x7f]   ;;  %97 = vst.msk [vmem:[%s233_s1 + $0x44] sm:$0x7f] %vm3_vm0, %v96_v9   ;;  %v102_v12 = vld [vmem:[%s232_s0 + $0x60] sm:$0xff]  }
   0x7   :  { %99 = vst.msk [vmem:[%s233_s1 + $0x4b] sm:$0xff] %vm3_vm0, %v98_v10   ;;  %101 = vst.msk [vmem:[%s233_s1 + $0x53] sm:$0x7f] %vm3_vm0, %v100_v11   ;;  %v104_v13 = vld [vmem:[%s232_s0 + $0x68] sm:$0x7f]   ;;  %v106_v14 = vld [vmem:[%s232_s0 + $0x70] sm:$0xff]  }
   0x8   :  { %103 = vst.msk [vmem:[%s233_s1 + $0x5a] sm:$0xff] %vm3_vm0, %v102_v12   ;;  %105 = vst.msk [vmem:[%s233_s1 + $0x62] sm:$0x7f] %vm3_vm0, %v104_v13   ;;  %v108_v15 = vld [vmem:[%s232_s0 + $0x78] sm:$0x7f]  }
   0x9   :  { %107 = vst.msk [vmem:[%s233_s1 + $0x69] sm:$0xff] %vm3_vm0, %v106_v14   ;;  %109 = vst.msk [vmem:[%s233_s1 + $0x71] sm:$0x7f] %vm3_vm0, %v108_v15  }

// kernel: _lambda_.1
= control target key start
LH: loop header
LB: loop body
LE: loop exit
PB: predicated region body
PF: predicated region fallthrough
CT: control target
= control target key end

     0   :  { %17 = vsyncpa [#allocation3], 0  ;;  %s5833_s21 = smov [#allocation2]   ;;  %s8832_s0 = inlined_call_operand.vmem [shape: f32[120,245], index: 0, kind: input, shape index: {}]   ;;  %s8833_s1 = inlined_call_operand.vmem [shape: f32[1,245], index: 1, kind: input, shape index: {}]   ;;  %s8834_s2 = inlined_call_operand.vmem [shape: f32[1,245], index: 2, kind: input, shape index: {}]   ;;  %s8835_s3 = inlined_call_operand.vmem [shape: bf16[245,1152], index: 3, kind: input, shape index: {}]   ;;  %s8836_s4 = inlined_call_operand.vmem [shape: f32[1,384], index: 4, kind: input, shape index: {}]   ;;  %s8837_s5 = inlined_call_operand.vmem [shape: bf16[384,768], index: 5, kind: input, shape index: {}]   ;;  %s8838_s6 = inlined_call_operand.vmem [shape: f32[1,256], index: 6, kind: input, shape index: {}]   ;;  %s8839_s7 = inlined_call_operand.vmem [shape: bf16[256,384], index: 7, kind: input, shape index: {}]   ;;  %s8840_s8 = inlined_call_operand.vmem [shape: f32[1,128], index: 8, kind: input, shape index: {}]   ;;  %s8841_s9 = inlined_call_operand.hbm [shape: bf16[128,32], index: 9, kind: input, shape index: {}]   ;;  %s8842_s10 = inlined_call_operand.vmem [shape: f32[120,32], index: 10, kind: input, shape index: {}]   ;;  %s8843_s11 = inlined_call_operand.vmem [shape: f32[120,32], index: 11, kind: input, shape index: {}]   ;;  %s8844_s12 = inlined_call_operand.vmem [shape: f32[120,32], index: 12, kind: output, shape index: {}]  }
   0x1   :  { %s41_s22 = sshll.u32 %s5833_s21, 4  ;;  %s42_s22 = int_to_ptr.vmem [resolvable:$true] %s41_s22 }
   0x2   :  { %s5819_s23 = scalar_lea.vmem %s42_s22, 1024  ;;  %p5824_p1 = scmp.lt.s32.totalorder %s42_s22, %s42_s22 }
   0x3   :  { %p5820_p0 = scmp.ne.s32.totalorder %s42_s22, %s5819_s23  ;;  %p5825_p2 = scmp.lt.s32.totalorder %s5819_s23, %s5819_s23 }
   0x5   :  { %p5826_p3 = por %p5825_p2, %p5824_p1 }
   0x7   :  { %p5827_p4 = pnand %p5826_p3, %p5820_p0 }
   0x9   :  { %5830 = shalt.err (!%p5827_p4)
}
   0xa   :  { %s5834_s24 = smov 64   ;;  %s5835_s25 = smov 4  }
   0xb   :  { %47 = dma.hbm_to_vmem [thread:$0]  %s8841_s9, 1024, %s42_s22, [#allocation3], %s5834_s24, %s5834_s24, %s5835_s25  }
   0xc   :  { %5831 = dma.done.wait [#allocation3], 1024  }
   0xd   :  { %5832 = vsyncadd [#allocation3], 4294966272  ;;  %vm116_vm0 = vcmask 957440   ;;  %v56_v0 = vld [vmem:[%s8832_s0] sm:$0xff]  ;;  %v57_v1 = vld [vmem:[%s8832_s0 + $0x8] sm:$0xff]  ;;  %vm1440_vm1 = vcmask 1041408  }
   0xe   :  { %v60_v2 = vld [vmem:[%s8832_s0 + $0x20] sm:$0xff]  ;;  %v177_v3 = vsel %vm116_vm0, %v57_v1, 0.0  ;;  %v61_v4 = vld [vmem:[%s8832_s0 + $0x28] sm:$0xff]  ;;  %v58_v5 = vld [vmem:[%s8832_s0 + $0x10] sm:$0xff]  ;;  %vm1441_vm2 = vcmask 1042432   ;;  %vm4642_vm3 = vcmask 261120  }
   0xf   :  { %v59_v6 = vld [vmem:[%s8832_s0 + $0x18] sm:$0xff]  ;;  %v178_v7 = vadd.f32 %v177_v3, %v56_v0  ;;  %v185_v8 = vsel %vm116_vm0, %v61_v4, 0.0  ;;  %v62_v10 = vld [vmem:[%s8832_s0 + $0x30] sm:$0xff]  ;;  %v65_v14 = vld [vmem:[%s8832_s0 + $0x48] sm:$0xff] }
  0x10   :  { %v181_v9 = vsel %vm116_vm0, %v59_v6, 0.0  ;;  %v63_v11 = vld [vmem:[%s8832_s0 + $0x38] sm:$0xff]  ;;  %v186_v12 = vadd.f32 %v185_v8, %v60_v2  ;;  %v64_v18 = vld [vmem:[%s8832_s0 + $0x40] sm:$0xff]  ;;  %v193_v19 = vsel %vm116_vm0, %v65_v14, 0.0  ;;  %v66_v20 = vld [vmem:[%s8832_s0 + $0x50] sm:$0xff] }
  0x11   :  { %v189_v13 = vsel %vm116_vm0, %v63_v11, 0.0  ;;  %v67_v15 = vld [vmem:[%s8832_s0 + $0x58] sm:$0xff]  ;;  %179 = vadd.xlane.f32.xlu0 %v178_v7  ;;  %v182_v16 = vadd.f32 %v181_v9, %v58_v5  ;;  %v69_v22 = vld [vmem:[%s8832_s0 + $0x68] sm:$0xff]  ;;  %v194_v24 = vadd.f32 %v193_v19, %v64_v18  ;;  %v68_v25 = vld [vmem:[%s8832_s0 + $0x60] sm:$0xff] }
  0x12   :  { %187 = vadd.xlane.f32.xlu1 %v186_v12  ;;  %v190_v17 = vadd.f32 %v189_v13, %v62_v10  ;;  %v197_v21 = vsel %vm116_vm0, %v67_v15, 0.0  ;;  %v71_v23 = vld [vmem:[%s8832_s0 + $0x78] sm:$0xff]  ;;  %v201_v27 = vsel %vm116_vm0, %v69_v22, 0.0  ;;  %v70_v28 = vld [vmem:[%s8832_s0 + $0x70] sm:$0xff]  ;;  %v73_v29 = vld [vmem:[%s8832_s0 + $0x88] sm:$0xff] }
  0x13   :  { %v198_v26 = vadd.f32 %v197_v21, %v66_v20  ;;  %v75_v30 = vld [vmem:[%s8832_s0 + $0x98] sm:$0xff]  ;;  %v205_v31 = vsel %vm116_vm0, %v71_v23, 0.0  ;;  %v72_v32 = vld [vmem:[%s8832_s0 + $0x80] sm:$0xff]  ;;  %v202_v33 = vadd.f32 %v201_v27, %v68_v25  ;;  %v74_v34 = vld [vmem:[%s8832_s0 + $0x90] sm:$0xff]  ;;  %v209_v37 = vsel %vm116_vm0, %v73_v29, 0.0 }
  0x14   :  { %v77_v35 = vld [vmem:[%s8832_s0 + $0xa8] sm:$0xff]  ;;  %v206_v36 = vadd.f32 %v205_v31, %v70_v28  ;;  %v79_v38 = vld [vmem:[%s8832_s0 + $0xb8] sm:$0xff]  ;;  %v213_v39 = vsel %vm116_vm0, %v75_v30, 0.0  ;;  %v76_v40 = vld [vmem:[%s8832_s0 + $0xa0] sm:$0xff]  ;;  %v210_v41 = vadd.f32 %v209_v37, %v72_v32  ;;  %v5836_v28 = vmov 65535  }
  0x15   :  { %183 = vadd.xlane.f32.xlu0 %v182_v16  ;;  %v78_v42 = vld [vmem:[%s8832_s0 + $0xb0] sm:$0xff]  ;;  %v81_v43 = vld [vmem:[%s8832_s0 + $0xc8] sm:$0xff]  ;;  %v214_v44 = vadd.f32 %v213_v39, %v74_v34  ;;  %v217_v45 = vsel %vm116_vm0, %v77_v35, 0.0  ;;  %v83_v46 = vld [vmem:[%s8832_s0 + $0xd8] sm:$0xff]  ;;  %v221_v47 = vsel %vm116_vm0, %v79_v38, 0.0  ;;  %v1442_v29 = vsel %vm1440_vm1, 4294967295, %v5836_v28 }
  0x16   :  { %191 = vadd.xlane.f32.xlu1 %v190_v17  ;;  %v80_v48 = vld [vmem:[%s8832_s0 + $0xc0] sm:$0xff]  ;;  %v218_v49 = vadd.f32 %v217_v45, %v76_v40  ;;  %v82_v50 = vld [vmem:[%s8832_s0 + $0xd0] sm:$0xff]  ;;  %v85_v51 = vld [vmem:[%s8832_s0 + $0xe8] sm:$0xff]  ;;  %v222_v52 = vadd.f32 %v221_v47, %v78_v42  ;;  %v225_v53 = vsel %vm116_vm0, %v81_v43, 0.0  ;;  %v229_v54 = vsel %vm116_vm0, %v83_v46, 0.0 }
  0x17   :  { %v84_v55 = vld [vmem:[%s8832_s0 + $0xe0] sm:$0xff]  ;;  %v226_v56 = vadd.f32 %v225_v53, %v80_v48  ;;  %v230_v57 = vadd.f32 %v229_v54, %v82_v50  ;;  %v233_v58 = vsel %vm116_vm0, %v85_v51, 0.0  ;;  %v5231_v61 = vld [vmem:[%s8835_s3 + $0x1f8] ss:$36 sps:$4 sm:$0xff]   ;;  %v5237_v2 = vld [vmem:[%s8835_s3 + $0x1b0] ss:$36 sps:$4 sm:$0xff]  }
  0x18   :  { %v234_v59 = vadd.f32 %v233_v58, %v84_v55  ;;  %v5229_v60 = vld [vmem:[%s8835_s3 + $0x1fc] ss:$36 sps:$4 sm:$0xff]   ;;  %v5232_v62 = vld [vmem:[%s8835_s3 + $0x204] ss:$36 sps:$4 sm:$0xff]   ;;  %v5235_v0 = vld [vmem:[%s8835_s3 + $0x1b4] ss:$36 sps:$4 sm:$0xff]  }
  0x19   :  { %195 = vadd.xlane.f32.xlu0 %v194_v24  ;;  %v5234_v63 = vld [vmem:[%s8835_s3 + $0x200] ss:$36 sps:$4 sm:$0xff]   ;;  %1471 = vmatprep.subr.bf16.mxu0 %v5229_v60  ;;  %v5240_v3 = vld [vmem:[%s8835_s3 + $0x1b8] ss:$36 sps:$4 sm:$0xff]   ;;  %v5241_v4 = vld [vmem:[%s8835_s3 + $0x16c] ss:$36 sps:$4 sm:$0xff]  }
  0x1a   :  { %199 = vadd.xlane.f32.xlu1 %v198_v26  ;;  %1582 = vmatprep.subr.bf16.mxu1 %v5232_v62  ;;  %v5238_v1 = vld [vmem:[%s8835_s3 + $0x1bc] ss:$36 sps:$4 sm:$0xff]   ;;  %v5244_v5 = vld [vmem:[%s8835_s3 + $0x174] ss:$36 sps:$4 sm:$0xff]   ;;  %v5243_v6 = vld [vmem:[%s8835_s3 + $0x168] ss:$36 sps:$4 sm:$0xff]  }
  0x1b   :  { %1472 = vmatpush1.bf16.msra.mxu0 %v5231_v61  ;;  %1583 = vmatpush1.bf16.msra.mxu1 %v5234_v63  ;;  %v5246_v7 = vld [vmem:[%s8835_s3 + $0x170] ss:$36 sps:$4 sm:$0xff]   ;;  %v5247_v8 = vld [vmem:[%s8835_s3 + $0x124] ss:$36 sps:$4 sm:$0xff]   ;;  %v5253_v12 = vld [vmem:[%s8835_s3 + $0xdc] ss:$36 sps:$4 sm:$0xff]  }
  0x1c   :  { %1473 = vmatprep.subr.bf16.mxu0 %v5235_v0  ;;  %1584 = vmatprep.subr.bf16.mxu1 %v5238_v1  ;;  %v5250_v9 = vld [vmem:[%s8835_s3 + $0x12c] ss:$36 sps:$4 sm:$0xff]   ;;  %v5249_v10 = vld [vmem:[%s8835_s3 + $0x120] ss:$36 sps:$4 sm:$0xff]   ;;  %v5255_v14 = vld [vmem:[%s8835_s3 + $0xd8] ss:$36 sps:$4 sm:$0xff]  }
  0x1d   :  { %203 = vadd.xlane.f32.xlu0 %v202_v33  ;;  %v5252_v11 = vld [vmem:[%s8835_s3 + $0x128] ss:$36 sps:$4 sm:$0xff]   ;;  %v5258_v15 = vld [vmem:[%s8835_s3 + $0xe0] ss:$36 sps:$4 sm:$0xff]   ;;  %v5259_v16 = vld [vmem:[%s8835_s3 + $0x94] ss:$36 sps:$4 sm:$0xff]  }
  0x1e   :  { %207 = vadd.xlane.f32.xlu1 %v206_v36  ;;  %v5256_v13 = vld [vmem:[%s8835_s3 + $0xe4] ss:$36 sps:$4 sm:$0xff]   ;;  %v5262_v17 = vld [vmem:[%s8835_s3 + $0x9c] ss:$36 sps:$4 sm:$0xff]   ;;  %v5261_v18 = vld [vmem:[%s8835_s3 + $0x90] ss:$36 sps:$4 sm:$0xff]  }
  0x1f   :  { %1474 = vmatpush1.bf16.msra.mxu0 %v5237_v2  ;;  %1585 = vmatpush1.bf16.msra.mxu1 %v5240_v3  ;;  %v5264_v19 = vld [vmem:[%s8835_s3 + $0x98] ss:$36 sps:$4 sm:$0xff]   ;;  %v5265_v20 = vld [vmem:[%s8835_s3 + $0x4c] ss:$36 sps:$4 sm:$0xff]   ;;  %v6095_v23 = vld [vmem:[%s8835_s3 + $0x440] sm:$0x77] }
  0x20   :  { %1475 = vmatprep.subr.bf16.mxu0 %v5241_v4  ;;  %1586 = vmatprep.subr.bf16.mxu1 %v5244_v5  ;;  %v5268_v21 = vld [vmem:[%s8835_s3 + $0x54] ss:$36 sps:$4 sm:$0xff]   ;;  %v5267_v24 = vld [vmem:[%s8835_s3 + $0x48] ss:$36 sps:$4 sm:$0xff]   ;;  %v4801_v31 = vcombine.high %v6095_v23, %v6095_v23  ;;  %v5273_v32 = vld [vmem:[%s8835_s3] ss:$36 sps:$4 sm:$0xff]  }
  0x21   :  { %211 = vadd.xlane.f32.xlu0 %v210_v41  ;;  %v698_v22 = vld [vmem:[%s8835_s3 + $0x438] sm:$0x77]  ;;  %v5270_v25 = vld [vmem:[%s8835_s3 + $0x50] ss:$36 sps:$4 sm:$0xff]   ;;  %v5271_v26 = vld [vmem:[%s8835_s3 + $0x4] ss:$36 sps:$4 sm:$0xff]  }
  0x22   :  { %215 = vadd.xlane.f32.xlu1 %v214_v44  ;;  %v5274_v27 = vld [vmem:[%s8835_s3 + $0xc] ss:$36 sps:$4 sm:$0xff]   ;;  %v4799_v30 = vcombine.high %v698_v22, %v698_v22  ;;  %v6118_v34 = vsel %vm1441_vm2, %v1442_v29, 0  ;;  %v4798_v35 = vcombine.low %v698_v22, %v698_v22  ;;  %v5751_v43 = vld [vmem:[%s8832_s0] sm:$0xff]  ;;  %v5756_v61 = vld [vmem:[%s8832_s0 + $0x18] sm:$0xff] }
  0x23   :  { %1476 = vmatpush1.bf16.msra.mxu0 %v5243_v6  ;;  %1587 = vmatpush1.bf16.msra.mxu1 %v5246_v7  ;;  %v5276_v33 = vld [vmem:[%s8835_s3 + $0x8] ss:$36 sps:$4 sm:$0xff]   ;;  %v1454_v37 = vand.u32 %v4801_v31, %v6118_v34  ;;  %v5753_v47 = vld [vmem:[%s8832_s0 + $0x20] sm:$0xff]  ;;  %v5757_v0 = vld [vmem:[%s8832_s0 + $0x30] sm:$0xff] }
  0x24   :  { %1477 = vmatprep.subr.bf16.mxu0 %v5247_v8  ;;  %1588 = vmatprep.subr.bf16.mxu1 %v5250_v9  ;;  %v1448_v36 = vand.u32 %v4799_v30, %v6118_v34  ;;  %v1445_v38 = vand.u32 %v4798_v35, %v6118_v34  ;;  %v5752_v45 = vld [vmem:[%s8832_s0 + $0x8] sm:$0xff]  ;;  %v5758_v2 = vld [vmem:[%s8832_s0 + $0x38] sm:$0xff] }
  0x25   :  { %219 = vadd.xlane.f32.xlu0 %v218_v49  ;;  %v5754_v49 = vld [vmem:[%s8832_s0 + $0x28] sm:$0xff]  ;;  %v5762_v22 = vld [vmem:[%s8832_s0 + $0x58] sm:$0xff] }
  0x26   :  { %223 = vadd.xlane.f32.xlu1 %v222_v52 }
  0x27   :  { %1478 = vmatpush1.bf16.msra.mxu0 %v5249_v10  ;;  %1589 = vmatpush1.bf16.msra.mxu1 %v5252_v11 }
  0x28   :  { %1479 = vmatprep.subr.bf16.mxu0 %v5253_v12  ;;  %1590 = vmatprep.subr.bf16.mxu1 %v5256_v13 }
  0x29   :  { %227 = vadd.xlane.f32.xlu0 %v226_v56 }
  0x2a   :  { %231 = vadd.xlane.f32.xlu1 %v230_v57 }
  0x2b   :  { %1480 = vmatpush1.bf16.msra.mxu0 %v5255_v14  ;;  %1591 = vmatpush1.bf16.msra.mxu1 %v5258_v15  ;;  %v5759_v15 = vld [vmem:[%s8832_s0 + $0x40] sm:$0xff] }
  0x2c   :  { %1481 = vmatprep.subr.bf16.mxu0 %v5259_v16  ;;  %1592 = vmatprep.subr.bf16.mxu1 %v5262_v17  ;;  %v5760_v17 = vld [vmem:[%s8832_s0 + $0x48] sm:$0xff] }
  0x2d   :  { %235 = vadd.xlane.f32.xlu0 %v234_v59  ;;  %v5755_v59 = vld [vmem:[%s8832_s0 + $0x10] sm:$0xff] }
  0x2f   :  { %1482 = vmatpush1.bf16.msra.mxu0 %v5261_v18  ;;  %1593 = vmatpush1.bf16.msra.mxu1 %v5264_v19 }
  0x30   :  { %1483 = vmatprep.subr.bf16.mxu0 %v5265_v20  ;;  %1594 = vmatprep.subr.bf16.mxu1 %v5268_v21  ;;  %v5761_v20 = vld [vmem:[%s8832_s0 + $0x50] sm:$0xff] }
  0x33   :  { %1484 = vmatpush1.bf16.msra.mxu0 %v5267_v24  ;;  %1595 = vmatpush1.bf16.msra.mxu1 %v5270_v25 }
  0x34   :  { %1485 = vmatprep.subr.bf16.mxu0 %v5271_v26  ;;  %1596 = vmatprep.subr.bf16.mxu1 %v5274_v27 }
  0x37   :  { %1486 = vmatpush1.bf16.msra.mxu0 %v5273_v32  ;;  %1597 = vmatpush1.bf16.msra.mxu1 %v5276_v33 }
  0x38   :  { %1487 = vmatprep.subr.bf16.mxu0 %v1448_v36  ;;  %1598 = vmatprep.subr.bf16.mxu1 %v1454_v37  ;;  %v5763_v37 = vld [vmem:[%s8832_s0 + $0x60] sm:$0xff] }
  0x3b   :  { %1488 = vmatpush2.bf16.msra.mxu0 %v1445_v38 }
  0x9a   :  { %v180_v39 = vpop.xlane.xlu0 %179 }
  0x9b   :  { %v238_v40 = vmul.f32 0.0040816325, %v180_v39  ;;  %v188_v41 = vpop.xlane.xlu1 %187  ;;  %v5764_v39 = vld [vmem:[%s8832_s0 + $0x68] sm:$0xff] }
  0x9c   :  { %v240_v42 = vmul.f32 0.0040816325, %v188_v41 }
  0x9d   :  { %v6126_v44 = vsub.f32 %v5751_v43, %v238_v40  ;;  %v6131_v46 = vsub.f32 %v5752_v45, %v238_v40  ;;  %v5766_v45 = vld [vmem:[%s8832_s0 + $0x78] sm:$0xff] }
  0x9e   :  { %v6136_v48 = vsub.f32 %v5753_v47, %v240_v42  ;;  %v6141_v50 = vsub.f32 %v5754_v49, %v240_v42  ;;  %v184_v51 = vpop.xlane.xlu0 %183  ;;  %v5765_v42 = vld [vmem:[%s8832_s0 + $0x70] sm:$0xff] }
  0x9f   :  { %v239_v52 = vmul.f32 0.0040816325, %v184_v51  ;;  %v192_v53 = vpop.xlane.xlu1 %191  ;;  %v283_v54 = vmul.f32 %v6126_v44, %v6126_v44  ;;  %v284_v55 = vmul.f32 %v6131_v46, %v6131_v46 }
  0xa0   :  { %v241_v56 = vmul.f32 0.0040816325, %v192_v53  ;;  %v287_v57 = vmul.f32 %v6136_v48, %v6136_v48  ;;  %v288_v58 = vmul.f32 %v6141_v50, %v6141_v50 }
  0xa1   :  { %v6154_v60 = vsub.f32 %v5755_v59, %v239_v52  ;;  %v6159_v62 = vsub.f32 %v5756_v61, %v239_v52  ;;  %v313_v63 = vsel %vm116_vm0, %v284_v55, 0.0 }
  0xa2   :  { %v6165_v1 = vsub.f32 %v5757_v0, %v241_v56  ;;  %v6170_v3 = vsub.f32 %v5758_v2, %v241_v56  ;;  %v196_v4 = vpop.xlane.xlu0 %195  ;;  %v314_v5 = vadd.f32 %v313_v63, %v283_v54  ;;  %v321_v6 = vsel %vm116_vm0, %v288_v58, 0.0  ;;  %v5767_v0 = vld [vmem:[%s8832_s0 + $0x80] sm:$0xff] }
  0xa3   :  { %v242_v7 = vmul.f32 0.0040816325, %v196_v4  ;;  %v200_v8 = vpop.xlane.xlu1 %199  ;;  %v285_v9 = vmul.f32 %v6154_v60, %v6154_v60  ;;  %v286_v10 = vmul.f32 %v6159_v62, %v6159_v62  ;;  %v322_v12 = vadd.f32 %v321_v6, %v287_v57  ;;  %v5768_v4 = vld [vmem:[%s8832_s0 + $0x88] sm:$0xff] }
  0xa4   :  { %315 = vadd.xlane.f32.xlu1 %v314_v5  ;;  %v243_v11 = vmul.f32 0.0040816325, %v200_v8  ;;  %v289_v13 = vmul.f32 %v6165_v1, %v6165_v1  ;;  %v290_v14 = vmul.f32 %v6170_v3, %v6170_v3  ;;  %v4800_v63 = vcombine.low %v6095_v23, %v6095_v23  ;;  %v5770_v23 = vld [vmem:[%s8832_s0 + $0x98] sm:$0xff] }
  0xa5   :  { %v6184_v16 = vsub.f32 %v5759_v15, %v242_v7  ;;  %v6189_v18 = vsub.f32 %v5760_v17, %v242_v7  ;;  %v317_v19 = vsel %vm116_vm0, %v286_v10, 0.0  ;;  %v5769_v7 = vld [vmem:[%s8832_s0 + $0x90] sm:$0xff] }
  0xa6   :  { %v6195_v21 = vsub.f32 %v5761_v20, %v243_v11  ;;  %v6200_v24 = vsub.f32 %v5762_v22, %v243_v11  ;;  %v204_v25 = vpop.xlane.xlu0 %203  ;;  %v318_v26 = vadd.f32 %v317_v19, %v285_v9  ;;  %v325_v27 = vsel %vm116_vm0, %v290_v14, 0.0  ;;  %v5281_v20 = vld [vmem:[%s8835_s3 + $0x3f4] ss:$36 sps:$4 sm:$0xff]   ;;  %v5284_v22 = vld [vmem:[%s8835_s3 + $0x3fc] ss:$36 sps:$4 sm:$0xff]  }
  0xa7   :  { %v244_v28 = vmul.f32 0.0040816325, %v204_v25  ;;  %v208_v29 = vpop.xlane.xlu1 %207  ;;  %v291_v30 = vmul.f32 %v6184_v16, %v6184_v16  ;;  %v292_v31 = vmul.f32 %v6189_v18, %v6189_v18  ;;  %v326_v33 = vadd.f32 %v325_v27, %v289_v13  ;;  %1489 = vmatprep.subr.bf16.mxu0 %v5281_v20  ;;  %v5292_v20 = vld [vmem:[%s8835_s3 + $0x3b0] ss:$36 sps:$4 sm:$0xff]  }
  0xa8   :  { %323 = vadd.xlane.f32.xlu1 %v322_v12  ;;  %319 = vadd.xlane.f32.xlu0 %v318_v26  ;;  %v245_v32 = vmul.f32 0.0040816325, %v208_v29  ;;  %v293_v35 = vmul.f32 %v6195_v21, %v6195_v21  ;;  %v294_v36 = vmul.f32 %v6200_v24, %v6200_v24  ;;  %v5283_v29 = vld [vmem:[%s8835_s3 + $0x3f0] ss:$36 sps:$4 sm:$0xff]  }
  0xa9   :  { %v6214_v38 = vsub.f32 %v5763_v37, %v244_v28  ;;  %v6219_v40 = vsub.f32 %v5764_v39, %v244_v28  ;;  %v329_v41 = vsel %vm116_vm0, %v292_v31, 0.0  ;;  %v1451_v28 = vand.u32 %v4800_v63, %v6118_v34  ;;  %v5774_v39 = vld [vmem:[%s8832_s0 + $0xb8] sm:$0xff]  ;;  %1490 = vmatpush2.bf16.msra.mxu0 %v5283_v29 }
  0xaa   :  { %v6225_v43 = vsub.f32 %v5765_v42, %v245_v32  ;;  %v6230_v47 = vsub.f32 %v5766_v45, %v245_v32  ;;  %v212_v49 = vpop.xlane.xlu0 %211  ;;  %v330_v51 = vadd.f32 %v329_v41, %v291_v30  ;;  %v333_v52 = vsel %vm116_vm0, %v294_v36, 0.0  ;;  %v5771_v30 = vld [vmem:[%s8832_s0 + $0xa0] sm:$0xff]  ;;  %v5772_v32 = vld [vmem:[%s8832_s0 + $0xa8] sm:$0xff]  ;;  %v5773_v36 = vld [vmem:[%s8832_s0 + $0xb0] sm:$0xff] }
  0xab   :  { %v246_v53 = vmul.f32 0.0040816325, %v212_v49  ;;  %v216_v54 = vpop.xlane.xlu1 %215  ;;  %v334_v55 = vadd.f32 %v333_v52, %v293_v35  ;;  %v295_v56 = vmul.f32 %v6214_v38, %v6214_v38  ;;  %v296_v57 = vmul.f32 %v6219_v40, %v6219_v40  ;;  %1599 = vmatpush2.bf16.msra.mxu1 %v1451_v28  ;;  %v5290_v63 = vld [vmem:[%s8835_s3 + $0x3b4] ss:$36 sps:$4 sm:$0xff]  }
  0xac   :  { %327 = vadd.xlane.f32.xlu0 %v326_v33  ;;  %331 = vadd.xlane.f32.xlu1 %v330_v51  ;;  %v247_v58 = vmul.f32 0.0040816325, %v216_v54  ;;  %v297_v59 = vmul.f32 %v6225_v43, %v6225_v43  ;;  %v298_v61 = vmul.f32 %v6230_v47, %v6230_v47  ;;  %v5286_v51 = vld [vmem:[%s8835_s3 + $0x3f8] ss:$36 sps:$4 sm:$0xff]  }
  0xad   :  { %v6246_v2 = vsub.f32 %v5767_v0, %v246_v53  ;;  %v6251_v5 = vsub.f32 %v5768_v4, %v246_v53  ;;  %v337_v6 = vsel %vm116_vm0, %v296_v57, 0.0  ;;  %1600 = vmatprep.subr.bf16.mxu1 %v5284_v22  ;;  %v5775_v0 = vld [vmem:[%s8832_s0 + $0xc0] sm:$0xff] }
  0xae   :  { %v6257_v8 = vsub.f32 %v5769_v7, %v247_v58  ;;  %v6262_v9 = vsub.f32 %v5770_v23, %v247_v58  ;;  %v220_v10 = vpop.xlane.xlu0 %219  ;;  %v338_v11 = vadd.f32 %v337_v6, %v295_v56  ;;  %v341_v12 = vsel %vm116_vm0, %v298_v61, 0.0  ;;  %v5287_v61 = vld [vmem:[%s8835_s3 + $0x3ac] ss:$36 sps:$4 sm:$0xff]  }
  0xaf   :  { %v248_v13 = vmul.f32 0.0040816325, %v220_v10  ;;  %v224_v14 = vpop.xlane.xlu1 %223  ;;  %v342_v15 = vadd.f32 %v341_v12, %v297_v59  ;;  %v299_v17 = vmul.f32 %v6246_v2, %v6246_v2  ;;  %v300_v19 = vmul.f32 %v6251_v5, %v6251_v5  ;;  %v5776_v6 = vld [vmem:[%s8832_s0 + $0xc8] sm:$0xff]  ;;  %1601 = vmatpush2.bf16.msra.mxu1 %v5286_v51  ;;  %1491 = vmatprep.subr.bf16.mxu0 %v5287_v61  ;;  %v5301_v61 = vld [vmem:[%s8835_s3 + $0x318] ss:$36 sps:$4 sm:$0xff]  }
  0xb0   :  { %335 = vadd.xlane.f32.xlu0 %v334_v55  ;;  %339 = vadd.xlane.f32.xlu1 %v338_v11  ;;  %v249_v25 = vmul.f32 0.0040816325, %v224_v14  ;;  %v301_v26 = vmul.f32 %v6257_v8, %v6257_v8  ;;  %v302_v27 = vmul.f32 %v6262_v9, %v6262_v9  ;;  %v5289_v10 = vld [vmem:[%s8835_s3 + $0x3a8] ss:$36 sps:$4 sm:$0xff]   ;;  %v5777_v11 = vld [vmem:[%s8832_s0 + $0xd0] sm:$0xff] }
  0xb1   :  { %v6286_v31 = vsub.f32 %v5771_v30, %v248_v13  ;;  %v6291_v33 = vsub.f32 %v5772_v32, %v248_v13  ;;  %v345_v35 = vsel %vm116_vm0, %v300_v19, 0.0  ;;  %v5778_v13 = vld [vmem:[%s8832_s0 + $0xd8] sm:$0xff]  ;;  %1492 = vmatpush2.bf16.msra.mxu0 %v5289_v10  ;;  %1602 = vmatprep.subr.bf16.mxu1 %v5290_v63  ;;  %v5293_v30 = vld [vmem:[%s8835_s3 + $0x364] ss:$36 sps:$4 sm:$0xff]   ;;  %v5296_v32 = vld [vmem:[%s8835_s3 + $0x36c] ss:$36 sps:$4 sm:$0xff]  }
  0xb2   :  { %v6297_v37 = vsub.f32 %v5773_v36, %v249_v25  ;;  %v6302_v41 = vsub.f32 %v5774_v39, %v249_v25  ;;  %v228_v42 = vpop.xlane.xlu0 %227  ;;  %v346_v45 = vadd.f32 %v345_v35, %v299_v17  ;;  %v349_v49 = vsel %vm116_vm0, %v302_v27, 0.0  ;;  %v5779_v35 = vld [vmem:[%s8832_s0 + $0xe0] sm:$0xff]  ;;  %v5780_v39 = vld [vmem:[%s8832_s0 + $0xe8] sm:$0xff]  ;;  %1493 = vmatprep.subr.bf16.mxu0 %v5293_v30  ;;  %v5307_v10 = vld [vmem:[%s8835_s3 + $0x2d0] ss:$36 sps:$4 sm:$0xff]  }
  0xb3   :  { %v250_v52 = vmul.f32 0.0040816325, %v228_v42  ;;  %v232_v53 = vpop.xlane.xlu1 %231  ;;  %v303_v54 = vmul.f32 %v6286_v31, %v6286_v31  ;;  %v304_v55 = vmul.f32 %v6291_v33, %v6291_v33  ;;  %v350_v57 = vadd.f32 %v349_v49, %v301_v26  ;;  %v5295_v49 = vld [vmem:[%s8835_s3 + $0x360] ss:$36 sps:$4 sm:$0xff]   ;;  %1603 = vmatpush2.bf16.msra.mxu1 %v5292_v20 }
  0xb4   :  { %343 = vadd.xlane.f32.xlu0 %v342_v15  ;;  %347 = vadd.xlane.f32.xlu1 %v346_v45  ;;  %v251_v56 = vmul.f32 0.0040816325, %v232_v53  ;;  %v305_v58 = vmul.f32 %v6297_v37, %v6297_v37  ;;  %v306_v59 = vmul.f32 %v6302_v41, %v6302_v41  ;;  %v5298_v53 = vld [vmem:[%s8835_s3 + $0x368] ss:$36 sps:$4 sm:$0xff]  }
  0xb5   :  { %v6325_v4 = vsub.f32 %v5775_v0, %v250_v52  ;;  %v6330_v7 = vsub.f32 %v5776_v6, %v250_v52  ;;  %v353_v23 = vsel %vm116_vm0, %v304_v55, 0.0  ;;  %1494 = vmatpush2.bf16.msra.mxu0 %v5295_v49  ;;  %1604 = vmatprep.subr.bf16.mxu1 %v5296_v32  ;;  %v5304_v0 = vld [vmem:[%s8835_s3 + $0x320] ss:$36 sps:$4 sm:$0xff]   ;;  %v5305_v6 = vld [vmem:[%s8835_s3 + $0x2d4] ss:$36 sps:$4 sm:$0xff]  }
  0xb6   :  { %v6339_v12 = vsub.f32 %v5777_v11, %v251_v56  ;;  %v6344_v14 = vsub.f32 %v5778_v13, %v251_v56  ;;  %v236_v15 = vpop.xlane.xlu0 %235  ;;  %v354_v17 = vadd.f32 %v353_v23, %v303_v54  ;;  %v357_v19 = vsel %vm116_vm0, %v306_v59, 0.0  ;;  %v5308_v23 = vld [vmem:[%s8835_s3 + $0x2dc] ss:$36 sps:$4 sm:$0xff]   ;;  %v5311_v13 = vld [vmem:[%s8835_s3 + $0x28c] ss:$36 sps:$4 sm:$0xff]  }
  0xb7   :  { %v252_v22 = vmul.f32 0.0040816325, %v236_v15  ;;  %v307_v25 = vmul.f32 %v6325_v4, %v6325_v4  ;;  %v308_v26 = vmul.f32 %v6330_v7, %v6330_v7  ;;  %v358_v27 = vadd.f32 %v357_v19, %v305_v58  ;;  %v5302_v58 = vld [vmem:[%s8835_s3 + $0x324] ss:$36 sps:$4 sm:$0xff]   ;;  %1605 = vmatpush2.bf16.msra.mxu1 %v5298_v53  ;;  %v5310_v11 = vld [vmem:[%s8835_s3 + $0x2d8] ss:$36 sps:$4 sm:$0xff]  }
  0xb8   :  { %351 = vadd.xlane.f32.xlu0 %v350_v57  ;;  %355 = vadd.xlane.f32.xlu1 %v354_v17  ;;  %v309_v28 = vmul.f32 %v6339_v12, %v6339_v12  ;;  %v310_v29 = vmul.f32 %v6344_v14, %v6344_v14  ;;  %v5299_v57 = vld [vmem:[%s8835_s3 + $0x31c] ss:$36 sps:$4 sm:$0xff]   ;;  %v5314_v15 = vld [vmem:[%s8835_s3 + $0x294] ss:$36 sps:$4 sm:$0xff]   ;;  %v5313_v17 = vld [vmem:[%s8835_s3 + $0x288] ss:$36 sps:$4 sm:$0xff]  }
  0xb9   :  { %v6367_v36 = vsub.f32 %v5779_v35, %v252_v22  ;;  %v6372_v42 = vsub.f32 %v5780_v39, %v252_v22  ;;  %v361_v45 = vsel %vm116_vm0, %v308_v26, 0.0  ;;  %1495 = vmatprep.subr.bf16.mxu0 %v5299_v57  ;;  %1606 = vmatprep.subr.bf16.mxu1 %v5302_v58  ;;  %v5316_v19 = vld [vmem:[%s8835_s3 + $0x290] ss:$36 sps:$4 sm:$0xff]   ;;  %v5317_v20 = vld [vmem:[%s8835_s3 + $0x244] ss:$36 sps:$4 sm:$0xff]  }
  0xba   :  { %v362_v51 = vadd.f32 %v361_v45, %v307_v25  ;;  %v365_v52 = vsel %vm116_vm0, %v310_v29, 0.0  ;;  %1496 = vmatpush2.bf16.msra.mxu0 %v5301_v61  ;;  %v5320_v22 = vld [vmem:[%s8835_s3 + $0x24c] ss:$36 sps:$4 sm:$0xff]   ;;  %v5319_v25 = vld [vmem:[%s8835_s3 + $0x240] ss:$36 sps:$4 sm:$0xff]  }
  0xbb   :  { %v311_v54 = vmul.f32 %v6367_v36, %v6367_v36  ;;  %v312_v55 = vmul.f32 %v6372_v42, %v6372_v42  ;;  %v366_v56 = vadd.f32 %v365_v52, %v309_v28  ;;  %1607 = vmatpush2.bf16.msra.mxu1 %v5304_v0  ;;  %1497 = vmatprep.subr.bf16.mxu0 %v5305_v6  ;;  %v5322_v26 = vld [vmem:[%s8835_s3 + $0x248] ss:$36 sps:$4 sm:$0xff]   ;;  %v5328_v28 = vld [vmem:[%s8835_s3 + $0x214] ss:$36 sps:$4 sm:$0xff]  }
  0xbc   :  { %359 = vadd.xlane.f32.xlu0 %v358_v27  ;;  %363 = vadd.xlane.f32.xlu1 %v362_v51  ;;  %v5325_v27 = vld [vmem:[%s8835_s3 + $0x20c] ss:$36 sps:$4 sm:$0xff]   ;;  %v450_v51 = vlaneseq }
  0xbd   :  { %v369_v59 = vsel %vm116_vm0, %v312_v55, 0.0  ;;  %1608 = vmatprep.subr.bf16.mxu1 %v5308_v23 }
  0xbe   :  { %v370_v63 = vadd.f32 %v369_v59, %v311_v54  ;;  %1498 = vmatpush2.bf16.msra.mxu0 %v5307_v10  ;;  %v6441_v58 = vshrl.u32 %v450_v51, 7 }
  0xbf   :  { %1609 = vmatpush2.bf16.msra.mxu1 %v5310_v11  ;;  %1499 = vmatprep.subr.bf16.mxu0 %v5311_v13  ;;  %v448_v13 = vld [vmem:[%s8833_s1] sm:$0x3] }
  0xc0   :  { %367 = vadd.xlane.f32.xlu0 %v366_v56  ;;  %371 = vadd.xlane.f32.xlu1 %v370_v63  ;;  %v6444_v10 = vsub.s32 1, %v6441_v58 }
  0xc1   :  { %1610 = vmatprep.subr.bf16.mxu1 %v5314_v15  ;;  %v6450_v15 = vsub.s32 0, %v6441_v58 }
  0xc2   :  { %1500 = vmatpush2.bf16.msra.mxu0 %v5313_v17  ;;  %8866 = vst [vmem:[#allocation5_spill] sm:$0xff] %v6444_v10 }
  0xc3   :  { %1611 = vmatpush2.bf16.msra.mxu1 %v5316_v19  ;;  %1501 = vmatprep.subr.bf16.mxu0 %v5317_v20  ;;  %8867 = vst [vmem:[#allocation6_spill] sm:$0xff] %v6450_v15 }
  0xc4   :  { %1612 = vmatprep.subr.bf16.mxu1 %v5320_v22 }
  0xc6   :  { %1502 = vmatpush2.bf16.msra.mxu0 %v5319_v25 }
  0xc7   :  { %1613 = vmatpush2.bf16.msra.mxu1 %v5322_v26  ;;  %1693 = vmatprep.subr.bf16.mxu0 %v5325_v27  ;;  %v6453_v26 = vrot.slane %v448_v13, %v6444_v10 }
  0xc8   :  { %1804 = vmatprep.subr.bf16.mxu1 %v5328_v28 }
 0x12d   :  { %v316_v29 = vpop.xlane.xlu1 %315 }
 0x12e   :  { %v373_v30 = vmul.f32 0.0040816325, %v316_v29 }
 0x130   :  { %v388_v32 = vadd.f32 1e-05, %v373_v30  ;;  %v490_v30 = vld [vmem:[%s8834_s2] sm:$0x3] }
 0x131   :  { %v324_v35 = vpop.xlane.xlu1 %323  ;;  %v320_v39 = vpop.xlane.xlu0 %319  ;;  %v6464_v51 = vrot.slane %v490_v30, %v6444_v10 }
 0x132   :  { %5721 = vrsqrt.f32 %v388_v32  ;;  %v375_v45 = vmul.f32 0.0040816325, %v324_v35  ;;  %v374_v49 = vmul.f32 0.0040816325, %v320_v39  ;;  %v6461_v32 = vrot.slane %v448_v13, %v6450_v15 }
 0x134   :  { %v390_v52 = vadd.f32 1e-05, %v375_v45  ;;  %v389_v53 = vadd.f32 1e-05, %v374_v49 }
 0x135   :  { %v332_v54 = vpop.xlane.xlu1 %331  ;;  %v328_v55 = vpop.xlane.xlu0 %327 }
 0x136   :  { %5723 = vrsqrt.f32 %v390_v52  ;;  %v377_v56 = vmul.f32 0.0040816325, %v332_v54  ;;  %v376_v57 = vmul.f32 0.0040816325, %v328_v55  ;;  %v6470_v54 = vrot.slane %v490_v30, %v6450_v15  ;;  %v5323_v30 = vld [vmem:[%s8835_s3 + $0x208] ss:$36 sps:$4 sm:$0xff]  }
 0x137   :  { %5725 = vrsqrt.f32 %v389_v53 }
 0x138   :  { %v392_v59 = vadd.f32 1e-05, %v377_v56  ;;  %v391_v61 = vadd.f32 1e-05, %v376_v57 }
 0x139   :  { %v340_v63 = vpop.xlane.xlu1 %339  ;;  %v336_v0 = vpop.xlane.xlu0 %335 }
 0x13a   :  { %5727 = vrsqrt.f32 %v392_v59  ;;  %v379_v6 = vmul.f32 0.0040816325, %v340_v63  ;;  %v378_v23 = vmul.f32 0.0040816325, %v336_v0 }
 0x13b   :  { %5729 = vrsqrt.f32 %v391_v61 }
 0x13c   :  { %v393_v11 = vadd.f32 1e-05, %v378_v23  ;;  %v394_v19 = vadd.f32 1e-05, %v379_v6 }
 0x13d   :  { %v344_v17 = vpop.xlane.xlu0 %343  ;;  %v348_v25 = vpop.xlane.xlu1 %347 }
 0x13e   :  { %v380_v20 = vmul.f32 0.0040816325, %v344_v17  ;;  %5731 = vrsqrt.f32 %v393_v11  ;;  %v381_v39 = vmul.f32 0.0040816325, %v348_v25 }
 0x13f   :  { %v5722_v22 = vpop.eup %5721  ;;  %5733 = vrsqrt.f32 %v394_v19 }
 0x140   :  { %v418_v27 = vmul.f32 %v5722_v22, %v6126_v44  ;;  %v419_v28 = vmul.f32 %v5722_v22, %v6131_v46  ;;  %v395_v29 = vadd.f32 1e-05, %v380_v20  ;;  %v396_v61 = vadd.f32 1e-05, %v381_v39 }
 0x141   :  { %v352_v35 = vpop.xlane.xlu0 %351  ;;  %v356_v0 = vpop.xlane.xlu1 %355 }
 0x142   :  { %v382_v45 = vmul.f32 0.0040816325, %v352_v35  ;;  %5735 = vrsqrt.f32 %v395_v29  ;;  %v461_v52 = vmul.f32 %v6453_v26, %v419_v28  ;;  %v460_v53 = vmul.f32 %v6461_v32, %v418_v27  ;;  %v5326_v35 = vld [vmem:[%s8835_s3 + $0x210] ss:$36 sps:$4 sm:$0xff]  }
 0x143   :  { %v5724_v49 = vpop.eup %5723  ;;  %v383_v27 = vmul.f32 0.0040816325, %v356_v0 }
 0x144   :  { %v5726_v44 = vpop.eup %5725  ;;  %v423_v46 = vmul.f32 %v5724_v49, %v6141_v50  ;;  %v397_v57 = vadd.f32 1e-05, %v382_v45  ;;  %v503_v13 = vadd.f32 %v6464_v51, %v461_v52  ;;  %v502_v17 = vadd.f32 %v6470_v54, %v460_v53 }
 0x145   :  { %v420_v55 = vmul.f32 %v5726_v44, %v6154_v60  ;;  %v421_v56 = vmul.f32 %v5726_v44, %v6159_v62  ;;  %v360_v59 = vpop.xlane.xlu0 %359  ;;  %v422_v22 = vmul.f32 %v5724_v49, %v6136_v48 }
 0x146   :  { %v384_v11 = vmul.f32 0.0040816325, %v360_v59  ;;  %v465_v19 = vmul.f32 %v6453_v26, %v423_v46  ;;  %5737 = vrsqrt.f32 %v397_v57  ;;  %v5329_v59 = vld [vmem:[%s8835_s3 + $0x1c0] ss:$36 sps:$4 sm:$0xff]  }
 0x147   :  { %v5728_v63 = vpop.eup %5727  ;;  %v463_v6 = vmul.f32 %v6453_v26, %v421_v56  ;;  %v462_v50 = vmul.f32 %v6461_v32, %v420_v55  ;;  %5739 = vrsqrt.f32 %v396_v61  ;;  %v464_v53 = vmul.f32 %v6461_v32, %v422_v22  ;;  %v5332_v61 = vld [vmem:[%s8835_s3 + $0x1c8] ss:$36 sps:$4 sm:$0xff]  }
 0x148   :  { %v5730_v23 = vpop.eup %5729  ;;  %v427_v28 = vmul.f32 %v5728_v63, %v6189_v18  ;;  %v5334_v18 = vld [vmem:[%s8835_s3 + $0x1cc] ss:$36 sps:$4 sm:$0xff]   ;;  %v399_v49 = vadd.f32 1e-05, %v384_v11  ;;  %v507_v44 = vadd.f32 %v6464_v51, %v465_v19  ;;  %v398_v56 = vadd.f32 1e-05, %v383_v27  ;;  %v364_v11 = vpop.xlane.xlu1 %363 }
 0x149   :  { %v425_v60 = vmul.f32 %v5730_v23, %v6170_v3  ;;  %v505_v62 = vadd.f32 %v6464_v51, %v463_v6  ;;  %v504_v20 = vadd.f32 %v6470_v54, %v462_v50  ;;  %v424_v25 = vmul.f32 %v5730_v23, %v6165_v1  ;;  %v5331_v1 = vld [vmem:[%s8835_s3 + $0x1c4] ss:$36 sps:$4 sm:$0xff]   ;;  %v368_v52 = vpop.xlane.xlu0 %367 }
 0x14a   :  { %v469_v0 = vmul.f32 %v6453_v26, %v427_v28  ;;  %v5340_v19 = vld [vmem:[%s8835_s3 + $0x184] ss:$36 sps:$4 sm:$0xff]   ;;  %5741 = vrsqrt.f32 %v399_v49  ;;  %v385_v27 = vmul.f32 0.0040816325, %v364_v11 }
 0x14b   :  { %v6485_v29 = vpack.c.bf16 %v505_v62, %v503_v13  ;;  %v6490_v3 = vpack.c.bf16 %v504_v20, %v502_v17  ;;  %v467_v48 = vmul.f32 %v6453_v26, %v425_v60  ;;  %v5732_v39 = vpop.eup %5731  ;;  %v5337_v13 = vld [vmem:[%s8835_s3 + $0x17c] ss:$36 sps:$4 sm:$0xff]   ;;  %v386_v62 = vmul.f32 0.0040816325, %v368_v52  ;;  %v5341_v52 = vld [vmem:[%s8835_s3 + $0x130] ss:$36 sps:$4 sm:$0xff]  }
 0x14c   :  { %v429_v45 = vmul.f32 %v5732_v39, %v6200_v24  ;;  %v466_v24 = vmul.f32 %v6461_v32, %v424_v25  ;;  %v6513_v55 = vpop.eup %5733  ;;  %v428_v23 = vmul.f32 %v5732_v39, %v6195_v21  ;;  %v426_v21 = vmul.f32 %v5728_v63, %v6184_v16  ;;  %v5338_v16 = vld [vmem:[%s8835_s3 + $0x180] ss:$36 sps:$4 sm:$0xff]  }
 0x14d   :  { %4807 = vmatprep.mubr.msk.bf16.mxu0 %vm116_vm0, %v6485_v29  ;;  %4815 = vmatprep.mubr.msk.bf16.mxu1 %vm116_vm0, %v6485_v29  ;;  %v509_v46 = vadd.f32 %v6464_v51, %v467_v48  ;;  %v506_v20 = vadd.f32 %v6470_v54, %v464_v53  ;;  %v431_v25 = vmul.f32 %v6513_v55, %v6219_v40  ;;  %5743 = vrsqrt.f32 %v398_v56  ;;  %v5343_v48 = vld [vmem:[%s8835_s3 + $0x134] ss:$36 sps:$4 sm:$0xff]   ;;  %v5346_v39 = vld [vmem:[%s8835_s3 + $0x13c] ss:$36 sps:$4 sm:$0xff]  }
 0x14e   :  { %1504 = vmatmul.mubr.bf16.vlgmr.msra.gmra.mxu0 %v6490_v3  ;;  %1615 = vmatmul.mubr.bf16.vlgmr.msra.gmra.mxu1 %v6490_v3  ;;  %v471_v6 = vmul.f32 %v6453_v26, %v429_v45  ;;  %v508_v17 = vadd.f32 %v6470_v54, %v466_v24  ;;  %v511_v28 = vadd.f32 %v6464_v51, %v469_v0  ;;  %v401_v63 = vadd.f32 1e-05, %v386_v62  ;;  %v372_v45 = vpop.xlane.xlu1 %371  ;;  %v5344_v56 = vld [vmem:[%s8835_s3 + $0x138] ss:$36 sps:$4 sm:$0xff]   ;;  %v5355_v62 = vld [vmem:[%s8835_s3 + $0xa4] ss:$36 sps:$4 sm:$0xff]  }
 0x14f   :  { %1694 = vmatpush1.bf16.msra.mxu0 %v5323_v30  ;;  %1805 = vmatpush1.bf16.msra.mxu1 %v5326_v35  ;;  %v6515_v57 = vpack.c.bf16 %v509_v46, %v507_v44  ;;  %v5736_v50 = vpop.eup %5735  ;;  %v470_v40 = vmul.f32 %v6461_v32, %v428_v23  ;;  %v468_v49 = vmul.f32 %v6461_v32, %v426_v21  ;;  %v400_v46 = vadd.f32 1e-05, %v385_v27  ;;  %v5358_v21 = vld [vmem:[%s8835_s3 + $0xac] ss:$36 sps:$4 sm:$0xff]   ;;  %v5353_v27 = vld [vmem:[%s8835_s3 + $0xa0] ss:$36 sps:$4 sm:$0xff]  }
 0x150   :  { %1695 = vmatprep.subr.bf16.mxu0 %v5331_v1  ;;  %1806 = vmatprep.subr.bf16.mxu1 %v5334_v18  ;;  %v433_v60 = vmul.f32 %v5736_v50, %v6230_v47  ;;  %v513_v22 = vadd.f32 %v6464_v51, %v471_v6  ;;  %v5335_v47 = vld [vmem:[%s8835_s3 + $0x178] ss:$36 sps:$4 sm:$0xff]   ;;  %v6547_v30 = vpack.c.bf16 %v508_v17, %v506_v20  ;;  %v387_v6 = vmul.f32 0.0040816325, %v372_v45 }
 0x151   :  { %4808 = vmatprep.mubr.msk.bf16.mxu0 %vm116_vm0, %v6515_v57  ;;  %4816 = vmatprep.mubr.msk.bf16.mxu1 %vm116_vm0, %v6515_v57  ;;  %v473_v53 = vmul.f32 %v6453_v26, %v431_v25  ;;  %v432_v24 = vmul.f32 %v5736_v50, %v6225_v43  ;;  %5745 = vrsqrt.f32 %v401_v63  ;;  %v5352_v43 = vld [vmem:[%s8835_s3 + $0xf4] ss:$36 sps:$4 sm:$0xff]   ;;  %v430_v23 = vmul.f32 %v6513_v55, %v6214_v38  ;;  %v5361_v63 = vld [vmem:[%s8835_s3 + $0x5c] ss:$36 sps:$4 sm:$0xff]  }
 0x152   :  { %v6553_v35 = vpack.c.bf16 %v513_v22, %v511_v28  ;;  %v475_v1 = vmul.f32 %v6453_v26, %v433_v60  ;;  %v510_v11 = vadd.f32 %v6470_v54, %v468_v49  ;;  %5747 = vrsqrt.f32 %v400_v46  ;;  %v5350_v38 = vld [vmem:[%s8835_s3 + $0xf0] ss:$36 sps:$4 sm:$0xff]  }
 0x153   :  { %1696 = vmatpush1.bf16.msra.mxu0 %v5329_v59  ;;  %1807 = vmatpush1.bf16.msra.mxu1 %v5332_v61  ;;  %v5738_v18 = vpop.eup %5737  ;;  %v5349_v59 = vld [vmem:[%s8835_s3 + $0xec] ss:$36 sps:$4 sm:$0xff]   ;;  %v512_v61 = vadd.f32 %v6470_v54, %v470_v40  ;;  %v515_v17 = vadd.f32 %v6464_v51, %v473_v53  ;;  %v474_v55 = vmul.f32 %v6461_v32, %v432_v24  ;;  %v402_v60 = vadd.f32 1e-05, %v387_v6 }
 0x154   :  { %1697 = vmatprep.subr.bf16.mxu0 %v5337_v13  ;;  %1808 = vmatprep.subr.bf16.mxu1 %v5340_v19  ;;  %v5740_v44 = vpop.eup %5739  ;;  %v437_v0 = vmul.f32 %v5738_v18, %v6262_v9  ;;  %v517_v50 = vadd.f32 %v6464_v51, %v475_v1  ;;  %v5347_v9 = vld [vmem:[%s8835_s3 + $0xe8] ss:$36 sps:$4 sm:$0xff]   ;;  %v472_v25 = vmul.f32 %v6461_v32, %v430_v23  ;;  %v701_v46 = vld [vmem:[%s8835_s3 + $0x450] sm:$0x77] }
 0x155   :  { %v435_v13 = vmul.f32 %v5740_v44, %v6251_v5  ;;  %v6594_v19 = vpack.c.bf16 %v512_v61, %v510_v11  ;;  %v5356_v40 = vld [vmem:[%s8835_s3 + $0xa8] ss:$36 sps:$4 sm:$0xff]   ;;  %5749 = vrsqrt.f32 %v402_v60  ;;  %v434_v45 = vmul.f32 %v5740_v44, %v6246_v2  ;;  %v5362_v2 = vld [vmem:[%s8835_s3 + $0x60] ss:$36 sps:$4 sm:$0xff]   ;;  %v5365_v23 = vld [vmem:[%s8835_s3 + $0x10] ss:$36 sps:$4 sm:$0xff]  }
 0x156   :  { %1514 = vmatmul.mubr.bf16.gmra.mxu0 %v6547_v30  ;;  %1625 = vmatmul.mubr.bf16.gmra.mxu1 %v6547_v30  ;;  %v6600_v5 = vpack.c.bf16 %v517_v50, %v515_v17  ;;  %v479_v20 = vmul.f32 %v6453_v26, %v437_v0  ;;  %v5364_v1 = vld [vmem:[%s8835_s3 + $0x64] ss:$36 sps:$4 sm:$0xff]   ;;  %v514_v49 = vadd.f32 %v6470_v54, %v472_v25  ;;  %v5370_v61 = vld [vmem:[%s8835_s3 + $0x1c] ss:$36 sps:$4 sm:$0xff]  }
 0x157   :  { %1698 = vmatpush1.bf16.msra.mxu0 %v5335_v47  ;;  %4809 = vmatprep.mubr.msk.bf16.mxu0 %vm116_vm0, %v6553_v35  ;;  %v5742_v22 = vpop.eup %5741  ;;  %v477_v47 = vmul.f32 %v6453_v26, %v435_v13  ;;  %v4805_v0 = vcombine.high %v701_v46, %v701_v46  ;;  %v476_v50 = vmul.f32 %v6461_v32, %v434_v45 }
 0x158   :  { %4817 = vmatprep.mubr.msk.bf16.mxu1 %vm116_vm0, %v6553_v35  ;;  %1809 = vmatpush1.bf16.msra.mxu1 %v5338_v16  ;;  %v436_v16 = vmul.f32 %v5738_v18, %v6257_v8  ;;  %v441_v8 = vmul.f32 %v5742_v22, %v6302_v41  ;;  %v521_v18 = vadd.f32 %v6464_v51, %v479_v20  ;;  %v5359_v41 = vld [vmem:[%s8835_s3 + $0x58] ss:$36 sps:$4 sm:$0xff]  }
 0x159   :  { %1699 = vmatprep.subr.bf16.mxu0 %v5343_v48  ;;  %1810 = vmatprep.subr.bf16.mxu1 %v5346_v39  ;;  %v516_v48 = vadd.f32 %v6470_v54, %v474_v55  ;;  %v700_v39 = vld [vmem:[%s8835_s3 + $0x448] sm:$0x77]  ;;  %v519_v53 = vadd.f32 %v6464_v51, %v477_v47  ;;  %v5368_v55 = vld [vmem:[%s8835_s3 + $0x18] ss:$36 sps:$4 sm:$0xff]   ;;  %v1466_v20 = vand.u32 %v4805_v0, %v6118_v34 }
 0x15a   :  { %v5744_v28 = vpop.eup %5743  ;;  %v4803_v24 = vcombine.high %v700_v39, %v700_v39  ;;  %v478_v44 = vmul.f32 %v6461_v32, %v436_v16  ;;  %v483_v6 = vmul.f32 %v6453_v26, %v441_v8  ;;  %v4802_v11 = vcombine.low %v700_v39, %v700_v39 }
 0x15b   :  { %1700 = vmatpush1.bf16.msra.mxu0 %v5341_v52  ;;  %v439_v52 = vmul.f32 %v5744_v28, %v6291_v33  ;;  %v6652_v33 = vpack.c.bf16 %v521_v18, %v519_v53 }
 0x15c   :  { %1811 = vmatpush1.bf16.msra.mxu1 %v5344_v56  ;;  %1701 = vmatprep.subr.bf16.mxu0 %v5349_v59  ;;  %v6646_v56 = vpack.c.bf16 %v516_v48, %v514_v49  ;;  %v5367_v59 = vld [vmem:[%s8835_s3 + $0x14] ss:$36 sps:$4 sm:$0xff]   ;;  %v1460_v13 = vand.u32 %v4803_v24, %v6118_v34  ;;  %v520_v60 = vadd.f32 %v6470_v54, %v478_v44  ;;  %v5378_v49 = vld [vmem:[%s8835_s3 + $0x408] ss:$36 sps:$4 sm:$0xff]  }
 0x15d   :  { %1812 = vmatprep.subr.bf16.mxu1 %v5352_v43  ;;  %v525_v25 = vadd.f32 %v6464_v51, %v483_v6  ;;  %v1457_v47 = vand.u32 %v4802_v11, %v6118_v34  ;;  %v5381_v44 = vld [vmem:[%s8835_s3 + $0x3b8] ss:$36 sps:$4 sm:$0xff]   ;;  %v5387_v11 = vld [vmem:[%s8835_s3 + $0x370] ss:$36 sps:$4 sm:$0xff]  }
 0x15e   :  { %1524 = vmatmul.mubr.bf16.gmra.mxu0 %v6594_v19  ;;  %1635 = vmatmul.mubr.bf16.gmra.mxu1 %v6594_v19  ;;  %v5746_v43 = vpop.eup %5745  ;;  %v5389_v6 = vld [vmem:[%s8835_s3 + $0x374] ss:$36 sps:$4 sm:$0xff]  }
 0x15f   :  { %1702 = vmatpush1.bf16.msra.mxu0 %v5347_v9  ;;  %4810 = vmatprep.mubr.msk.bf16.mxu0 %vm116_vm0, %v6600_v5  ;;  %v481_v9 = vmul.f32 %v6453_v26, %v439_v52  ;;  %v5748_v17 = vpop.eup %5747  ;;  %v444_v45 = vmul.f32 %v5746_v43, %v6339_v12  ;;  %v5386_v12 = vld [vmem:[%s8835_s3 + $0x3c4] ss:$36 sps:$4 sm:$0xff]  }
 0x160   :  { %4818 = vmatprep.mubr.msk.bf16.mxu1 %vm116_vm0, %v6600_v5  ;;  %1813 = vmatpush1.bf16.msra.mxu1 %v5350_v38  ;;  %v440_v38 = vmul.f32 %v5742_v22, %v6297_v37  ;;  %v438_v37 = vmul.f32 %v5744_v28, %v6286_v31  ;;  %v518_v22 = vadd.f32 %v6470_v54, %v476_v50  ;;  %v5377_v31 = vld [vmem:[%s8835_s3 + $0x404] ss:$36 sps:$4 sm:$0xff]  }
 0x161   :  { %1703 = vmatprep.subr.bf16.mxu0 %v5355_v62  ;;  %1814 = vmatprep.subr.bf16.mxu1 %v5358_v21  ;;  %v4804_v62 = vcombine.low %v701_v46, %v701_v46  ;;  %v445_v21 = vmul.f32 %v5746_v43, %v6344_v14  ;;  %v523_v16 = vadd.f32 %v6464_v51, %v481_v9  ;;  %v5383_v46 = vld [vmem:[%s8835_s3 + $0x3bc] ss:$36 sps:$4 sm:$0xff]   ;;  %v5395_v9 = vld [vmem:[%s8835_s3 + $0x32c] ss:$36 sps:$4 sm:$0xff]  }
 0x162   :  { %v6686_v14 = vpack.c.bf16 %v520_v60, %v518_v22  ;;  %v5750_v39 = vpop.eup %5749  ;;  %v480_v8 = vmul.f32 %v6461_v32, %v438_v37  ;;  %v442_v24 = vmul.f32 %v5748_v17, %v6325_v4  ;;  %v486_v0 = vmul.f32 %v6461_v32, %v444_v45  ;;  %v5392_v43 = vld [vmem:[%s8835_s3 + $0x37c] ss:$36 sps:$4 sm:$0xff]   ;;  %v5393_v60 = vld [vmem:[%s8835_s3 + $0x328] ss:$36 sps:$4 sm:$0xff]   ;;  %v5419_v45 = vld [vmem:[%s8835_s3 + $0x410] ss:$36 sps:$4 sm:$0xff]  }
 0x163   :  { %1704 = vmatpush1.bf16.msra.mxu0 %v5353_v27  ;;  %v443_v27 = vmul.f32 %v5748_v17, %v6330_v7  ;;  %v6690_v48 = vpack.c.bf16 %v525_v25, %v523_v16  ;;  %v5380_v7 = vld [vmem:[%s8835_s3 + $0x40c] ss:$36 sps:$4 sm:$0xff]   ;;  %v487_v28 = vmul.f32 %v6453_v26, %v445_v21  ;;  %v5410_v16 = vld [vmem:[%s8835_s3 + $0x2a4] ss:$36 sps:$4 sm:$0xff]  }
 0x164   :  { %1815 = vmatpush1.bf16.msra.mxu1 %v5356_v40  ;;  %1705 = vmatprep.subr.bf16.mxu0 %v5361_v63  ;;  %v1463_v40 = vand.u32 %v4804_v62, %v6118_v34  ;;  %v482_v63 = vmul.f32 %v6461_v32, %v440_v38  ;;  %v528_v17 = vadd.f32 %v6470_v54, %v486_v0  ;;  %v5396_v21 = vld [vmem:[%s8835_s3 + $0x330] ss:$36 sps:$4 sm:$0xff]   ;;  %v5402_v22 = vld [vmem:[%s8835_s3 + $0x2e8] ss:$36 sps:$4 sm:$0xff]   ;;  %v5438_v0 = vld [vmem:[%s8837_s5 + $0x124] ss:$24 sps:$4 sm:$0xff]  }
 0x165   :  { %1816 = vmatprep.subr.bf16.mxu1 %v5364_v1  ;;  %v5375_v1 = vld [vmem:[%s8835_s3 + $0x400] ss:$36 sps:$4 sm:$0xff]   ;;  %v485_v18 = vmul.f32 %v6453_v26, %v443_v27  ;;  %v529_v53 = vadd.f32 %v6464_v51, %v487_v28  ;;  %v5404_v37 = vld [vmem:[%s8835_s3 + $0x2ec] ss:$36 sps:$4 sm:$0xff]  }
 0x166   :  { %1534 = vmatmul.mubr.bf16.gmra.mxu0 %v6646_v56  ;;  %1645 = vmatmul.mubr.bf16.gmra.mxu1 %v6646_v56  ;;  %v524_v52 = vadd.f32 %v6470_v54, %v482_v63  ;;  %v5407_v27 = vld [vmem:[%s8835_s3 + $0x29c] ss:$36 sps:$4 sm:$0xff]  }
 0x167   :  { %1706 = vmatpush1.bf16.msra.mxu0 %v5359_v41  ;;  %4811 = vmatprep.mubr.msk.bf16.mxu0 %vm116_vm0, %v6652_v33  ;;  %v447_v41 = vmul.f32 %v5750_v39, %v6372_v42  ;;  %v5416_v28 = vld [vmem:[%s8835_s3 + $0x25c] ss:$36 sps:$4 sm:$0xff]  }
 0x168   :  { %4819 = vmatprep.mubr.msk.bf16.mxu1 %vm116_vm0, %v6652_v33  ;;  %1817 = vmatpush1.bf16.msra.mxu1 %v5362_v2  ;;  %v522_v2 = vadd.f32 %v6470_v54, %v480_v8  ;;  %v5414_v8 = vld [vmem:[%s8835_s3 + $0x258] ss:$36 sps:$4 sm:$0xff]  }
 0x169   :  { %1707 = vmatprep.subr.bf16.mxu0 %v5367_v59  ;;  %1818 = vmatprep.subr.bf16.mxu1 %v5370_v61  ;;  %v527_v59 = vadd.f32 %v6464_v51, %v485_v18  ;;  %v5384_v61 = vld [vmem:[%s8835_s3 + $0x3c0] ss:$36 sps:$4 sm:$0xff]   ;;  %v489_v50 = vmul.f32 %v6453_v26, %v447_v41  ;;  %v5390_v26 = vld [vmem:[%s8835_s3 + $0x378] ss:$36 sps:$4 sm:$0xff]  }
 0x16a   :  { %v6729_v42 = vpack.c.bf16 %v524_v52, %v522_v2  ;;  %v5418_v18 = vld [vmem:[%s8835_s3 + $0x218] ss:$36 sps:$4 sm:$0xff]   ;;  %v5423_v52 = vld [vmem:[%s8835_s3 + $0x380] ss:$36 sps:$4 sm:$0xff]   ;;  %v5435_v2 = vld [vmem:[%s8837_s5 + $0x154] ss:$24 sps:$4 sm:$0xff]  }
 0x16b   :  { %1708 = vmatpush1.bf16.msra.mxu0 %v5365_v23  ;;  %v6735_v4 = vpack.c.bf16 %v529_v53, %v527_v59  ;;  %v484_v23 = vmul.f32 %v6461_v32, %v442_v24  ;;  %v531_v38 = vadd.f32 %v6464_v51, %v489_v50  ;;  %v5401_v51 = vld [vmem:[%s8835_s3 + $0x2e4] ss:$36 sps:$4 sm:$0xff]   ;;  %v5426_v53 = vld [vmem:[%s8835_s3 + $0xf8] ss:$36 sps:$4 sm:$0xff]   ;;  %v5427_v24 = vld [vmem:[%s8835_s3 + $0x2f0] ss:$36 sps:$4 sm:$0xff]  }
 0x16c   :  { %1819 = vmatpush1.bf16.msra.mxu1 %v5368_v55  ;;  %1709 = vmatprep.subr.bf16.mxu0 %v1460_v13  ;;  %v446_v13 = vmul.f32 %v5750_v39, %v6367_v36  ;;  %v5398_v36 = vld [vmem:[%s8835_s3 + $0x334] ss:$36 sps:$4 sm:$0xff]   ;;  %v5424_v41 = vld [vmem:[%s8835_s3 + $0x140] ss:$36 sps:$4 sm:$0xff]  }
 0x16d   :  { %1820 = vmatprep.subr.bf16.mxu1 %v1466_v20  ;;  %v526_v55 = vadd.f32 %v6470_v54, %v484_v23  ;;  %v6776_v25 = vpack.c.bf16 %v531_v38, %v531_v38  ;;  %v5411_v39 = vld [vmem:[%s8835_s3 + $0x250] ss:$36 sps:$4 sm:$0xff]   ;;  %v5431_v50 = vld [vmem:[%s8835_s3 + $0x260] ss:$36 sps:$4 sm:$0xff]  }
 0x16e   :  { %1544 = vmatmul.mubr.bf16.gmra.mxu0 %v6686_v14  ;;  %1655 = vmatmul.mubr.bf16.gmra.mxu1 %v6686_v14  ;;  %v488_v20 = vmul.f32 %v6461_v32, %v446_v13  ;;  %v5399_v32 = vld [vmem:[%s8835_s3 + $0x2e0] ss:$36 sps:$4 sm:$0xff]   ;;  %v5428_v59 = vld [vmem:[%s8835_s3 + $0xb0] ss:$36 sps:$4 sm:$0xff]  }
 0x16f   :  { %1710 = vmatpush2.bf16.msra.mxu0 %v1457_v47  ;;  %4812 = vmatprep.mubr.msk.bf16.mxu0 %vm116_vm0, %v6690_v48  ;;  %v6770_v62 = vpack.c.bf16 %v528_v17, %v526_v55  ;;  %v5441_v23 = vld [vmem:[%s8837_s5 + $0xf4] ss:$24 sps:$4 sm:$0xff]   ;;  %v5432_v13 = vld [vmem:[%s8835_s3 + $0x20] ss:$36 sps:$4 sm:$0xff]  }
 0x170   :  { %4820 = vmatprep.mubr.msk.bf16.mxu1 %vm116_vm0, %v6690_v48  ;;  %1821 = vmatpush2.bf16.msra.mxu1 %v1463_v40  ;;  %v530_v47 = vadd.f32 %v6470_v54, %v488_v20  ;;  %v5405_v40 = vld [vmem:[%s8835_s3 + $0x298] ss:$36 sps:$4 sm:$0xff]   ;;  %v5447_v17 = vld [vmem:[%s8837_s5 + $0x94] ss:$24 sps:$4 sm:$0xff]  }
 0x171   :  { %1711 = vmatprep.subr.bf16.mxu0 %v5377_v31  ;;  %1822 = vmatprep.subr.bf16.mxu1 %v5380_v7  ;;  %v5408_v31 = vld [vmem:[%s8835_s3 + $0x2a0] ss:$36 sps:$4 sm:$0xff]   ;;  %v5417_v54 = vld [vmem:[%s8835_s3 + $0x458] ss:$0 sps:$4 sm:$0x77]  }
 0x172   :  { %v6806_v63 = vpack.c.bf16 %v530_v47, %v530_v47  ;;  %v5413_v7 = vld [vmem:[%s8835_s3 + $0x254] ss:$36 sps:$4 sm:$0xff]   ;;  %v5450_v38 = vld [vmem:[%s8837_s5 + $0x64] ss:$24 sps:$4 sm:$0xff]  }
 0x173   :  { %1712 = vmatpush2.bf16.msra.mxu0 %v5375_v1  ;;  %v1469_v1 = vand.u32 %v5417_v54, %v6118_v34  ;;  %v5420_v34 = vld [vmem:[%s8835_s3 + $0x1d0] ss:$36 sps:$4 sm:$0xff]   ;;  %v5448_v55 = vld [vmem:[%s8837_s5 + $0x60] ss:$24 sps:$4 sm:$0xff]   ;;  %v5456_v20 = vld [vmem:[%s8837_s5 + $0x4] ss:$24 sps:$4 sm:$0xff]  }
 0x174   :  { %1823 = vmatpush2.bf16.msra.mxu1 %v5378_v49  ;;  %1713 = vmatprep.subr.bf16.mxu0 %v5383_v46  ;;  %v5421_v49 = vld [vmem:[%s8835_s3 + $0x3c8] ss:$36 sps:$4 sm:$0xff]  }
 0x175   :  { %1824 = vmatprep.subr.bf16.mxu1 %v5386_v12  ;;  %v5422_v46 = vld [vmem:[%s8835_s3 + $0x188] ss:$36 sps:$4 sm:$0xff]   ;;  %v5425_v12 = vld [vmem:[%s8835_s3 + $0x338] ss:$36 sps:$4 sm:$0xff]  }
 0x176   :  { %1554 = vmatmul.mubr.bf16.gmra.mxu0 %v6729_v42  ;;  %1665 = vmatmul.mubr.bf16.gmra.mxu1 %v6729_v42  ;;  %v5465_v47 = vld [vmem:[%s8837_s5 + $0x274] ss:$24 sps:$4 sm:$0xff]  }
 0x177   :  { %1714 = vmatpush2.bf16.msra.mxu0 %v5381_v44  ;;  %4813 = vmatprep.mubr.msk.bf16.mxu0 %vm116_vm0, %v6735_v4  ;;  %v5433_v44 = vld [vmem:[%s8837_s5 + $0x150] ss:$24 sps:$4 sm:$0xff]   ;;  %v5471_v54 = vld [vmem:[%s8837_s5 + $0x214] ss:$24 sps:$4 sm:$0xff]  }
 0x178   :  { %4821 = vmatprep.mubr.msk.bf16.mxu1 %vm116_vm0, %v6735_v4  ;;  %1825 = vmatpush2.bf16.msra.mxu1 %v5384_v61  ;;  %v5429_v61 = vld [vmem:[%s8835_s3 + $0x2a8] ss:$36 sps:$4 sm:$0xff]  }
 0x179   :  { %1715 = vmatprep.subr.bf16.mxu0 %v5389_v6  ;;  %1826 = vmatprep.subr.bf16.mxu1 %v5392_v43  ;;  %v5436_v6 = vld [vmem:[%s8837_s5 + $0x120] ss:$24 sps:$4 sm:$0xff]   ;;  %v5430_v43 = vld [vmem:[%s8835_s3 + $0x68] ss:$36 sps:$4 sm:$0xff]  }
 0x17b   :  { %1716 = vmatpush2.bf16.msra.mxu0 %v5387_v11  ;;  %v5439_v11 = vld [vmem:[%s8837_s5 + $0xf0] ss:$24 sps:$4 sm:$0xff]  }
 0x17c   :  { %1827 = vmatpush2.bf16.msra.mxu1 %v5390_v26  ;;  %1717 = vmatprep.subr.bf16.mxu0 %v5395_v9  ;;  %v5444_v26 = vld [vmem:[%s8837_s5 + $0xc4] ss:$24 sps:$4 sm:$0xff]   ;;  %v5442_v9 = vld [vmem:[%s8837_s5 + $0xc0] ss:$24 sps:$4 sm:$0xff]  }
 0x17d   :  { %1828 = vmatprep.subr.bf16.mxu1 %v5398_v36  ;;  %v5445_v36 = vld [vmem:[%s8837_s5 + $0x90] ss:$24 sps:$4 sm:$0xff]  }
 0x17e   :  { %1564 = vmatmul.mubr.bf16.gmra.mxu0 %v6770_v62  ;;  %1675 = vmatmul.mubr.bf16.gmra.mxu1 %v6770_v62 }
 0x17f   :  { %1718 = vmatpush2.bf16.msra.mxu0 %v5393_v60  ;;  %4814 = vmatprep.mubr.msk.bf16.mxu0 %vm116_vm0, %v6776_v25  ;;  %v5453_v60 = vld [vmem:[%s8837_s5 + $0x34] ss:$24 sps:$4 sm:$0xff]  }
 0x180   :  { %4822 = vmatprep.mubr.msk.bf16.mxu1 %vm116_vm0, %v6776_v25  ;;  %1829 = vmatpush2.bf16.msra.mxu1 %v5396_v21  ;;  %v5451_v21 = vld [vmem:[%s8837_s5 + $0x30] ss:$24 sps:$4 sm:$0xff]  }
 0x181   :  { %1719 = vmatprep.subr.bf16.mxu0 %v5401_v51  ;;  %1830 = vmatprep.subr.bf16.mxu1 %v5404_v37  ;;  %v5454_v51 = vld [vmem:[%s8837_s5] ss:$24 sps:$4 sm:$0xff]   ;;  %v5459_v37 = vld [vmem:[%s8837_s5 + $0x2d4] ss:$24 sps:$4 sm:$0xff]  }
 0x183   :  { %1720 = vmatpush2.bf16.msra.mxu0 %v5399_v32  ;;  %v5457_v32 = vld [vmem:[%s8837_s5 + $0x2d0] ss:$24 sps:$4 sm:$0xff]  }
 0x184   :  { %1831 = vmatpush2.bf16.msra.mxu1 %v5402_v22  ;;  %1721 = vmatprep.subr.bf16.mxu0 %v5407_v27  ;;  %v5462_v22 = vld [vmem:[%s8837_s5 + $0x2a4] ss:$24 sps:$4 sm:$0xff]   ;;  %v5460_v27 = vld [vmem:[%s8837_s5 + $0x2a0] ss:$24 sps:$4 sm:$0xff]  }
 0x185   :  { %1832 = vmatprep.subr.bf16.mxu1 %v5410_v16  ;;  %v5463_v16 = vld [vmem:[%s8837_s5 + $0x270] ss:$24 sps:$4 sm:$0xff]  }
 0x186   :  { %1574 = vmatmul.mubr.bf16.gmra.mxu0 %v6806_v63  ;;  %1685 = vmatmul.mubr.bf16.gmra.mxu1 %v6806_v63 }
 0x187   :  { %1722 = vmatpush2.bf16.msra.mxu0 %v5405_v40  ;;  %4823 = vmatprep.mubr.msk.bf16.mxu0 %vm116_vm0, %v6485_v29  ;;  %v5468_v40 = vld [vmem:[%s8837_s5 + $0x244] ss:$24 sps:$4 sm:$0xff]  }
 0x188   :  { %1833 = vmatpush2.bf16.msra.mxu1 %v5408_v31  ;;  %4831 = vmatprep.mubr.msk.bf16.mxu1 %vm116_vm0, %v6485_v29  ;;  %v5466_v31 = vld [vmem:[%s8837_s5 + $0x240] ss:$24 sps:$4 sm:$0xff]  }
 0x189   :  { %1723 = vmatprep.subr.bf16.mxu0 %v5413_v7  ;;  %1834 = vmatprep.subr.bf16.mxu1 %v5416_v28  ;;  %v5472_v7 = vld [vmem:[%s8837_s5 + $0x1e0] ss:$24 sps:$4 sm:$0xff]   ;;  %v5474_v28 = vld [vmem:[%s8837_s5 + $0x1e4] ss:$24 sps:$4 sm:$0xff]  }
 0x18b   :  { %1724 = vmatpush2.bf16.msra.mxu0 %v5411_v39  ;;  %v5478_v39 = vld [vmem:[%s8837_s5 + $0x180] ss:$24 sps:$4 sm:$0xff]  }
 0x18c   :  { %1835 = vmatpush2.bf16.msra.mxu1 %v5414_v8  ;;  %5048 = vmatprep.subr.bf16.mxu0 %v1469_v1  ;;  %v5483_v8 = vld [vmem:[%s8837_s5 + $0x454] ss:$24 sps:$4 sm:$0xff]  }
 0x18d   :  { %3051 = vmatprep.subr.bf16.mxu1 %v5435_v2  ;;  %v5486_v1 = vld [vmem:[%s8837_s5 + $0x15c] ss:$24 sps:$4 sm:$0xff]  }
 0x18e   :  { %1726 = vmatmul.mubr.bf16.vlgmr.msra.gmra.mxu0 %v6490_v3 }
 0x18f   :  { %1837 = vmatmul.mubr.bf16.vlgmr.msra.gmra.mxu1 %v6490_v3  ;;  %5049 = vmatpush3.bf16.msra.mxu0 %v5418_v18  ;;  %v5526_v18 = vld [vmem:[%s8837_s5 + $0x360] ss:$24 sps:$4 sm:$0xff]  }
 0x190   :  { %4824 = vmatprep.mubr.msk.bf16.mxu0 %vm116_vm0, %v6515_v57  ;;  %4832 = vmatprep.mubr.msk.bf16.mxu1 %vm116_vm0, %v6515_v57 }
 0x191   :  { %5050 = vmatprep.subr.bf16.mxu0 %v5419_v45  ;;  %3052 = vmatpush1.bf16.msra.mxu1 %v5433_v44 }
 0x192   :  { %3053 = vmatprep.subr.bf16.mxu1 %v5438_v0 }
 0x193   :  { %5051 = vmatpush3.bf16.msra.mxu0 %v5420_v34  ;;  %v5535_v34 = vld [vmem:[%s8837_s5 + $0x330] ss:$24 sps:$4 sm:$0xff]  }
 0x194   :  { %5052 = vmatprep.subr.bf16.mxu0 %v5421_v49 }
 0x195   :  { %3054 = vmatpush1.bf16.msra.mxu1 %v5436_v6 }
 0x196   :  { %1736 = vmatmul.mubr.bf16.gmra.mxu0 %v6547_v30  ;;  %3055 = vmatprep.subr.bf16.mxu1 %v5441_v23  ;;  %v5546_v23 = vld [vmem:[%s8837_s5 + $0x304] ss:$24 sps:$4 sm:$0xff]  }
 0x197   :  { %1847 = vmatmul.mubr.bf16.gmra.mxu1 %v6547_v30  ;;  %4825 = vmatprep.mubr.msk.bf16.mxu0 %vm116_vm0, %v6553_v35 }
 0x198   :  { %4833 = vmatprep.mubr.msk.bf16.mxu1 %vm116_vm0, %v6553_v35  ;;  %5053 = vmatpush3.bf16.msra.mxu0 %v5422_v46 }
 0x199   :  { %5054 = vmatprep.subr.bf16.mxu0 %v5423_v52  ;;  %3056 = vmatpush1.bf16.msra.mxu1 %v5439_v11 }
 0x19a   :  { %3057 = vmatprep.subr.bf16.mxu1 %v5444_v26 }
 0x19c   :  { %5055 = vmatpush3.bf16.msra.mxu0 %v5424_v41 }
 0x19d   :  { %5056 = vmatprep.subr.bf16.mxu0 %v5425_v12  ;;  %3058 = vmatpush1.bf16.msra.mxu1 %v5442_v9 }
 0x19e   :  { %1746 = vmatmul.mubr.bf16.gmra.mxu0 %v6594_v19  ;;  %3059 = vmatprep.subr.bf16.mxu1 %v5447_v17 }
 0x19f   :  { %1857 = vmatmul.mubr.bf16.gmra.mxu1 %v6594_v19  ;;  %4826 = vmatprep.mubr.msk.bf16.mxu0 %vm116_vm0, %v6600_v5 }
 0x1a0   :  { %4834 = vmatprep.mubr.msk.bf16.mxu1 %vm116_vm0, %v6600_v5  ;;  %5057 = vmatpush3.bf16.msra.mxu0 %v5426_v53 }
 0x1a1   :  { %5058 = vmatprep.subr.bf16.mxu0 %v5427_v24  ;;  %3060 = vmatpush1.bf16.msra.mxu1 %v5445_v36 }
 0x1a2   :  { %3061 = vmatprep.subr.bf16.mxu1 %v5450_v38 }
 0x1a4   :  { %5059 = vmatpush3.bf16.msra.mxu0 %v5428_v59 }
 0x1a5   :  { %5060 = vmatprep.subr.bf16.mxu0 %v5429_v61  ;;  %3062 = vmatpush1.bf16.msra.mxu1 %v5448_v55  ;;  %v5555_v55 = vld [vmem:[%s8837_s5 + $0x45c] ss:$24 sps:$4 sm:$0xff]  }
 0x1a6   :  { %1756 = vmatmul.mubr.bf16.gmra.mxu0 %v6646_v56  ;;  %3063 = vmatprep.subr.bf16.mxu1 %v5453_v60 }
 0x1a7   :  { %1867 = vmatmul.mubr.bf16.gmra.mxu1 %v6646_v56  ;;  %4827 = vmatprep.mubr.msk.bf16.mxu0 %vm116_vm0, %v6652_v33 }
 0x1a8   :  { %4835 = vmatprep.mubr.msk.bf16.mxu1 %vm116_vm0, %v6652_v33  ;;  %5061 = vmatpush3.bf16.msra.mxu0 %v5430_v43 }
 0x1a9   :  { %5062 = vmatprep.subr.bf16.mxu0 %v5431_v50  ;;  %3064 = vmatpush1.bf16.msra.mxu1 %v5451_v21  ;;  %v5544_v50 = vld [vmem:[%s8837_s5 + $0x300] ss:$24 sps:$4 sm:$0xff]  }
 0x1aa   :  { %3065 = vmatprep.subr.bf16.mxu1 %v5456_v20  ;;  %v8845_v20 = vmov 0  }
 0x1ac   :  { %5063 = vmatpush3.bf16.msra.mxu0 %v5432_v13 }
 0x1ad   :  { %3066 = vmatpush1.bf16.msra.mxu1 %v5454_v51  ;;  %3162 = vmatprep.subr.bf16.mxu0 %v5483_v8 }
 0x1ae   :  { %1766 = vmatmul.mubr.bf16.gmra.mxu0 %v6686_v14  ;;  %3067 = vmatprep.subr.bf16.mxu1 %v5459_v37 }
 0x1af   :  { %1877 = vmatmul.mubr.bf16.gmra.mxu1 %v6686_v14  ;;  %4828 = vmatprep.mubr.msk.bf16.mxu0 %vm116_vm0, %v6690_v48 }
 0x1b0   :  { %4836 = vmatprep.mubr.msk.bf16.mxu1 %vm116_vm0, %v6690_v48 }
 0x1b1   :  { %3068 = vmatpush2.bf16.msra.mxu1 %v5457_v32 }
 0x1b2   :  { %3069 = vmatprep.subr.bf16.mxu1 %v5462_v22 }
 0x1b5   :  { %3070 = vmatpush2.bf16.msra.mxu1 %v5460_v27 }
 0x1b6   :  { %1776 = vmatmul.mubr.bf16.gmra.mxu0 %v6729_v42  ;;  %3071 = vmatprep.subr.bf16.mxu1 %v5465_v47 }
 0x1b7   :  { %1887 = vmatmul.mubr.bf16.gmra.mxu1 %v6729_v42  ;;  %4829 = vmatprep.mubr.msk.bf16.mxu0 %vm116_vm0, %v6735_v4 }
 0x1b8   :  { %4837 = vmatprep.mubr.msk.bf16.mxu1 %vm116_vm0, %v6735_v4 }
 0x1b9   :  { %3072 = vmatpush2.bf16.msra.mxu1 %v5463_v16 }
 0x1ba   :  { %3073 = vmatprep.subr.bf16.mxu1 %v5468_v40 }
 0x1bd   :  { %3074 = vmatpush2.bf16.msra.mxu1 %v5466_v31 }
 0x1be   :  { %1786 = vmatmul.mubr.bf16.gmra.mxu0 %v6770_v62  ;;  %3075 = vmatprep.subr.bf16.mxu1 %v5471_v54 }
 0x1bf   :  { %1897 = vmatmul.mubr.bf16.gmra.mxu1 %v6770_v62  ;;  %4830 = vmatprep.mubr.msk.bf16.mxu0 %vm116_vm0, %v6776_v25 }
 0x1c0   :  { %4838 = vmatprep.mubr.msk.bf16.mxu1 %vm116_vm0, %v6776_v25 }
 0x1c6   :  { %1796 = vmatmul.mubr.bf16.gmra.mxu0 %v6806_v63 }
 0x1c7   :  { %1907 = vmatmul.mubr.bf16.gmra.mxu1 %v6806_v63  ;;  %4839 = vmatprep.mubr.msk.bf16.mxu0 %vm116_vm0, %v6485_v29  ;;  %v5469_v29 = vld [vmem:[%s8837_s5 + $0x210] ss:$24 sps:$4 sm:$0xff]  }
 0x1c8   :  { %3076 = vmatpush2.bf16.msra.mxu1 %v5469_v29 }
 0x1c9   :  { %3077 = vmatprep.subr.bf16.mxu1 %v5474_v28 }
 0x1cc   :  { %3078 = vmatpush2.bf16.msra.mxu1 %v5472_v7 }
 0x1ce   :  { %1948 = vmatmul.mubr.bf16.vlgmr.msra.gmra.mxu0 %v6490_v3  ;;  %v5475_v3 = vld [vmem:[%s8837_s5 + $0x1b0] ss:$24 sps:$4 sm:$0xff]  }
 0x1cf   :  { %4840 = vmatprep.mubr.msk.bf16.mxu0 %vm116_vm0, %v6515_v57  ;;  %v5477_v57 = vld [vmem:[%s8837_s5 + $0x1b4] ss:$24 sps:$4 sm:$0xff]  }
 0x1d0   :  { %3079 = vmatprep.subr.bf16.mxu1 %v5477_v57 }
 0x1d1   :  { %3080 = vmatpush2.bf16.msra.mxu1 %v5475_v3 }
 0x1d6   :  { %1956 = vmatmul.mubr.bf16.gmra.mxu0 %v6547_v30  ;;  %v5480_v30 = vld [vmem:[%s8837_s5 + $0x184] ss:$24 sps:$4 sm:$0xff]  }
 0x1d7   :  { %4841 = vmatprep.mubr.msk.bf16.mxu0 %vm116_vm0, %v6553_v35  ;;  %3081 = vmatprep.subr.bf16.mxu1 %v5480_v30  ;;  %v5481_v35 = vld [vmem:[%s8837_s5 + $0x450] ss:$24 sps:$4 sm:$0xff]  }
 0x1d8   :  { %3082 = vmatpush2.bf16.msra.mxu1 %v5478_v39  ;;  %3163 = vmatpush1.bf16.msra.mxu0 %v5481_v35 }
 0x1d9   :  { %3273 = vmatprep.subr.bf16.mxu1 %v5486_v1 }
 0x1de   :  { %1964 = vmatmul.mubr.bf16.gmra.mxu0 %v6594_v19  ;;  %v5490_v19 = vld [vmem:[%s8837_s5 + $0x420] ss:$24 sps:$4 sm:$0xff]  }
 0x1df   :  { %4842 = vmatprep.mubr.msk.bf16.mxu0 %vm116_vm0, %v6600_v5  ;;  %v5492_v5 = vld [vmem:[%s8837_s5 + $0x424] ss:$24 sps:$4 sm:$0xff]  }
 0x1e0   :  { %3164 = vmatprep.subr.bf16.mxu0 %v5492_v5 }
 0x1e1   :  { %3165 = vmatpush1.bf16.msra.mxu0 %v5490_v19 }
 0x1e6   :  { %1972 = vmatmul.mubr.bf16.gmra.mxu0 %v6646_v56  ;;  %v5499_v56 = vld [vmem:[%s8837_s5 + $0x3f0] ss:$24 sps:$4 sm:$0xff]  }
 0x1e7   :  { %4843 = vmatprep.mubr.msk.bf16.mxu0 %vm116_vm0, %v6652_v33  ;;  %v5501_v33 = vld [vmem:[%s8837_s5 + $0x3f4] ss:$24 sps:$4 sm:$0xff]  }
 0x1e8   :  { %3166 = vmatprep.subr.bf16.mxu0 %v5501_v33 }
 0x1e9   :  { %3167 = vmatpush1.bf16.msra.mxu0 %v5499_v56 }
 0x1ee   :  { %1980 = vmatmul.mubr.bf16.gmra.mxu0 %v6686_v14  ;;  %v5508_v14 = vld [vmem:[%s8837_s5 + $0x3c0] ss:$24 sps:$4 sm:$0xff]  }
 0x1ef   :  { %4844 = vmatprep.mubr.msk.bf16.mxu0 %vm116_vm0, %v6690_v48  ;;  %v5510_v48 = vld [vmem:[%s8837_s5 + $0x3c4] ss:$24 sps:$4 sm:$0xff]  }
 0x1f0   :  { %3168 = vmatprep.subr.bf16.mxu0 %v5510_v48 }
 0x1f1   :  { %3169 = vmatpush1.bf16.msra.mxu0 %v5508_v14 }
 0x1f6   :  { %1988 = vmatmul.mubr.bf16.gmra.mxu0 %v6729_v42  ;;  %v5517_v42 = vld [vmem:[%s8837_s5 + $0x390] ss:$24 sps:$4 sm:$0xff]  }
 0x1f7   :  { %4845 = vmatprep.mubr.msk.bf16.mxu0 %vm116_vm0, %v6735_v4  ;;  %v5519_v4 = vld [vmem:[%s8837_s5 + $0x394] ss:$24 sps:$4 sm:$0xff]  }
 0x1f8   :  { %3170 = vmatprep.subr.bf16.mxu0 %v5519_v4 }
 0x1f9   :  { %3171 = vmatpush1.bf16.msra.mxu0 %v5517_v42 }
 0x1fe   :  { %1996 = vmatmul.mubr.bf16.gmra.mxu0 %v6770_v62  ;;  %v5528_v62 = vld [vmem:[%s8837_s5 + $0x364] ss:$24 sps:$4 sm:$0xff]  }
 0x1ff   :  { %4846 = vmatprep.mubr.msk.bf16.mxu0 %vm116_vm0, %v6776_v25  ;;  %3172 = vmatprep.subr.bf16.mxu0 %v5528_v62 }
 0x200   :  { %3173 = vmatpush1.bf16.msra.mxu0 %v5526_v18 }
 0x206   :  { %2004 = vmatmul.mubr.bf16.gmra.mxu0 %v6806_v63  ;;  %v5537_v63 = vld [vmem:[%s8837_s5 + $0x334] ss:$24 sps:$4 sm:$0xff]  }
 0x207   :  { %3174 = vmatprep.subr.bf16.mxu0 %v5537_v63  ;;  %3194 = vmatprep.mubr.bf16.mxu0 %v8845_v20 }
 0x208   :  { %3175 = vmatpush1.bf16.msra.mxu0 %v5535_v34 }
 0x209   :  { %3176 = vmatprep.subr.bf16.mxu0 %v5546_v23 }
 0x20c   :  { %3177 = vmatpush1.bf16.msra.mxu0 %v5544_v50 }
 0x20d   :  { %3384 = vmatprep.subr.bf16.mxu0 %v5555_v55 }
 0x20e   :  { %v7081_v25 = vpop.f32.mrf.mxu0  ;;  %v7083_v45 = vpop.f32.mrf.mxu1 }
 0x210   :  { %v7091_v49 = vpop.f32.mrf.mxu0  ;;  %v7093_v46 = vpop.f32.mrf.mxu1 }
 0x212   :  { %v7097_v41 = vpop.f32.mrf.mxu0  ;;  %v7099_v12 = vpop.f32.mrf.mxu1 }
 0x213   :  { %8868 = vst [vmem:[#allocation7_spill] sm:$0xff] %v7099_v12 }
 0x214   :  { %v7101_v53 = vpop.f32.mrf.mxu0  ;;  %v7103_v24 = vpop.f32.mrf.mxu1 }
 0x216   :  { %v7105_v2 = vpop.f32.mrf.mxu0  ;;  %v7107_v44 = vpop.f32.mrf.mxu1 }
 0x217   :  { %8869 = vst [vmem:[#allocation8_spill] sm:$0xff] %v7107_v44 }
 0x218   :  { %v7109_v59 = vpop.f32.mrf.mxu0  ;;  %v7111_v61 = vpop.f32.mrf.mxu1 }
 0x21a   :  { %v7115_v6 = vpop.f32.mrf.mxu0  ;;  %v7117_v43 = vpop.f32.mrf.mxu1 }
 0x21b   :  { %8870 = vst [vmem:[#allocation9_spill] sm:$0xff] %v7117_v43 }
 0x21c   :  { %v7125_v11 = vpop.f32.mrf.mxu0  ;;  %v7127_v13 = vpop.f32.mrf.mxu1 }
 0x21e   :  { %v7129_v26 = vpop.f32.mrf.mxu0  ;;  %v7131_v9 = vpop.f32.mrf.mxu1 }
 0x21f   :  { %8871 = vst [vmem:[#allocation10_spill] sm:$0xff] %v7131_v9  ;;  %v2014_v9 = vmax.f32 %v7097_v41, %v7103_v24 }
 0x220   :  { %v7133_v17 = vpop.f32.mrf.mxu0  ;;  %v7135_v36 = vpop.f32.mrf.mxu1 }
 0x222   :  { %v7142_v60 = vpop.f32.mrf.mxu0  ;;  %v7144_v21 = vpop.f32.mrf.mxu1 }
 0x223   :  { %8872 = vst [vmem:[#allocation11_spill] sm:$0xff] %v7144_v21 }
 0x224   :  { %v7147_v51 = vpop.f32.mrf.mxu0  ;;  %v7149_v37 = vpop.f32.mrf.mxu1 }
 0x226   :  { %v7151_v32 = vpop.f32.mrf.mxu0  ;;  %v7153_v22 = vpop.f32.mrf.mxu1 }
 0x227   :  { %8873 = vst [vmem:[#allocation12_spill] sm:$0xff] %v7153_v22 }
 0x228   :  { %v7155_v27 = vpop.f32.mrf.mxu0  ;;  %v7157_v47 = vpop.f32.mrf.mxu1 }
 0x22a   :  { %v7161_v40 = vpop.f32.mrf.mxu0  ;;  %v7163_v31 = vpop.f32.mrf.mxu1 }
 0x22b   :  { %8874 = vst [vmem:[#allocation13_spill] sm:$0xff] %v7163_v31  ;;  %v7236_v31 = vld [vmem:[%s8836_s4] sm:$0x7] }
 0x22c   :  { %v7165_v54 = vpop.f32.mrf.mxu0  ;;  %v7167_v29 = vpop.f32.mrf.mxu1 }
 0x22e   :  { %v7169_v7 = vpop.f32.mrf.mxu0  ;;  %v7171_v28 = vpop.f32.mrf.mxu1 }
 0x22f   :  { %8875 = vst [vmem:[#allocation14_spill] sm:$0xff] %v7171_v28 }
 0x230   :  { %v7173_v3 = vpop.f32.mrf.mxu0  ;;  %v7175_v57 = vpop.f32.mrf.mxu1 }
 0x232   :  { %v7179_v30 = vpop.f32.mrf.mxu0  ;;  %v7181_v35 = vpop.f32.mrf.mxu1 }
 0x233   :  { %8876 = vst [vmem:[#allocation15_spill] sm:$0xff] %v7181_v35 }
 0x234   :  { %v7183_v8 = vpop.f32.mrf.mxu0  ;;  %v7185_v1 = vpop.f32.mrf.mxu1 }
 0x236   :  { %v7187_v19 = vpop.f32.mrf.mxu0  ;;  %v7189_v5 = vpop.f32.mrf.mxu1 }
 0x237   :  { %8877 = vst [vmem:[#allocation16_spill] sm:$0xff] %v7189_v5 }
 0x238   :  { %v7191_v56 = vpop.f32.mrf.mxu0  ;;  %v7193_v33 = vpop.f32.mrf.mxu1 }
 0x23a   :  { %v7197_v48 = vpop.f32.mrf.mxu0  ;;  %v7199_v42 = vpop.f32.mrf.mxu1 }
 0x23b   :  { %8878 = vst [vmem:[#allocation17_spill] sm:$0xff] %v7199_v42 }
 0x23c   :  { %v7201_v4 = vpop.f32.mrf.mxu0  ;;  %v7203_v18 = vpop.f32.mrf.mxu1 }
 0x23e   :  { %v7205_v62 = vpop.f32.mrf.mxu0  ;;  %v7207_v34 = vpop.f32.mrf.mxu1 }
 0x23f   :  { %8879 = vst [vmem:[#allocation18_spill] sm:$0xff] %v7207_v34 }
 0x240   :  { %v7209_v63 = vpop.f32.mrf.mxu0  ;;  %v7211_v50 = vpop.f32.mrf.mxu1 }
 0x242   :  { %v7215_v55 = vpop.f32.mrf.mxu0  ;;  %v7217_v20 = vpop.f32.mrf.mxu1 }
 0x243   :  { %8880 = vst [vmem:[#allocation19_spill] sm:$0xff] %v7217_v20 }
 0x244   :  { %v7219_v14 = vpop.f32.mrf.mxu0  ;;  %v7221_v39 = vpop.f32.mrf.mxu1 }
 0x246   :  { %v7223_v16 = vpop.f32.mrf.mxu0  ;;  %v7225_v38 = vpop.f32.mrf.mxu1 }
 0x247   :  { %8881 = vst [vmem:[#allocation20_spill] sm:$0xff] %v7225_v38 }
 0x248   :  { %v7227_v0 = vpop.f32.mrf.mxu0  ;;  %v7229_v52 = vpop.f32.mrf.mxu1 }
 0x24a   :  { %v1579_v23 = vpop.f32.mrf.mxu0  ;;  %v1690_v42 = vpop.f32.mrf.mxu1 }
 0x24b   :  { %v8882_v42 = vmax.f32 %v7081_v25, %v7093_v46 }
 0x24c   :  { %v1580_v5 = vpop.f32.mrf.mxu0  ;;  %v1691_v35 = vpop.f32.mrf.mxu1 }
 0x24d   :  { %v7248_v35 = vrot.slane %v7236_v31, %v6450_v15 }
 0x24e   :  { %v1727_v20 = vpop.f32.mrf.mxu0 }
 0x24f   :  { %v1838_v28 = vpop.f32.mrf.mxu1  ;;  %v2012_v38 = vmax.f32 %v7091_v49, %v1727_v20  ;;  %v7253_v49 = vrot.slane %v7236_v31, %v6444_v10 }
 0x250   :  { %v7239_v22 = vpop.f32.mrf.mxu0  ;;  %v2056_v5 = vmax.f32 %v8882_v42, %v1838_v28 }
 0x251   :  { %v1840_v21 = vpop.f32.mrf.mxu1 }
 0x252   :  { %v1731_v23 = vpop.f32.mrf.mxu0  ;;  %v2057_v44 = vmax.f32 %v2012_v38, %v1840_v21  ;;  %v2118_v25 = vadd.f32 %v7248_v35, %v2056_v5  ;;  %v8883_v5 = vmax.f32 %v7105_v2, %v7111_v61 }
 0x253   :  { %v2015_v34 = vmax.f32 %v7101_v53, %v1731_v23  ;;  %v1842_v43 = vpop.f32.mrf.mxu1 }
 0x254   :  { %v2059_v20 = vmax.f32 %v2014_v9, %v1842_v43  ;;  %v7255_v12 = vpop.f32.mrf.mxu0  ;;  %v2119_v15 = vadd.f32 %v7253_v49, %v2057_v44  ;;  %v2020_v9 = vmax.f32 %v7115_v6, %v7127_v13  ;;  %v5484_v44 = vld [vmem:[%s8837_s5 + $0x158] ss:$24 sps:$4 sm:$0xff]  }
 0x255   :  { %v1844_v41 = vpop.f32.mrf.mxu1 }
 0x256   :  { %v2121_v46 = vadd.f32 %v7248_v35, %v2059_v20  ;;  %v2060_v24 = vmax.f32 %v2015_v34, %v1844_v41  ;;  %v1737_v28 = vpop.f32.mrf.mxu0 }
 0x257   :  { %v1848_v42 = vpop.f32.mrf.mxu1  ;;  %v2018_v21 = vmax.f32 %v7109_v59, %v1737_v28 }
 0x258   :  { %v7260_v53 = vpack.c.bf16 %v2121_v46, %v2118_v25  ;;  %v2122_v38 = vadd.f32 %v7253_v49, %v2060_v24  ;;  %v7264_v23 = vpop.f32.mrf.mxu0  ;;  %v2062_v34 = vmax.f32 %v8883_v5, %v1848_v42  ;;  %v5489_v46 = vld [vmem:[%s8837_s5 + $0x12c] ss:$24 sps:$4 sm:$0xff]   ;;  %v5487_v42 = vld [vmem:[%s8837_s5 + $0x128] ss:$24 sps:$4 sm:$0xff]  }
 0x259   :  { %v1850_v43 = vpop.f32.mrf.mxu1 }
 0x25a   :  { %v1741_v20 = vpop.f32.mrf.mxu0  ;;  %v7271_v41 = vpack.c.bf16 %v2122_v38, %v2119_v15  ;;  %v2063_v24 = vmax.f32 %v2018_v21, %v1850_v43  ;;  %v2124_v15 = vadd.f32 %v7248_v35, %v2062_v34  ;;  %v5495_v21 = vld [vmem:[%s8837_s5 + $0xfc] ss:$24 sps:$4 sm:$0xff]  }
 0x25b   :  { %v2021_v25 = vmax.f32 %v7125_v11, %v1741_v20  ;;  %v1852_v59 = vpop.f32.mrf.mxu1 }
 0x25c   :  { %v2065_v6 = vmax.f32 %v2020_v9, %v1852_v59  ;;  %3083 = vmatprep.mubr.bf16.mxu1 %v7271_v41  ;;  %v7281_v2 = vpop.f32.mrf.mxu0  ;;  %v2125_v43 = vadd.f32 %v7253_v49, %v2063_v24  ;;  %v8884_v59 = vmax.f32 %v7129_v26, %v7135_v36 }
 0x25d   :  { %v1854_v61 = vpop.f32.mrf.mxu1  ;;  %3084 = vmatmul.mubr.bf16.vlgmr.msra.gmra.mxu1 %v7260_v53 }
 0x25e   :  { %v2127_v13 = vadd.f32 %v7248_v35, %v2065_v6  ;;  %v2066_v28 = vmax.f32 %v2021_v25, %v1854_v61  ;;  %3274 = vmatpush1.bf16.msra.mxu1 %v5484_v44  ;;  %v1747_v11 = vpop.f32.mrf.mxu0  ;;  %v2026_v25 = vmax.f32 %v7142_v60, %v7149_v37  ;;  %v5498_v60 = vld [vmem:[%s8837_s5 + $0xcc] ss:$24 sps:$4 sm:$0xff]  }
 0x25f   :  { %v1858_v38 = vpop.f32.mrf.mxu1  ;;  %3275 = vmatprep.subr.bf16.mxu1 %v5489_v46  ;;  %v2024_v5 = vmax.f32 %v7133_v17, %v1747_v11  ;;  %v5493_v17 = vld [vmem:[%s8837_s5 + $0xf8] ss:$24 sps:$4 sm:$0xff]  }
 0x260   :  { %v2128_v9 = vadd.f32 %v7253_v49, %v2066_v28  ;;  %v7295_v34 = vpop.f32.mrf.mxu0  ;;  %v7297_v20 = vpack.c.bf16 %v2127_v13, %v2124_v15  ;;  %v2068_v46 = vmax.f32 %v8884_v59, %v1858_v38  ;;  %v5496_v38 = vld [vmem:[%s8837_s5 + $0xc8] ss:$24 sps:$4 sm:$0xff]  }
 0x261   :  { %v1860_v44 = vpop.f32.mrf.mxu1 }
 0x262   :  { %3276 = vmatpush1.bf16.msra.mxu1 %v5487_v42  ;;  %v1751_v6 = vpop.f32.mrf.mxu0  ;;  %v7304_v61 = vpack.c.bf16 %v2128_v9, %v2125_v43  ;;  %v2069_v37 = vmax.f32 %v2024_v5, %v1860_v44  ;;  %v2130_v28 = vadd.f32 %v7248_v35, %v2068_v46  ;;  %v5504_v43 = vld [vmem:[%s8837_s5 + $0x9c] ss:$24 sps:$4 sm:$0xff]  }
 0x263   :  { %v2027_v24 = vmax.f32 %v7147_v51, %v1751_v6  ;;  %v1862_v15 = vpop.f32.mrf.mxu1  ;;  %3277 = vmatprep.subr.bf16.mxu1 %v5495_v21  ;;  %v2032_v6 = vmax.f32 %v7161_v40, %v7167_v29  ;;  %v5507_v40 = vld [vmem:[%s8837_s5 + $0x6c] ss:$24 sps:$4 sm:$0xff]  }
 0x264   :  { %v2071_v13 = vmax.f32 %v2026_v25, %v1862_v15  ;;  %3093 = vmatprep.mubr.bf16.mxu1 %v7304_v61  ;;  %v7314_v26 = vpop.f32.mrf.mxu0  ;;  %v2131_v9 = vadd.f32 %v7253_v49, %v2069_v37 }
 0x265   :  { %v1864_v36 = vpop.f32.mrf.mxu1  ;;  %3094 = vmatmul.mubr.bf16.gmra.mxu1 %v7297_v20 }
 0x266   :  { %v2133_v11 = vadd.f32 %v7248_v35, %v2071_v13  ;;  %v2072_v51 = vmax.f32 %v2027_v24, %v1864_v36  ;;  %3278 = vmatpush1.bf16.msra.mxu1 %v5493_v17  ;;  %v1757_v42 = vpop.f32.mrf.mxu0  ;;  %v8885_v17 = vmax.f32 %v7151_v32, %v7157_v47 }
 0x267   :  { %v1868_v21 = vpop.f32.mrf.mxu1  ;;  %3279 = vmatprep.subr.bf16.mxu1 %v5498_v60  ;;  %v2030_v44 = vmax.f32 %v7155_v27, %v1757_v42  ;;  %v5502_v27 = vld [vmem:[%s8837_s5 + $0x98] ss:$24 sps:$4 sm:$0xff]   ;;  %v5505_v42 = vld [vmem:[%s8837_s5 + $0x68] ss:$24 sps:$4 sm:$0xff]  }
 0x268   :  { %v2134_v5 = vadd.f32 %v7253_v49, %v2072_v51  ;;  %v7328_v25 = vpop.f32.mrf.mxu0  ;;  %v7330_v59 = vpack.c.bf16 %v2133_v11, %v2130_v28  ;;  %v2074_v24 = vmax.f32 %v8885_v17, %v1868_v21  ;;  %v5513_v21 = vld [vmem:[%s8837_s5 + $0x3c] ss:$24 sps:$4 sm:$0xff]   ;;  %v2038_v17 = vmax.f32 %v7179_v30, %v7185_v1  ;;  %v5516_v30 = vld [vmem:[%s8837_s5 + $0xc] ss:$24 sps:$4 sm:$0xff]  }
 0x269   :  { %v1870_v46 = vpop.f32.mrf.mxu1 }
 0x26a   :  { %3280 = vmatpush1.bf16.msra.mxu1 %v5496_v38  ;;  %v1761_v15 = vpop.f32.mrf.mxu0  ;;  %v7337_v60 = vpack.c.bf16 %v2134_v5, %v2131_v9  ;;  %v2075_v29 = vmax.f32 %v2030_v44, %v1870_v46  ;;  %v2136_v28 = vadd.f32 %v7248_v35, %v2074_v24  ;;  %v8886_v24 = vmax.f32 %v7169_v7, %v7175_v57 }
 0x26b   :  { %v2033_v37 = vmax.f32 %v7165_v54, %v1761_v15  ;;  %v1872_v13 = vpop.f32.mrf.mxu1  ;;  %3281 = vmatprep.subr.bf16.mxu1 %v5504_v43 }
 0x26c   :  { %v2077_v36 = vmax.f32 %v2032_v6, %v1872_v13  ;;  %3103 = vmatprep.mubr.bf16.mxu1 %v7337_v60  ;;  %v7347_v32 = vpop.f32.mrf.mxu0  ;;  %v2137_v43 = vadd.f32 %v7253_v49, %v2075_v29 }
 0x26d   :  { %v1874_v47 = vpop.f32.mrf.mxu1  ;;  %3104 = vmatmul.mubr.bf16.gmra.mxu1 %v7330_v59 }
 0x26e   :  { %v2139_v11 = vadd.f32 %v7248_v35, %v2077_v36  ;;  %v2078_v54 = vmax.f32 %v2033_v37, %v1874_v47  ;;  %3282 = vmatpush1.bf16.msra.mxu1 %v5502_v27  ;;  %v1767_v51 = vpop.f32.mrf.mxu0 }
 0x26f   :  { %v1878_v38 = vpop.f32.mrf.mxu1  ;;  %3283 = vmatprep.subr.bf16.mxu1 %v5507_v40  ;;  %v2036_v5 = vmax.f32 %v7173_v3, %v1767_v51  ;;  %v5511_v3 = vld [vmem:[%s8837_s5 + $0x38] ss:$24 sps:$4 sm:$0xff]   ;;  %v5522_v51 = vld [vmem:[%s8837_s5 + $0x2dc] ss:$24 sps:$4 sm:$0xff]  }
 0x270   :  { %v2140_v9 = vadd.f32 %v7253_v49, %v2078_v54  ;;  %v7361_v44 = vpop.f32.mrf.mxu0  ;;  %v7363_v46 = vpack.c.bf16 %v2139_v11, %v2136_v28  ;;  %v2080_v15 = vmax.f32 %v8886_v24, %v1878_v38  ;;  %v5514_v11 = vld [vmem:[%s8837_s5 + $0x8] ss:$24 sps:$4 sm:$0xff]  }
 0x271   :  { %v1880_v6 = vpop.f32.mrf.mxu1 }
 0x272   :  { %3284 = vmatpush1.bf16.msra.mxu1 %v5505_v42  ;;  %v1771_v27 = vpop.f32.mrf.mxu0  ;;  %v7370_v37 = vpack.c.bf16 %v2140_v9, %v2137_v43  ;;  %v2081_v1 = vmax.f32 %v2036_v5, %v1880_v6  ;;  %v2142_v36 = vadd.f32 %v7248_v35, %v2080_v15  ;;  %v2044_v6 = vmax.f32 %v7197_v48, %v7203_v18  ;;  %v5525_v48 = vld [vmem:[%s8837_s5 + $0x2ac] ss:$24 sps:$4 sm:$0xff]  }
 0x273   :  { %v2039_v13 = vmax.f32 %v7183_v8, %v1771_v27  ;;  %v1882_v40 = vpop.f32.mrf.mxu1  ;;  %3285 = vmatprep.subr.bf16.mxu1 %v5513_v21 }
 0x274   :  { %v2083_v29 = vmax.f32 %v2038_v17, %v1882_v40  ;;  %3113 = vmatprep.mubr.bf16.mxu1 %v7370_v37  ;;  %v7380_v7 = vpop.f32.mrf.mxu0  ;;  %v2143_v42 = vadd.f32 %v7253_v49, %v2081_v1  ;;  %v8887_v17 = vmax.f32 %v7187_v19, %v7193_v33 }
 0x275   :  { %v1884_v57 = vpop.f32.mrf.mxu1  ;;  %3114 = vmatmul.mubr.bf16.gmra.mxu1 %v7363_v46 }
 0x276   :  { %v2145_v47 = vadd.f32 %v7248_v35, %v2083_v29  ;;  %v2084_v8 = vmax.f32 %v2039_v13, %v1884_v57  ;;  %3286 = vmatpush1.bf16.msra.mxu1 %v5511_v3  ;;  %v1777_v28 = vpop.f32.mrf.mxu0  ;;  %v5523_v57 = vld [vmem:[%s8837_s5 + $0x2a8] ss:$24 sps:$4 sm:$0xff]  }
 0x277   :  { %v1888_v54 = vpop.f32.mrf.mxu1  ;;  %3287 = vmatprep.subr.bf16.mxu1 %v5516_v30  ;;  %v2042_v21 = vmax.f32 %v7191_v56, %v1777_v28  ;;  %v5520_v56 = vld [vmem:[%s8837_s5 + $0x2d8] ss:$24 sps:$4 sm:$0xff]  }
 0x278   :  { %v2146_v38 = vadd.f32 %v7253_v49, %v2084_v8  ;;  %v7394_v43 = vpop.f32.mrf.mxu0  ;;  %v7396_v9 = vpack.c.bf16 %v2145_v47, %v2142_v36  ;;  %v2086_v24 = vmax.f32 %v8887_v17, %v1888_v54  ;;  %v5531_v47 = vld [vmem:[%s8837_s5 + $0x27c] ss:$24 sps:$4 sm:$0xff]  }
 0x279   :  { %v1890_v5 = vpop.f32.mrf.mxu1 }
 0x27a   :  { %3288 = vmatpush1.bf16.msra.mxu1 %v5514_v11  ;;  %v1781_v15 = vpop.f32.mrf.mxu0  ;;  %v7403_v27 = vpack.c.bf16 %v2146_v38, %v2143_v42  ;;  %v2087_v18 = vmax.f32 %v2042_v21, %v1890_v5  ;;  %v2148_v30 = vadd.f32 %v7248_v35, %v2086_v24  ;;  %v2050_v38 = vmax.f32 %v7215_v55, %v7221_v39  ;;  %v5534_v39 = vld [vmem:[%s8837_s5 + $0x24c] ss:$24 sps:$4 sm:$0xff]  }
 0x27b   :  { %v2045_v3 = vmax.f32 %v7201_v4, %v1781_v15  ;;  %v1892_v13 = vpop.f32.mrf.mxu1  ;;  %3289 = vmatprep.subr.bf16.mxu1 %v5522_v51  ;;  %v8888_v21 = vmax.f32 %v7205_v62, %v7211_v50 }
 0x27c   :  { %v2089_v40 = vmax.f32 %v2044_v6, %v1892_v13  ;;  %3123 = vmatprep.mubr.bf16.mxu1 %v7403_v27  ;;  %v7413_v19 = vpop.f32.mrf.mxu0  ;;  %v2149_v8 = vadd.f32 %v7253_v49, %v2087_v18  ;;  %v5532_v18 = vld [vmem:[%s8837_s5 + $0x248] ss:$24 sps:$4 sm:$0xff]  }
 0x27d   :  { %v1894_v33 = vpop.f32.mrf.mxu1  ;;  %3124 = vmatmul.mubr.bf16.gmra.mxu1 %v7396_v9 }
 0x27e   :  { %v2151_v1 = vadd.f32 %v7248_v35, %v2089_v40  ;;  %v2090_v4 = vmax.f32 %v2045_v3, %v1894_v33  ;;  %3290 = vmatpush2.bf16.msra.mxu1 %v5520_v56  ;;  %v1787_v29 = vpop.f32.mrf.mxu0 }
 0x27f   :  { %v1898_v36 = vpop.f32.mrf.mxu1  ;;  %3291 = vmatprep.subr.bf16.mxu1 %v5525_v48  ;;  %v2048_v11 = vmax.f32 %v7209_v63, %v1787_v29  ;;  %v5529_v63 = vld [vmem:[%s8837_s5 + $0x278] ss:$24 sps:$4 sm:$0xff]  }
 0x280   :  { %v2152_v28 = vadd.f32 %v7253_v49, %v2090_v4  ;;  %v7427_v54 = vpop.f32.mrf.mxu0  ;;  %v7429_v51 = vpack.c.bf16 %v2151_v1, %v2148_v30  ;;  %v2092_v5 = vmax.f32 %v8888_v21, %v1898_v36  ;;  %v5540_v30 = vld [vmem:[%s8837_s5 + $0x21c] ss:$24 sps:$4 sm:$0xff]   ;;  %v5543_v21 = vld [vmem:[%s8837_s5 + $0x1ec] ss:$24 sps:$4 sm:$0xff]  }
 0x281   :  { %v1900_v42 = vpop.f32.mrf.mxu1 }
 0x282   :  { %3292 = vmatpush2.bf16.msra.mxu1 %v5523_v57  ;;  %v1791_v6 = vpop.f32.mrf.mxu0  ;;  %v7436_v17 = vpack.c.bf16 %v2152_v28, %v2149_v8  ;;  %v2093_v55 = vmax.f32 %v2048_v11, %v1900_v42  ;;  %v2154_v3 = vadd.f32 %v7248_v35, %v2092_v5  ;;  %v8889_v11 = vmax.f32 %v7223_v16, %v7229_v52  ;;  %v5541_v52 = vld [vmem:[%s8837_s5 + $0x1e8] ss:$24 sps:$4 sm:$0xff]  }
 0x283   :  { %v2051_v24 = vmax.f32 %v7219_v14, %v1791_v6  ;;  %v1902_v15 = vpop.f32.mrf.mxu1  ;;  %3293 = vmatprep.subr.bf16.mxu1 %v5531_v47 }
 0x284   :  { %v2095_v56 = vmax.f32 %v2050_v38, %v1902_v15  ;;  %3133 = vmatprep.mubr.bf16.mxu1 %v7436_v17  ;;  %v7446_v62 = vpop.f32.mrf.mxu0  ;;  %v2155_v1 = vadd.f32 %v7253_v49, %v2093_v55 }
 0x285   :  { %v1904_v50 = vpop.f32.mrf.mxu1  ;;  %3134 = vmatmul.mubr.bf16.gmra.mxu1 %v7429_v51 }
 0x286   :  { %v2157_v13 = vadd.f32 %v7248_v35, %v2095_v56  ;;  %v2096_v14 = vmax.f32 %v2051_v24, %v1904_v50  ;;  %3294 = vmatpush2.bf16.msra.mxu1 %v5529_v63  ;;  %v1797_v48 = vpop.f32.mrf.mxu0  ;;  %v2113_v56 = vsub.s32 2, %v6441_v58 }
 0x287   :  { %v2054_v40 = vmax.f32 %v7227_v0, %v1797_v48  ;;  %v1908_v33 = vpop.f32.mrf.mxu1  ;;  %3295 = vmatprep.subr.bf16.mxu1 %v5534_v39  ;;  %v5538_v0 = vld [vmem:[%s8837_s5 + $0x218] ss:$24 sps:$4 sm:$0xff]  }
 0x288   :  { %v2158_v4 = vadd.f32 %v7253_v49, %v2096_v14  ;;  %v7460_v29 = vpop.f32.mrf.mxu0  ;;  %v7462_v57 = vpack.c.bf16 %v2157_v13, %v2154_v3  ;;  %v2098_v42 = vmax.f32 %v8889_v11, %v1908_v33  ;;  %v5547_v3 = vld [vmem:[%s8837_s5 + $0x1b8] ss:$24 sps:$4 sm:$0xff]   ;;  %v5552_v14 = vld [vmem:[%s8837_s5 + $0x18c] ss:$24 sps:$4 sm:$0xff]   ;;  %v7502_v33 = vrot.slane %v7236_v31, %v2113_v56 }
 0x289   :  { %v1910_v36 = vpop.f32.mrf.mxu1  ;;  %v8891_v11 = vld [vmem:[#allocation8_spill] sm:$0xff]  ;;  %v8893_v56 = vmov 0  }
 0x28a   :  { %v2099_v47 = vmax.f32 %v2054_v40, %v1910_v36  ;;  %3296 = vmatpush2.bf16.msra.mxu1 %v5532_v18  ;;  %v1801_v8 = vpop.f32.mrf.mxu0  ;;  %v7464_v28 = vpack.c.bf16 %v2158_v4, %v2155_v1  ;;  %v2160_v16 = vadd.f32 %v7248_v35, %v2098_v42  ;;  %v2013_v35 = vmax.f32 %v7083_v45, %v7239_v22  ;;  %v8890_v18 = vld [vmem:[#allocation7_spill] sm:$0xff]  ;;  %v5550_v22 = vld [vmem:[%s8837_s5 + $0x188] ss:$24 sps:$4 sm:$0xff]  }
 0x28b   :  { %v1912_v38 = vpop.f32.mrf.mxu1  ;;  %3297 = vmatprep.subr.bf16.mxu1 %v5540_v30  ;;  %v2016_v58 = vmax.f32 %v8890_v18, %v7255_v12  ;;  %v5558_v12 = vld [vmem:[%s8837_s5 + $0x164] ss:$24 sps:$4 sm:$0xff]   ;;  %v2019_v42 = vmax.f32 %v8891_v11, %v7264_v23 }
 0x28c   :  { %v2161_v5 = vadd.f32 %v7253_v49, %v2099_v47  ;;  %3143 = vmatprep.mubr.bf16.mxu1 %v7464_v28  ;;  %v1802_v6 = vpop.f32.mrf.mxu0  ;;  %v5549_v49 = vld [vmem:[%s8837_s5 + $0x1bc] ss:$24 sps:$4 sm:$0xff]   ;;  %v7494_v13 = vpack.c.bf16 %v2160_v16, %v2160_v16 }
 0x28d   :  { %v1913_v63 = vpop.f32.mrf.mxu1  ;;  %3144 = vmatmul.mubr.bf16.gmra.mxu1 %v7462_v57  ;;  %v5561_v6 = vld [vmem:[%s8837_s5 + $0x134] ss:$24 sps:$4 sm:$0xff]  }
 0x28e   :  { %v7478_v24 = vpack.c.bf16 %v2161_v5, %v2161_v5  ;;  %3298 = vmatpush2.bf16.msra.mxu1 %v5538_v0  ;;  %v5064_v15 = vpop.f32.mrf.mxu0  ;;  %v5553_v0 = vld [vmem:[%s8837_s5 + $0x458] ss:$24 sps:$4 sm:$0xff]   ;;  %v5564_v63 = vld [vmem:[%s8837_s5 + $0x42c] ss:$24 sps:$4 sm:$0xff]  }
 0x28f   :  { %3299 = vmatprep.subr.bf16.mxu1 %v5543_v21  ;;  %v5556_v21 = vld [vmem:[%s8837_s5 + $0x160] ss:$24 sps:$4 sm:$0xff]  }
 0x290   :  { %3153 = vmatprep.mubr.bf16.mxu1 %v7478_v24  ;;  %v5065_v39 = vpop.f32.mrf.mxu0 }
 0x291   :  { %v5066_v55 = vadd.f32 %v5065_v39, %v5064_v15  ;;  %v8892_v15 = vld [vmem:[#allocation9_spill] sm:$0xff] }
 0x292   :  { %3300 = vmatpush2.bf16.msra.mxu1 %v5541_v52  ;;  %v5067_v50 = vpop.f32.mrf.mxu0  ;;  %v2022_v52 = vmax.f32 %v8892_v15, %v7281_v2  ;;  %v5562_v39 = vld [vmem:[%s8837_s5 + $0x428] ss:$24 sps:$4 sm:$0xff]  }
 0x293   :  { %3301 = vmatprep.subr.bf16.mxu1 %v5549_v49  ;;  %v2058_v40 = vmax.f32 %v2013_v35, %v5066_v55  ;;  %v5559_v2 = vld [vmem:[%s8837_s5 + $0x130] ss:$24 sps:$4 sm:$0xff]   ;;  %v5567_v35 = vld [vmem:[%s8837_s5 + $0x104] ss:$24 sps:$4 sm:$0xff]  }
 0x294   :  { %v5068_v48 = vpop.f32.mrf.mxu0 }
 0x295   :  { %v5069_v30 = vadd.f32 %v5068_v48, %v5067_v50  ;;  %3154 = vmatmul.mubr.bf16.gmra.mxu1 %v7494_v13  ;;  %v2120_v31 = vadd.f32 %v7502_v33, %v2058_v40  ;;  %v5573_v50 = vld [vmem:[%s8837_s5 + $0x3fc] ss:$24 sps:$4 sm:$0xff]   ;;  %v8894_v40 = vld [vmem:[#allocation10_spill] sm:$0xff] }
 0x296   :  { %3302 = vmatpush2.bf16.msra.mxu1 %v5547_v3  ;;  %3305 = vmatprep.mubr.bf16.mxu1 %v7271_v41  ;;  %v5070_v45 = vpop.f32.mrf.mxu0 }
 0x297   :  { %v2061_v1 = vmax.f32 %v2016_v58, %v5069_v30  ;;  %3303 = vmatprep.subr.bf16.mxu1 %v5552_v14  ;;  %v2025_v30 = vmax.f32 %v8894_v40, %v7295_v34  ;;  %v5582_v34 = vld [vmem:[%s8837_s5 + $0x3cc] ss:$24 sps:$4 sm:$0xff]  }
 0x298   :  { %v5071_v4 = vpop.f32.mrf.mxu0 }
 0x299   :  { %v2123_v36 = vadd.f32 %v7502_v33, %v2061_v1  ;;  %v5072_v47 = vadd.f32 %v5071_v4, %v5070_v45  ;;  %v5565_v45 = vld [vmem:[%s8837_s5 + $0x100] ss:$24 sps:$4 sm:$0xff]   ;;  %v5570_v4 = vld [vmem:[%s8837_s5 + $0xd4] ss:$24 sps:$4 sm:$0xff]  }
 0x29a   :  { %3304 = vmatpush2.bf16.msra.mxu1 %v5550_v22  ;;  %v5073_v8 = vpop.f32.mrf.mxu0  ;;  %v5571_v1 = vld [vmem:[%s8837_s5 + $0x3f8] ss:$24 sps:$4 sm:$0xff]  }
 0x29b   :  { %v7519_v38 = vpack.c.bf16 %v2123_v36, %v2120_v31  ;;  %3495 = vmatprep.subr.bf16.mxu1 %v5558_v12  ;;  %v2064_v23 = vmax.f32 %v2019_v42, %v5072_v47  ;;  %v8895_v31 = vld [vmem:[#allocation11_spill] sm:$0xff] }
 0x29c   :  { %v5074_v5 = vpop.f32.mrf.mxu0  ;;  %v2028_v36 = vmax.f32 %v8895_v31, %v7314_v26  ;;  %v5568_v42 = vld [vmem:[%s8837_s5 + $0xd0] ss:$24 sps:$4 sm:$0xff]  }
 0x29d   :  { %v5075_v16 = vadd.f32 %v5074_v5, %v5073_v8  ;;  %3306 = vmatmul.mubr.bf16.vlgmr.msra.gmra.mxu1 %v7260_v53  ;;  %3195 = vmatmul.mubr.bf16.vlgmr.msra.gmra.mxu0 %v7519_v38  ;;  %v2126_v14 = vadd.f32 %v7502_v33, %v2064_v23  ;;  %v5580_v26 = vld [vmem:[%s8837_s5 + $0x3c8] ss:$24 sps:$4 sm:$0xff]   ;;  %v5576_v5 = vld [vmem:[%s8837_s5 + $0xa4] ss:$24 sps:$4 sm:$0xff]  }
 0x29e   :  { %3315 = vmatprep.mubr.bf16.mxu1 %v7304_v61  ;;  %3385 = vmatpush1.bf16.msra.mxu0 %v5553_v0  ;;  %v5076_v49 = vpop.f32.mrf.mxu0 }
 0x29f   :  { %v2067_v55 = vmax.f32 %v2022_v52, %v5075_v16  ;;  %3496 = vmatpush1.bf16.msra.mxu1 %v5556_v21  ;;  %3204 = vmatprep.mubr.bf16.mxu0 %v8893_v56  ;;  %v8896_v16 = vld [vmem:[#allocation12_spill] sm:$0xff] }
 0x2a0   :  { %v5077_v3 = vpop.f32.mrf.mxu0  ;;  %3497 = vmatprep.subr.bf16.mxu1 %v5561_v6  ;;  %3386 = vmatprep.subr.bf16.mxu0 %v5564_v63  ;;  %v5591_v6 = vld [vmem:[%s8837_s5 + $0x39c] ss:$24 sps:$4 sm:$0xff]  }
 0x2a1   :  { %v2129_v48 = vadd.f32 %v7502_v33, %v2067_v55  ;;  %v5078_v18 = vadd.f32 %v5077_v3, %v5076_v49  ;;  %v2031_v49 = vmax.f32 %v8896_v16, %v7328_v25  ;;  %v5579_v3 = vld [vmem:[%s8837_s5 + $0x74] ss:$24 sps:$4 sm:$0xff]   ;;  %v5586_v16 = vld [vmem:[%s8837_s5 + $0x10] ss:$24 sps:$4 sm:$0xff]  }
 0x2a2   :  { %v5079_v58 = vpop.f32.mrf.mxu0  ;;  %3387 = vmatpush1.bf16.msra.mxu0 %v5562_v39  ;;  %v5574_v39 = vld [vmem:[%s8837_s5 + $0xa0] ss:$24 sps:$4 sm:$0xff]   ;;  %v5600_v25 = vld [vmem:[%s8837_s5 + $0x36c] ss:$24 sps:$4 sm:$0xff]  }
 0x2a3   :  { %3498 = vmatpush1.bf16.msra.mxu1 %v5559_v2  ;;  %v7555_v22 = vpack.c.bf16 %v2129_v48, %v2126_v14  ;;  %3388 = vmatprep.subr.bf16.mxu0 %v5573_v50  ;;  %v2070_v47 = vmax.f32 %v2025_v30, %v5078_v18  ;;  %v5589_v2 = vld [vmem:[%s8837_s5 + $0x398] ss:$24 sps:$4 sm:$0xff]  }
 0x2a4   :  { %v5080_v12 = vpop.f32.mrf.mxu0  ;;  %3499 = vmatprep.subr.bf16.mxu1 %v5567_v35  ;;  %v8897_v35 = vld [vmem:[#allocation13_spill] sm:$0xff]  ;;  %v5577_v30 = vld [vmem:[%s8837_s5 + $0x70] ss:$24 sps:$4 sm:$0xff]  }
 0x2a5   :  { %v5081_v8 = vadd.f32 %v5080_v12, %v5079_v58  ;;  %3316 = vmatmul.mubr.bf16.gmra.mxu1 %v7297_v20  ;;  %3205 = vmatmul.mubr.bf16.gmra.mxu0 %v7555_v22  ;;  %v2132_v63 = vadd.f32 %v7502_v33, %v2070_v47  ;;  %v2034_v14 = vmax.f32 %v8897_v35, %v7347_v32  ;;  %v5598_v32 = vld [vmem:[%s8837_s5 + $0x368] ss:$24 sps:$4 sm:$0xff]   ;;  %v5609_v12 = vld [vmem:[%s8837_s5 + $0x33c] ss:$24 sps:$4 sm:$0xff]  }
 0x2a6   :  { %3325 = vmatprep.mubr.bf16.mxu1 %v7337_v60  ;;  %v5082_v0 = vpop.f32.mrf.mxu0  ;;  %3214 = vmatprep.mubr.bf16.mxu0 %v8893_v56  ;;  %v8898_v47 = vld [vmem:[#allocation14_spill] sm:$0xff] }
 0x2a7   :  { %v2073_v11 = vmax.f32 %v2028_v36, %v5081_v8  ;;  %3500 = vmatpush1.bf16.msra.mxu1 %v5565_v45  ;;  %3389 = vmatpush1.bf16.msra.mxu0 %v5571_v1  ;;  %v5585_v1 = vld [vmem:[%s8837_s5 + $0x44] ss:$24 sps:$4 sm:$0xff]   ;;  %v2037_v8 = vmax.f32 %v8898_v47, %v7361_v44 }
 0x2a8   :  { %v5083_v21 = vpop.f32.mrf.mxu0  ;;  %3501 = vmatprep.subr.bf16.mxu1 %v5570_v4  ;;  %3390 = vmatprep.subr.bf16.mxu0 %v5582_v34  ;;  %v5618_v44 = vld [vmem:[%s8837_s5 + $0x30c] ss:$24 sps:$4 sm:$0xff]  }
 0x2a9   :  { %v2135_v15 = vadd.f32 %v7502_v33, %v2073_v11  ;;  %v5084_v52 = vadd.f32 %v5083_v21, %v5082_v0  ;;  %v5583_v0 = vld [vmem:[%s8837_s5 + $0x40] ss:$24 sps:$4 sm:$0xff]   ;;  %v5588_v21 = vld [vmem:[%s8837_s5 + $0x14] ss:$24 sps:$4 sm:$0xff]  }
 0x2aa   :  { %v5085_v23 = vpop.f32.mrf.mxu0 }
 0x2ab   :  { %3502 = vmatpush1.bf16.msra.mxu1 %v5568_v42  ;;  %v7591_v55 = vpack.c.bf16 %v2135_v15, %v2132_v63  ;;  %3391 = vmatpush1.bf16.msra.mxu0 %v5580_v26  ;;  %v2076_v48 = vmax.f32 %v2031_v49, %v5084_v52  ;;  %v5607_v42 = vld [vmem:[%s8837_s5 + $0x338] ss:$24 sps:$4 sm:$0xff]  }
 0x2ac   :  { %v5086_v50 = vpop.f32.mrf.mxu0  ;;  %3503 = vmatprep.subr.bf16.mxu1 %v5576_v5  ;;  %3392 = vmatprep.subr.bf16.mxu0 %v5591_v6  ;;  %v8899_v5 = vld [vmem:[#allocation15_spill] sm:$0xff] }
 0x2ad   :  { %v5087_v18 = vadd.f32 %v5086_v50, %v5085_v23  ;;  %3326 = vmatmul.mubr.bf16.gmra.mxu1 %v7330_v59  ;;  %3215 = vmatmul.mubr.bf16.gmra.mxu0 %v7591_v55  ;;  %v2138_v4 = vadd.f32 %v7502_v33, %v2076_v48  ;;  %v2040_v6 = vmax.f32 %v8899_v5, %v7380_v7  ;;  %v5616_v7 = vld [vmem:[%s8837_s5 + $0x308] ss:$24 sps:$4 sm:$0xff]  }
 0x2ae   :  { %3335 = vmatprep.mubr.bf16.mxu1 %v7370_v37  ;;  %v5088_v58 = vpop.f32.mrf.mxu0  ;;  %3224 = vmatprep.mubr.bf16.mxu0 %v8893_v56 }
 0x2af   :  { %v2079_v40 = vmax.f32 %v2034_v14, %v5087_v18  ;;  %3504 = vmatpush1.bf16.msra.mxu1 %v5574_v39  ;;  %3393 = vmatpush1.bf16.msra.mxu0 %v5589_v2  ;;  %v5594_v39 = vld [vmem:[%s8837_s5 + $0x2e4] ss:$24 sps:$4 sm:$0xff]   ;;  %v5592_v18 = vld [vmem:[%s8837_s5 + $0x2e0] ss:$24 sps:$4 sm:$0xff]  }
 0x2b0   :  { %v5089_v45 = vpop.f32.mrf.mxu0  ;;  %3505 = vmatprep.subr.bf16.mxu1 %v5579_v3  ;;  %3394 = vmatprep.subr.bf16.mxu0 %v5600_v25  ;;  %v5627_v2 = vld [vmem:[%s8837_s5 + $0x464] ss:$24 sps:$4 sm:$0xff]  }
 0x2b1   :  { %v2141_v34 = vadd.f32 %v7502_v33, %v2079_v40  ;;  %v5090_v31 = vadd.f32 %v5089_v45, %v5088_v58  ;;  %v8900_v14 = vld [vmem:[#allocation16_spill] sm:$0xff] }
 0x2b2   :  { %v5091_v36 = vpop.f32.mrf.mxu0  ;;  %v2043_v48 = vmax.f32 %v8900_v14, %v7394_v43 }
 0x2b3   :  { %3506 = vmatpush1.bf16.msra.mxu1 %v5577_v30  ;;  %v7627_v11 = vpack.c.bf16 %v2141_v34, %v2138_v4  ;;  %3395 = vmatpush1.bf16.msra.mxu0 %v5598_v32  ;;  %v2082_v63 = vmax.f32 %v2037_v8, %v5090_v31  ;;  %v5597_v30 = vld [vmem:[%s8837_s5 + $0x2b4] ss:$24 sps:$4 sm:$0xff]   ;;  %v8901_v32 = vld [vmem:[#allocation17_spill] sm:$0xff]  ;;  %v5595_v34 = vld [vmem:[%s8837_s5 + $0x2b0] ss:$24 sps:$4 sm:$0xff]  }
 0x2b4   :  { %v5092_v26 = vpop.f32.mrf.mxu0  ;;  %3507 = vmatprep.subr.bf16.mxu1 %v5585_v1  ;;  %3396 = vmatprep.subr.bf16.mxu0 %v5609_v12  ;;  %v2046_v45 = vmax.f32 %v8901_v32, %v7413_v19  ;;  %v5603_v19 = vld [vmem:[%s8837_s5 + $0x284] ss:$24 sps:$4 sm:$0xff]   ;;  %v5613_v32 = vld [vmem:[%s8837_s5 + $0x1f0] ss:$24 sps:$4 sm:$0xff]  }
 0x2b5   :  { %v5093_v15 = vadd.f32 %v5092_v26, %v5091_v36  ;;  %3336 = vmatmul.mubr.bf16.gmra.mxu1 %v7363_v46  ;;  %3225 = vmatmul.mubr.bf16.gmra.mxu0 %v7627_v11  ;;  %v2144_v50 = vadd.f32 %v7502_v33, %v2082_v63  ;;  %v8903_v63 = vld [vmem:[#allocation19_spill] sm:$0xff] }
 0x2b6   :  { %3345 = vmatprep.mubr.bf16.mxu1 %v7403_v27  ;;  %v5094_v52 = vpop.f32.mrf.mxu0  ;;  %3234 = vmatprep.mubr.bf16.mxu0 %v8893_v56 }
 0x2b7   :  { %v2085_v23 = vmax.f32 %v2040_v6, %v5093_v15  ;;  %3508 = vmatpush1.bf16.msra.mxu1 %v5583_v0  ;;  %3397 = vmatpush1.bf16.msra.mxu0 %v5607_v42  ;;  %v8902_v42 = vld [vmem:[#allocation18_spill] sm:$0xff]  ;;  %v2052_v15 = vmax.f32 %v8903_v63, %v7446_v62  ;;  %v5612_v62 = vld [vmem:[%s8837_s5 + $0x224] ss:$24 sps:$4 sm:$0xff]  }
 0x2b8   :  { %v5095_v49 = vpop.f32.mrf.mxu0  ;;  %3509 = vmatprep.subr.bf16.mxu1 %v5588_v21  ;;  %3398 = vmatprep.subr.bf16.mxu0 %v5618_v44  ;;  %v2049_v26 = vmax.f32 %v8902_v42, %v7427_v54  ;;  %v5601_v21 = vld [vmem:[%s8837_s5 + $0x280] ss:$24 sps:$4 sm:$0xff]   ;;  %v5606_v6 = vld [vmem:[%s8837_s5 + $0x254] ss:$24 sps:$4 sm:$0xff]   ;;  %v5652_v42 = vld [vmem:[%s8839_s7 + $0x170] ss:$12 sps:$4 sm:$0xff]  }
 0x2b9   :  { %v2147_v3 = vadd.f32 %v7502_v33, %v2085_v23  ;;  %v5096_v25 = vadd.f32 %v5095_v49, %v5094_v52 }
 0x2ba   :  { %v5097_v35 = vpop.f32.mrf.mxu0 }
 0x2bb   :  { %3510 = vmatpush1.bf16.msra.mxu1 %v5586_v16  ;;  %v7663_v58 = vpack.c.bf16 %v2147_v3, %v2144_v50  ;;  %3399 = vmatpush1.bf16.msra.mxu0 %v5616_v7  ;;  %v2088_v1 = vmax.f32 %v2043_v48, %v5096_v25  ;;  %v5604_v7 = vld [vmem:[%s8837_s5 + $0x250] ss:$24 sps:$4 sm:$0xff]   ;;  %v5610_v48 = vld [vmem:[%s8837_s5 + $0x220] ss:$24 sps:$4 sm:$0xff]  }
 0x2bc   :  { %v5098_v40 = vpop.f32.mrf.mxu0  ;;  %3511 = vmatprep.subr.bf16.mxu1 %v5594_v39  ;;  %3606 = vmatprep.subr.bf16.mxu0 %v5627_v2  ;;  %v8904_v39 = vld [vmem:[#allocation20_spill] sm:$0xff] }
 0x2bd   :  { %v5099_v43 = vadd.f32 %v5098_v40, %v5097_v35  ;;  %3346 = vmatmul.mubr.bf16.gmra.mxu1 %v7396_v9  ;;  %3235 = vmatmul.mubr.bf16.gmra.mxu0 %v7663_v58  ;;  %v2150_v36 = vadd.f32 %v7502_v33, %v2088_v1  ;;  %v2055_v2 = vmax.f32 %v8904_v39, %v7460_v29  ;;  %v5615_v29 = vld [vmem:[%s8837_s5 + $0x1f4] ss:$24 sps:$4 sm:$0xff]  }
 0x2be   :  { %3355 = vmatprep.mubr.bf16.mxu1 %v7436_v17  ;;  %v5100_v12 = vpop.f32.mrf.mxu0  ;;  %3244 = vmatprep.mubr.bf16.mxu0 %v8893_v56 }
 0x2bf   :  { %v2091_v4 = vmax.f32 %v2046_v45, %v5099_v43  ;;  %3512 = vmatpush2.bf16.msra.mxu1 %v5592_v18  ;;  %v5621_v45 = vld [vmem:[%s8837_s5 + $0x1c4] ss:$24 sps:$4 sm:$0xff]   ;;  %v5619_v43 = vld [vmem:[%s8837_s5 + $0x1c0] ss:$24 sps:$4 sm:$0xff]  }
 0x2c0   :  { %v5101_v31 = vpop.f32.mrf.mxu0  ;;  %3513 = vmatprep.subr.bf16.mxu1 %v5597_v30 }
 0x2c1   :  { %v2153_v47 = vadd.f32 %v7502_v33, %v2091_v4  ;;  %v5102_v8 = vadd.f32 %v5101_v31, %v5100_v12  ;;  %v5622_v12 = vld [vmem:[%s8837_s5 + $0x190] ss:$24 sps:$4 sm:$0xff]   ;;  %v5625_v4 = vld [vmem:[%s8837_s5 + $0x460] ss:$24 sps:$4 sm:$0xff]   ;;  %v5633_v31 = vld [vmem:[%s8837_s5 + $0x404] ss:$24 sps:$4 sm:$0xff]  }
 0x2c2   :  { %v5103_v0 = vpop.f32.mrf.mxu0 }
 0x2c3   :  { %3514 = vmatpush2.bf16.msra.mxu1 %v5595_v34  ;;  %v7687_v44 = vpack.c.bf16 %v2153_v47, %v2150_v36  ;;  %v2094_v52 = vmax.f32 %v2049_v26, %v5102_v8  ;;  %v5630_v34 = vld [vmem:[%s8837_s5 + $0x434] ss:$24 sps:$4 sm:$0xff]   ;;  %v5639_v36 = vld [vmem:[%s8837_s5 + $0x3a4] ss:$24 sps:$4 sm:$0xff]   ;;  %v5637_v47 = vld [vmem:[%s8837_s5 + $0x3a0] ss:$24 sps:$4 sm:$0xff]  }
 0x2c4   :  { %v5104_v5 = vpop.f32.mrf.mxu0  ;;  %3515 = vmatprep.subr.bf16.mxu1 %v5603_v19  ;;  %v5631_v19 = vld [vmem:[%s8837_s5 + $0x400] ss:$24 sps:$4 sm:$0xff]   ;;  %v5645_v8 = vld [vmem:[%s8837_s5 + $0x344] ss:$24 sps:$4 sm:$0xff]  }
 0x2c5   :  { %v5105_v23 = vadd.f32 %v5104_v5, %v5103_v0  ;;  %3356 = vmatmul.mubr.bf16.gmra.mxu1 %v7429_v51  ;;  %3245 = vmatmul.mubr.bf16.gmra.mxu0 %v7687_v44  ;;  %v2156_v50 = vadd.f32 %v7502_v33, %v2094_v52  ;;  %v5643_v0 = vld [vmem:[%s8837_s5 + $0x340] ss:$24 sps:$4 sm:$0xff]   ;;  %v5654_v5 = vld [vmem:[%s8839_s7 + $0x90] ss:$12 sps:$4 sm:$0xff]  }
 0x2c6   :  { %3365 = vmatprep.mubr.bf16.mxu1 %v7464_v28  ;;  %v5106_v54 = vpop.f32.mrf.mxu0  ;;  %3254 = vmatprep.mubr.bf16.mxu0 %v8893_v56  ;;  %v5657_v52 = vld [vmem:[%s8839_s7 + $0x78] ss:$12 sps:$4 sm:$0xff]  }
 0x2c7   :  { %v2097_v16 = vmax.f32 %v2052_v15, %v5105_v23  ;;  %3516 = vmatpush2.bf16.msra.mxu1 %v5601_v21  ;;  %v5659_v23 = vld [vmem:[%s8839_s7 + $0x7c] ss:$12 sps:$4 sm:$0xff]  }
 0x2c8   :  { %v5107_v49 = vpop.f32.mrf.mxu0  ;;  %3517 = vmatprep.subr.bf16.mxu1 %v5606_v6  ;;  %v5656_v6 = vld [vmem:[%s8839_s7 + $0x94] ss:$12 sps:$4 sm:$0xff]  }
 0x2c9   :  { %v2159_v3 = vadd.f32 %v7502_v33, %v2097_v16  ;;  %v5108_v25 = vadd.f32 %v5107_v49, %v5106_v54  ;;  %v5660_v54 = vld [vmem:[%s8839_s7 + $0x158] ss:$12 sps:$4 sm:$0xff]   ;;  %v5662_v49 = vld [vmem:[%s8839_s7 + $0x60] ss:$12 sps:$4 sm:$0xff]  }
 0x2ca   :  { %v5109_v35 = vpop.f32.mrf.mxu0 }
 0x2cb   :  { %v2100_v14 = vmax.f32 %v2055_v2, %v5108_v25  ;;  %3518 = vmatpush2.bf16.msra.mxu1 %v5604_v7  ;;  %v7711_v18 = vpack.c.bf16 %v2159_v3, %v2156_v50  ;;  %v5665_v50 = vld [vmem:[%s8839_s7 + $0x48] ss:$12 sps:$4 sm:$0xff]   ;;  %v5667_v3 = vld [vmem:[%s8839_s7 + $0x4c] ss:$12 sps:$4 sm:$0xff]  }
 0x2cc   :  { %v5110_v40 = vpop.f32.mrf.mxu0  ;;  %3519 = vmatprep.subr.bf16.mxu1 %v5612_v62  ;;  %v5664_v62 = vld [vmem:[%s8839_s7 + $0x64] ss:$12 sps:$4 sm:$0xff]   ;;  %v5668_v25 = vld [vmem:[%s8839_s7 + $0x140] ss:$12 sps:$4 sm:$0xff]  }
 0x2cd   :  { %3366 = vmatmul.mubr.bf16.gmra.mxu1 %v7462_v57  ;;  %3255 = vmatmul.mubr.bf16.gmra.mxu0 %v7711_v18  ;;  %v2162_v30 = vadd.f32 %v7502_v33, %v2100_v14  ;;  %v5624_v33 = vld [vmem:[%s8837_s5 + $0x194] ss:$24 sps:$4 sm:$0xff]  }
 0x2ce   :  { %3375 = vmatprep.mubr.bf16.mxu1 %v7478_v24  ;;  %3264 = vmatprep.mubr.bf16.mxu0 %v8893_v56  ;;  %v5672_v40 = vld [vmem:[%s8839_s7 + $0x34] ss:$12 sps:$4 sm:$0xff]  }
 0x2cf   :  { %3520 = vmatpush2.bf16.msra.mxu1 %v5610_v48  ;;  %v7727_v1 = vpack.c.bf16 %v2162_v30, %v2162_v30  ;;  %v5670_v48 = vld [vmem:[%s8839_s7 + $0x30] ss:$12 sps:$4 sm:$0xff]  }
 0x2d0   :  { %3521 = vmatprep.subr.bf16.mxu1 %v5615_v29 }
 0x2d3   :  { %3522 = vmatpush2.bf16.msra.mxu1 %v5613_v32  ;;  %v5673_v32 = vld [vmem:[%s8839_s7 + $0x18] ss:$12 sps:$4 sm:$0xff]  }
 0x2d4   :  { %3523 = vmatprep.subr.bf16.mxu1 %v5621_v45  ;;  %v5675_v45 = vld [vmem:[%s8839_s7 + $0x1c] ss:$12 sps:$4 sm:$0xff]  }
 0x2d5   :  { %3376 = vmatmul.mubr.bf16.gmra.mxu1 %v7494_v13  ;;  %3265 = vmatmul.mubr.bf16.gmra.mxu0 %v7727_v1 }
 0x2d6   :  { %3527 = vmatprep.mubr.bf16.mxu1 %v7271_v41  ;;  %3416 = vmatprep.mubr.bf16.mxu0 %v8893_v56  ;;  %v5628_v41 = vld [vmem:[%s8837_s5 + $0x430] ss:$24 sps:$4 sm:$0xff]  }
 0x2d7   :  { %3524 = vmatpush2.bf16.msra.mxu1 %v5619_v43  ;;  %v5676_v43 = vld [vmem:[%s8839_s7 + $0x128] ss:$12 sps:$4 sm:$0xff]  }
 0x2d8   :  { %3525 = vmatprep.subr.bf16.mxu1 %v5624_v33 }
 0x2db   :  { %3526 = vmatpush2.bf16.msra.mxu1 %v5622_v12 }
 0x2dd   :  { %3417 = vmatmul.mubr.bf16.vlgmr.msra.gmra.mxu0 %v7519_v38 }
 0x2de   :  { %3528 = vmatmul.mubr.bf16.vlgmr.msra.gmra.mxu1 %v7260_v53  ;;  %3607 = vmatpush1.bf16.msra.mxu0 %v5625_v4  ;;  %v5636_v53 = vld [vmem:[%s8837_s5 + $0x3d4] ss:$24 sps:$4 sm:$0xff]  }
 0x2df   :  { %3537 = vmatprep.mubr.bf16.mxu1 %v7304_v61  ;;  %3426 = vmatprep.mubr.bf16.mxu0 %v8893_v56  ;;  %v5634_v61 = vld [vmem:[%s8837_s5 + $0x3d0] ss:$24 sps:$4 sm:$0xff]   ;;  %v5678_v4 = vld [vmem:[%s8839_s7] ss:$12 sps:$4 sm:$0xff]  }
 0x2e0   :  { %3608 = vmatprep.subr.bf16.mxu0 %v5630_v34  ;;  %v5680_v34 = vld [vmem:[%s8839_s7 + $0x4] ss:$12 sps:$4 sm:$0xff]  }
 0x2e2   :  { %3609 = vmatpush1.bf16.msra.mxu0 %v5628_v41 }
 0x2e3   :  { %3610 = vmatprep.subr.bf16.mxu0 %v5633_v31 }
 0x2e5   :  { %3427 = vmatmul.mubr.bf16.gmra.mxu0 %v7555_v22 }
 0x2e6   :  { %3538 = vmatmul.mubr.bf16.gmra.mxu1 %v7297_v20  ;;  %3436 = vmatprep.mubr.bf16.mxu0 %v8893_v56  ;;  %v5642_v20 = vld [vmem:[%s8837_s5 + $0x374] ss:$24 sps:$4 sm:$0xff]  }
 0x2e7   :  { %3547 = vmatprep.mubr.bf16.mxu1 %v7337_v60  ;;  %3611 = vmatpush1.bf16.msra.mxu0 %v5631_v19  ;;  %v5640_v60 = vld [vmem:[%s8837_s5 + $0x370] ss:$24 sps:$4 sm:$0xff]  }
 0x2e8   :  { %3612 = vmatprep.subr.bf16.mxu0 %v5636_v53  ;;  %v5681_v19 = vld [vmem:[%s8839_s7 + $0x168] ss:$12 sps:$4 sm:$0xff]   ;;  %v5683_v53 = vld [vmem:[%s8839_s7 + $0x16c] ss:$12 sps:$4 sm:$0xff]  }
 0x2eb   :  { %3613 = vmatpush1.bf16.msra.mxu0 %v5634_v61  ;;  %v5684_v61 = vld [vmem:[%s8839_s7 + $0x110] ss:$12 sps:$4 sm:$0xff]  }
 0x2ec   :  { %3614 = vmatprep.subr.bf16.mxu0 %v5639_v36 }
 0x2ed   :  { %3437 = vmatmul.mubr.bf16.gmra.mxu0 %v7591_v55 }
 0x2ee   :  { %3548 = vmatmul.mubr.bf16.gmra.mxu1 %v7330_v59  ;;  %3446 = vmatprep.mubr.bf16.mxu0 %v8893_v56  ;;  %v5648_v59 = vld [vmem:[%s8837_s5 + $0x314] ss:$24 sps:$4 sm:$0xff]  }
 0x2ef   :  { %3557 = vmatprep.mubr.bf16.mxu1 %v7370_v37  ;;  %3615 = vmatpush1.bf16.msra.mxu0 %v5637_v47  ;;  %v5646_v37 = vld [vmem:[%s8837_s5 + $0x310] ss:$24 sps:$4 sm:$0xff]  }
 0x2f0   :  { %3616 = vmatprep.subr.bf16.mxu0 %v5642_v20  ;;  %v5686_v47 = vld [vmem:[%s8839_s7 + $0x150] ss:$12 sps:$4 sm:$0xff]   ;;  %v5688_v20 = vld [vmem:[%s8839_s7 + $0x154] ss:$12 sps:$4 sm:$0xff]  }
 0x2f3   :  { %3617 = vmatpush1.bf16.msra.mxu0 %v5640_v60 }
 0x2f4   :  { %3618 = vmatprep.subr.bf16.mxu0 %v5645_v8 }
 0x2f5   :  { %3447 = vmatmul.mubr.bf16.gmra.mxu0 %v7627_v11 }
 0x2f6   :  { %3558 = vmatmul.mubr.bf16.gmra.mxu1 %v7363_v46  ;;  %3456 = vmatprep.mubr.bf16.mxu0 %v8893_v56 }
 0x2f7   :  { %3567 = vmatprep.mubr.bf16.mxu1 %v7403_v27  ;;  %3619 = vmatpush1.bf16.msra.mxu0 %v5643_v0  ;;  %v5689_v0 = vld [vmem:[%s8839_s7 + $0x138] ss:$12 sps:$4 sm:$0xff]  }
 0x2f8   :  { %3620 = vmatprep.subr.bf16.mxu0 %v5648_v59  ;;  %v5691_v59 = vld [vmem:[%s8839_s7 + $0x13c] ss:$12 sps:$4 sm:$0xff]  }
 0x2fb   :  { %3621 = vmatpush1.bf16.msra.mxu0 %v5646_v37  ;;  %v5692_v37 = vld [vmem:[%s8839_s7 + $0xf8] ss:$12 sps:$4 sm:$0xff]  }
 0x2fc   :  { %5112 = vmatprep.subr.bf16.mxu0 %v5652_v42  ;;  %v5694_v42 = vld [vmem:[%s8839_s7 + $0x120] ss:$12 sps:$4 sm:$0xff]  }
 0x2fd   :  { %3457 = vmatmul.mubr.bf16.gmra.mxu0 %v7663_v58 }
 0x2fe   :  { %3568 = vmatmul.mubr.bf16.gmra.mxu1 %v7396_v9  ;;  %3466 = vmatprep.mubr.bf16.mxu0 %v8893_v56 }
 0x2ff   :  { %3577 = vmatprep.mubr.bf16.mxu1 %v7436_v17 }
 0x305   :  { %3467 = vmatmul.mubr.bf16.gmra.mxu0 %v7687_v44 }
 0x306   :  { %3578 = vmatmul.mubr.bf16.gmra.mxu1 %v7429_v51  ;;  %3476 = vmatprep.mubr.bf16.mxu0 %v8893_v56 }
 0x307   :  { %3587 = vmatprep.mubr.bf16.mxu1 %v7464_v28 }
 0x30d   :  { %3477 = vmatmul.mubr.bf16.gmra.mxu0 %v7711_v18 }
 0x30e   :  { %3588 = vmatmul.mubr.bf16.gmra.mxu1 %v7462_v57  ;;  %3486 = vmatprep.mubr.bf16.mxu0 %v8893_v56 }
 0x30f   :  { %3597 = vmatprep.mubr.bf16.mxu1 %v7478_v24 }
 0x315   :  { %3487 = vmatmul.mubr.bf16.gmra.mxu0 %v7727_v1 }
 0x316   :  { %3598 = vmatmul.mubr.bf16.gmra.mxu1 %v7494_v13  ;;  %3638 = vmatprep.mubr.bf16.mxu0 %v8893_v56 }
 0x31d   :  { %v7818_v46 = vpop.f32.mrf.mxu1  ;;  %3639 = vmatmul.mubr.bf16.vlgmr.msra.gmra.mxu0 %v7519_v38  ;;  %v5649_v38 = vld [vmem:[%s8839_s7 + $0xa8] ss:$12 sps:$4 sm:$0xff]  }
 0x31e   :  { %3648 = vmatprep.mubr.bf16.mxu0 %v8893_v56 }
 0x31f   :  { %v7822_v9 = vpop.f32.mrf.mxu1 }
 0x321   :  { %v7824_v27 = vpop.f32.mrf.mxu1 }
 0x323   :  { %v7826_v51 = vpop.f32.mrf.mxu1 }
 0x324   :  { %8905 = vst [vmem:[#allocation7_spill] sm:$0xff] %v7826_v51 }
 0x325   :  { %v7828_v17 = vpop.f32.mrf.mxu1  ;;  %3649 = vmatmul.mubr.bf16.gmra.mxu0 %v7555_v22  ;;  %v5651_v22 = vld [vmem:[%s8839_s7 + $0xac] ss:$12 sps:$4 sm:$0xff]  }
 0x326   :  { %3658 = vmatprep.mubr.bf16.mxu0 %v8893_v56  ;;  %4155 = vmatprep.subr.bf16.mxu1 %v5651_v22 }
 0x327   :  { %v7832_v57 = vpop.f32.mrf.mxu1  ;;  %4156 = vmatpush1.bf16.msra.mxu1 %v5649_v38 }
 0x328   :  { %4157 = vmatprep.subr.bf16.mxu1 %v5656_v6  ;;  %v5699_v6 = vld [vmem:[%s8839_s7 + $0x10c] ss:$12 sps:$4 sm:$0xff]  }
 0x329   :  { %v7834_v28 = vpop.f32.mrf.mxu1 }
 0x32b   :  { %v7836_v24 = vpop.f32.mrf.mxu1  ;;  %4158 = vmatpush1.bf16.msra.mxu1 %v5654_v5 }
 0x32c   :  { %8906 = vst [vmem:[#allocation8_spill] sm:$0xff] %v7836_v24  ;;  %4159 = vmatprep.subr.bf16.mxu1 %v5659_v23 }
 0x32d   :  { %v7838_v13 = vpop.f32.mrf.mxu1  ;;  %3659 = vmatmul.mubr.bf16.gmra.mxu0 %v7591_v55  ;;  %v5653_v55 = vld [vmem:[%s8839_s7 + $0xb0] ss:$12 sps:$4 sm:$0xff]  }
 0x32e   :  { %3668 = vmatprep.mubr.bf16.mxu0 %v8893_v56  ;;  %5113 = vmatpush3.bf16.msra.mxu0 %v5653_v55  ;;  %v5696_v55 = vld [vmem:[%s8839_s7 + $0x124] ss:$12 sps:$4 sm:$0xff]  }
 0x32f   :  { %v7851_v26 = vpop.f32.mrf.mxu1  ;;  %5114 = vmatprep.subr.bf16.mxu0 %v5660_v54  ;;  %4160 = vmatpush1.bf16.msra.mxu1 %v5657_v52  ;;  %v5700_v52 = vld [vmem:[%s8839_s7 + $0xe0] ss:$12 sps:$4 sm:$0xff]  }
 0x330   :  { %4161 = vmatprep.subr.bf16.mxu1 %v5664_v62 }
 0x331   :  { %v7856_v21 = vpop.f32.mrf.mxu1 }
 0x333   :  { %v7864_v63 = vpop.f32.mrf.mxu1  ;;  %4162 = vmatpush1.bf16.msra.mxu1 %v5662_v49 }
 0x334   :  { %8907 = vst [vmem:[#allocation9_spill] sm:$0xff] %v7864_v63  ;;  %4163 = vmatprep.subr.bf16.mxu1 %v5667_v3 }
 0x335   :  { %v7866_v15 = vpop.f32.mrf.mxu1  ;;  %3669 = vmatmul.mubr.bf16.gmra.mxu0 %v7627_v11  ;;  %v5661_v11 = vld [vmem:[%s8839_s7 + $0x98] ss:$12 sps:$4 sm:$0xff]  }
 0x336   :  { %3678 = vmatprep.mubr.bf16.mxu0 %v8893_v56  ;;  %5115 = vmatpush3.bf16.msra.mxu0 %v5661_v11  ;;  %v5697_v11 = vld [vmem:[%s8839_s7 + $0x108] ss:$12 sps:$4 sm:$0xff]  }
 0x337   :  { %v7879_v16 = vpop.f32.mrf.mxu1  ;;  %5116 = vmatprep.subr.bf16.mxu0 %v5668_v25  ;;  %4164 = vmatpush1.bf16.msra.mxu1 %v5665_v50 }
 0x338   :  { %4165 = vmatprep.subr.bf16.mxu1 %v5672_v40 }
 0x339   :  { %v7884_v7 = vpop.f32.mrf.mxu1 }
 0x33b   :  { %v7892_v39 = vpop.f32.mrf.mxu1  ;;  %4166 = vmatpush1.bf16.msra.mxu1 %v5670_v48 }
 0x33c   :  { %8908 = vst [vmem:[#allocation10_spill] sm:$0xff] %v7892_v39  ;;  %4167 = vmatprep.subr.bf16.mxu1 %v5675_v45  ;;  %v5704_v45 = vld [vmem:[%s8839_s7 + $0xf4] ss:$12 sps:$4 sm:$0xff]  }
 0x33d   :  { %v7894_v2 = vpop.f32.mrf.mxu1  ;;  %3679 = vmatmul.mubr.bf16.gmra.mxu0 %v7663_v58  ;;  %v5669_v58 = vld [vmem:[%s8839_s7 + $0x80] ss:$12 sps:$4 sm:$0xff]  }
 0x33e   :  { %3688 = vmatprep.mubr.bf16.mxu0 %v8893_v56  ;;  %5117 = vmatpush3.bf16.msra.mxu0 %v5669_v58 }
 0x33f   :  { %v7907_v35 = vpop.f32.mrf.mxu1  ;;  %5118 = vmatprep.subr.bf16.mxu0 %v5676_v43  ;;  %4168 = vmatpush1.bf16.msra.mxu1 %v5673_v32 }
 0x340   :  { %4169 = vmatprep.subr.bf16.mxu1 %v5680_v34 }
 0x341   :  { %v7912_v14 = vpop.f32.mrf.mxu1 }
 0x343   :  { %v7920_v29 = vpop.f32.mrf.mxu1  ;;  %4170 = vmatpush1.bf16.msra.mxu1 %v5678_v4 }
 0x344   :  { %4171 = vmatprep.subr.bf16.mxu1 %v5683_v53  ;;  %v5705_v53 = vld [vmem:[%s8839_s7 + $0xd8] ss:$12 sps:$4 sm:$0xff]  }
 0x345   :  { %v7922_v30 = vpop.f32.mrf.mxu1  ;;  %3689 = vmatmul.mubr.bf16.gmra.mxu0 %v7687_v44  ;;  %v5677_v44 = vld [vmem:[%s8839_s7 + $0x68] ss:$12 sps:$4 sm:$0xff]  }
 0x346   :  { %3698 = vmatprep.mubr.bf16.mxu0 %v8893_v56  ;;  %5119 = vmatpush3.bf16.msra.mxu0 %v5677_v44 }
 0x347   :  { %v7935_v33 = vpop.f32.mrf.mxu1  ;;  %5120 = vmatprep.subr.bf16.mxu0 %v5684_v61  ;;  %4172 = vmatpush2.bf16.msra.mxu1 %v5681_v19  ;;  %v5707_v61 = vld [vmem:[%s8839_s7 + $0xdc] ss:$12 sps:$4 sm:$0xff]  }
 0x348   :  { %4173 = vmatprep.subr.bf16.mxu1 %v5688_v20 }
 0x349   :  { %v7940_v12 = vpop.f32.mrf.mxu1 }
 0x34b   :  { %v7948_v41 = vpop.f32.mrf.mxu1  ;;  %4174 = vmatpush2.bf16.msra.mxu1 %v5686_v47 }
 0x34c   :  { %4175 = vmatprep.subr.bf16.mxu1 %v5691_v59 }
 0x34d   :  { %v7950_v31 = vpop.f32.mrf.mxu1  ;;  %3699 = vmatmul.mubr.bf16.gmra.mxu0 %v7711_v18 }
 0x34e   :  { %3708 = vmatprep.mubr.bf16.mxu0 %v8893_v56  ;;  %v5685_v56 = vld [vmem:[%s8839_s7 + $0x50] ss:$12 sps:$4 sm:$0xff]  }
 0x34f   :  { %v7963_v36 = vpop.f32.mrf.mxu1  ;;  %5121 = vmatpush3.bf16.msra.mxu0 %v5685_v56  ;;  %4176 = vmatpush2.bf16.msra.mxu1 %v5689_v0 }
 0x350   :  { %5122 = vmatprep.subr.bf16.mxu0 %v5692_v37  ;;  %4177 = vmatprep.subr.bf16.mxu1 %v5696_v55  ;;  %v5710_v37 = vld [vmem:[%s8839_s7 + $0xc0] ss:$12 sps:$4 sm:$0xff]  }
 0x351   :  { %v7968_v18 = vpop.f32.mrf.mxu1 }
 0x353   :  { %v7976_v60 = vpop.f32.mrf.mxu1  ;;  %4178 = vmatpush2.bf16.msra.mxu1 %v5694_v42 }
 0x354   :  { %4179 = vmatprep.subr.bf16.mxu1 %v5699_v6 }
 0x355   :  { %v7978_v8 = vpop.f32.mrf.mxu1  ;;  %3709 = vmatmul.mubr.bf16.gmra.mxu0 %v7727_v1  ;;  %v5693_v1 = vld [vmem:[%s8839_s7 + $0x38] ss:$12 sps:$4 sm:$0xff]  }
 0x356   :  { %5123 = vmatpush3.bf16.msra.mxu0 %v5693_v1 }
 0x357   :  { %v7990_v38 = vpop.f32.mrf.mxu1  ;;  %5124 = vmatprep.subr.bf16.mxu0 %v5700_v52  ;;  %4180 = vmatpush2.bf16.msra.mxu1 %v5697_v11 }
 0x358   :  { %4181 = vmatprep.subr.bf16.mxu1 %v5704_v45 }
 0x359   :  { %v3159_v22 = vpop.f32.mrf.mxu1 }
 0x35b   :  { %v3160_v5 = vpop.f32.mrf.mxu1 }
 0x35d   :  { %v8007_v23 = vpop.f32.mrf.mxu1  ;;  %v3196_v54 = vpop.f32.mrf.mxu0 }
 0x35e   :  { %v8013_v49 = vadd.f32 %v3196_v54, %v7818_v46  ;;  %v5701_v46 = vld [vmem:[%s8839_s7 + $0x20] ss:$12 sps:$4 sm:$0xff]  }
 0x35f   :  { %v8015_v62 = vpop.f32.mrf.mxu1  ;;  %v3198_v50 = vpop.f32.mrf.mxu0  ;;  %5125 = vmatpush3.bf16.msra.mxu0 %v5701_v46 }
 0x360   :  { %v8018_v3 = vadd.f32 %v3198_v50, %v7822_v9  ;;  %v5702_v9 = vld [vmem:[%s8839_s7 + $0xf0] ss:$12 sps:$4 sm:$0xff]  }
 0x361   :  { %v8020_v25 = vpop.f32.mrf.mxu1  ;;  %v3200_v58 = vpop.f32.mrf.mxu0  ;;  %4182 = vmatpush2.bf16.msra.mxu1 %v5702_v9 }
 0x362   :  { %v8023_v48 = vadd.f32 %v3200_v58, %v7824_v27  ;;  %4183 = vmatprep.subr.bf16.mxu1 %v5707_v61 }
 0x363   :  { %v8028_v40 = vpop.f32.mrf.mxu1  ;;  %v8030_v32 = vpop.f32.mrf.mxu0 }
 0x364   :  { %8909 = vst [vmem:[#allocation11_spill] sm:$0xff] %v8023_v48  ;;  %8910 = vst [vmem:[#allocation12_spill] sm:$0xff] %v8028_v40 }
 0x365   :  { %8911 = vst [vmem:[#allocation13_spill] sm:$0xff] %v8030_v32  ;;  %v8038_v43 = vpop.f32.mrf.mxu1  ;;  %v3206_v27 = vpop.f32.mrf.mxu0  ;;  %4184 = vmatpush2.bf16.msra.mxu1 %v5705_v53 }
 0x366   :  { %v8041_v44 = vadd.f32 %v3206_v27, %v7828_v17  ;;  %v5708_v17 = vld [vmem:[%s8839_s7 + $0xc8] ss:$12 sps:$4 sm:$0xff]  }
 0x367   :  { %v8043_v4 = vpop.f32.mrf.mxu1  ;;  %v3208_v34 = vpop.f32.mrf.mxu0  ;;  %5126 = vmatprep.subr.bf16.mxu0 %v5708_v17 }
 0x368   :  { %v8046_v19 = vadd.f32 %v3208_v34, %v7832_v57  ;;  %v5709_v57 = vld [vmem:[%s8839_s7 + $0x8] ss:$12 sps:$4 sm:$0xff]  }
 0x369   :  { %v8057_v56 = vpop.f32.mrf.mxu1  ;;  %v3210_v47 = vpop.f32.mrf.mxu0  ;;  %5127 = vmatpush3.bf16.msra.mxu0 %v5709_v57 }
 0x36a   :  { %v8060_v20 = vadd.f32 %v3210_v47, %v7834_v28  ;;  %v5712_v28 = vld [vmem:[%s8839_s7 + $0xc4] ss:$12 sps:$4 sm:$0xff]  }
 0x36b   :  { %v8065_v0 = vpop.f32.mrf.mxu1  ;;  %v8067_v59 = vpop.f32.mrf.mxu0  ;;  %4185 = vmatprep.subr.bf16.mxu1 %v5712_v28 }
 0x36c   :  { %8912 = vst [vmem:[#allocation14_spill] sm:$0xff] %v8065_v0  ;;  %8913 = vst [vmem:[#allocation15_spill] sm:$0xff] %v8067_v59  ;;  %4186 = vmatpush2.bf16.msra.mxu1 %v5710_v37 }
 0x36d   :  { %v8075_v1 = vpop.f32.mrf.mxu1  ;;  %v3216_v22 = vpop.f32.mrf.mxu0 }
 0x36e   :  { %v8078_v42 = vadd.f32 %v3216_v22, %v7838_v13 }
 0x36f   :  { %v8080_v55 = vpop.f32.mrf.mxu1  ;;  %v3218_v5 = vpop.f32.mrf.mxu0 }
 0x370   :  { %v8083_v6 = vadd.f32 %v3218_v5, %v7851_v26 }
 0x371   :  { %v8085_v52 = vpop.f32.mrf.mxu1  ;;  %v3220_v54 = vpop.f32.mrf.mxu0 }
 0x372   :  { %v8088_v11 = vadd.f32 %v3220_v54, %v7856_v21 }
 0x373   :  { %v8090_v50 = vpop.f32.mrf.mxu1  ;;  %v8092_v58 = vpop.f32.mrf.mxu0 }
 0x374   :  { %8914 = vst [vmem:[#allocation16_spill] sm:$0xff] %v8090_v50  ;;  %8915 = vst [vmem:[#allocation17_spill] sm:$0xff] %v8092_v58 }
 0x375   :  { %v8094_v13 = vpop.f32.mrf.mxu1  ;;  %v3226_v46 = vpop.f32.mrf.mxu0 }
 0x376   :  { %v8097_v9 = vadd.f32 %v3226_v46, %v7866_v15 }
 0x377   :  { %v8099_v45 = vpop.f32.mrf.mxu1  ;;  %v3228_v26 = vpop.f32.mrf.mxu0 }
 0x378   :  { %v8102_v27 = vadd.f32 %v3228_v26, %v7879_v16 }
 0x379   :  { %v8104_v34 = vpop.f32.mrf.mxu1  ;;  %v3230_v21 = vpop.f32.mrf.mxu0 }
 0x37a   :  { %v8107_v53 = vadd.f32 %v3230_v21, %v7884_v7 }
 0x37b   :  { %v8109_v61 = vpop.f32.mrf.mxu1  ;;  %v8111_v17 = vpop.f32.mrf.mxu0 }
 0x37c   :  { %8916 = vst [vmem:[#allocation18_spill] sm:$0xff] %v8109_v61  ;;  %8917 = vst [vmem:[#allocation19_spill] sm:$0xff] %v8111_v17 }
 0x37d   :  { %v8113_v47 = vpop.f32.mrf.mxu1  ;;  %v3236_v15 = vpop.f32.mrf.mxu0 }
 0x37e   :  { %v8116_v57 = vadd.f32 %v3236_v15, %v7894_v2 }
 0x37f   :  { %v8118_v37 = vpop.f32.mrf.mxu1  ;;  %v3238_v16 = vpop.f32.mrf.mxu0 }
 0x380   :  { %v8121_v28 = vadd.f32 %v3238_v16, %v7907_v35 }
 0x381   :  { %v8123_v22 = vpop.f32.mrf.mxu1  ;;  %v3240_v7 = vpop.f32.mrf.mxu0 }
 0x382   :  { %v8126_v5 = vadd.f32 %v3240_v7, %v7912_v14 }
 0x383   :  { %v8128_v54 = vpop.f32.mrf.mxu1  ;;  %v8130_v46 = vpop.f32.mrf.mxu0 }
 0x385   :  { %v8132_v26 = vpop.f32.mrf.mxu1  ;;  %v3246_v2 = vpop.f32.mrf.mxu0 }
 0x386   :  { %v8135_v21 = vadd.f32 %v3246_v2, %v7922_v30 }
 0x387   :  { %v8137_v15 = vpop.f32.mrf.mxu1  ;;  %v3248_v35 = vpop.f32.mrf.mxu0 }
 0x388   :  { %v8140_v16 = vadd.f32 %v3248_v35, %v7935_v33 }
 0x389   :  { %v8142_v17 = vpop.f32.mrf.mxu1  ;;  %v3250_v14 = vpop.f32.mrf.mxu0 }
 0x38a   :  { %v8145_v7 = vadd.f32 %v3250_v14, %v7940_v12 }
 0x38b   :  { %v8147_v39 = vpop.f32.mrf.mxu1  ;;  %v8149_v61 = vpop.f32.mrf.mxu0 }
 0x38d   :  { %v8151_v58 = vpop.f32.mrf.mxu1  ;;  %v3256_v30 = vpop.f32.mrf.mxu0 }
 0x38e   :  { %v8154_v2 = vadd.f32 %v3256_v30, %v7950_v31 }
 0x38f   :  { %v8156_v63 = vpop.f32.mrf.mxu1  ;;  %v3258_v33 = vpop.f32.mrf.mxu0 }
 0x390   :  { %8918 = vst [vmem:[#allocation20_spill] sm:$0xff] %v8154_v2  ;;  %v8159_v35 = vadd.f32 %v3258_v33, %v7963_v36 }
 0x391   :  { %v8161_v50 = vpop.f32.mrf.mxu1  ;;  %v3260_v12 = vpop.f32.mrf.mxu0 }
 0x392   :  { %v8164_v14 = vadd.f32 %v3260_v12, %v7968_v18 }
 0x393   :  { %v8166_v59 = vpop.f32.mrf.mxu1  ;;  %v8168_v24 = vpop.f32.mrf.mxu0 }
 0x394   :  { %8919 = vst [vmem:[#allocation21_spill] sm:$0xff] %v8164_v14  ;;  %8920 = vst [vmem:[#allocation22_spill] sm:$0xff] %v8166_v59 }
 0x395   :  { %v8170_v0 = vpop.f32.mrf.mxu1  ;;  %v3266_v31 = vpop.f32.mrf.mxu0 }
 0x396   :  { %8921 = vst [vmem:[#allocation23_spill] sm:$0xff] %v8170_v0  ;;  %v8173_v30 = vadd.f32 %v3266_v31, %v7978_v8  ;;  %v8205_v8 = vld [vmem:[#allocation2 + $0x38] sm:$0xff]  }
 0x397   :  { %v8175_v10 = vpop.f32.mrf.mxu1  ;;  %v3268_v36 = vpop.f32.mrf.mxu0  ;;  %8927 = vst [vmem:[#allocation29_spill] sm:$0xff] %v8205_v8  ;;  %5192 = vmatprep.subr.bf16.mxu1 %v8205_v8 }
 0x398   :  { %8922 = vst [vmem:[#allocation24_spill] sm:$0xff] %v8173_v30  ;;  %8923 = vst [vmem:[#allocation25_spill] sm:$0xff] %v8175_v10  ;;  %v8178_v33 = vadd.f32 %v3268_v36, %v7990_v38 }
 0x399   :  { %v3381_v32 = vpop.f32.mrf.mxu1  ;;  %v3270_v51 = vpop.f32.mrf.mxu0 }
 0x39a   :  { %8924 = vst [vmem:[#allocation26_spill] sm:$0xff] %v8178_v33 }
 0x39b   :  { %v3382_v18 = vpop.f32.mrf.mxu1  ;;  %v3271_v12 = vpop.f32.mrf.mxu0 }
 0x39d   :  { %v3418_v40 = vpop.f32.mrf.mxu0 }
 0x39e   :  { %v8180_v59 = vpop.f32.mrf.mxu1  ;;  %v8183_v14 = vadd.f32 %v3418_v40, %v8007_v23 }
 0x39f   :  { %v3420_v0 = vpop.f32.mrf.mxu0 }
 0x3a0   :  { %v8187_v31 = vpop.f32.mrf.mxu1  ;;  %v8190_v10 = vadd.f32 %v3420_v0, %v8015_v62 }
 0x3a1   :  { %v3422_v38 = vpop.f32.mrf.mxu0 }
 0x3a2   :  { %v8194_v32 = vpop.f32.mrf.mxu1  ;;  %v8197_v36 = vadd.f32 %v3422_v38, %v8020_v25 }
 0x3a3   :  { %v8199_v23 = vpop.f32.mrf.mxu0 }
 0x3a4   :  { %8925 = vst [vmem:[#allocation27_spill] sm:$0xff] %v8197_v36  ;;  %v8203_v18 = vpop.f32.mrf.mxu1 }
 0x3a5   :  { %8926 = vst [vmem:[#allocation28_spill] sm:$0xff] %v8203_v18  ;;  %v3428_v12 = vpop.f32.mrf.mxu0 }
 0x3a6   :  { %v8207_v62 = vpop.f32.mrf.mxu1  ;;  %v8210_v0 = vadd.f32 %v3428_v12, %v8038_v43 }
 0x3a7   :  { %v3430_v51 = vpop.f32.mrf.mxu0 }
 0x3a8   :  { %8928 = vst [vmem:[#allocation30_spill] sm:$0xff] %v8210_v0  ;;  %v8215_v38 = vpop.f32.mrf.mxu1  ;;  %v8218_v40 = vadd.f32 %v3430_v51, %v8043_v4 }
 0x3a9   :  { %8929 = vst [vmem:[#allocation31_spill] sm:$0xff] %v8215_v38  ;;  %v3432_v18 = vpop.f32.mrf.mxu0 }
 0x3aa   :  { %v8222_v48 = vpop.f32.mrf.mxu1  ;;  %v8225_v43 = vadd.f32 %v3432_v18, %v8057_v56 }
 0x3ab   :  { %8930 = vst [vmem:[#allocation32_spill] sm:$0xff] %v8222_v48  ;;  %v8227_v12 = vpop.f32.mrf.mxu0 }
 0x3ac   :  { %v8231_v25 = vpop.f32.mrf.mxu1 }
 0x3ad   :  { %8931 = vst [vmem:[#allocation33_spill] sm:$0xff] %v8231_v25  ;;  %v3438_v38 = vpop.f32.mrf.mxu0 }
 0x3ae   :  { %v8233_v0 = vpop.f32.mrf.mxu1  ;;  %v8236_v4 = vadd.f32 %v3438_v38, %v8075_v1 }
 0x3af   :  { %8932 = vst [vmem:[#allocation34_spill] sm:$0xff] %v8233_v0  ;;  %v3440_v51 = vpop.f32.mrf.mxu0 }
 0x3b0   :  { %8933 = vst [vmem:[#allocation35_spill] sm:$0xff] %v8236_v4  ;;  %v8240_v48 = vpop.f32.mrf.mxu1  ;;  %v8243_v56 = vadd.f32 %v3440_v51, %v8080_v55 }
 0x3b1   :  { %8934 = vst [vmem:[#allocation36_spill] sm:$0xff] %v8240_v48  ;;  %v3442_v18 = vpop.f32.mrf.mxu0 }
 0x3b2   :  { %v8247_v25 = vpop.f32.mrf.mxu1  ;;  %v8250_v0 = vadd.f32 %v3442_v18, %v8085_v52 }
 0x3b3   :  { %8935 = vst [vmem:[#allocation37_spill] sm:$0xff] %v8247_v25  ;;  %v8252_v1 = vpop.f32.mrf.mxu0 }
 0x3b4   :  { %v8256_v36 = vpop.f32.mrf.mxu1 }
 0x3b5   :  { %8936 = vst [vmem:[#allocation38_spill] sm:$0xff] %v8256_v36  ;;  %v3448_v48 = vpop.f32.mrf.mxu0 }
 0x3b6   :  { %v8258_v4 = vpop.f32.mrf.mxu1  ;;  %v8261_v55 = vadd.f32 %v3448_v48, %v8094_v13 }
 0x3b7   :  { %8937 = vst [vmem:[#allocation39_spill] sm:$0xff] %v8258_v4  ;;  %v3450_v51 = vpop.f32.mrf.mxu0 }
 0x3b8   :  { %8938 = vst [vmem:[#allocation40_spill] sm:$0xff] %v8261_v55  ;;  %v8265_v25 = vpop.f32.mrf.mxu1  ;;  %v8268_v52 = vadd.f32 %v3450_v51, %v8099_v45 }
 0x3b9   :  { %8939 = vst [vmem:[#allocation41_spill] sm:$0xff] %v8265_v25  ;;  %v3452_v18 = vpop.f32.mrf.mxu0 }
 0x3ba   :  { %v8272_v36 = vpop.f32.mrf.mxu1  ;;  %v8275_v4 = vadd.f32 %v3452_v18, %v8104_v34 }
 0x3bb   :  { %8940 = vst [vmem:[#allocation42_spill] sm:$0xff] %v8272_v36  ;;  %v8277_v48 = vpop.f32.mrf.mxu0 }
 0x3bc   :  { %v8281_v8 = vpop.f32.mrf.mxu1 }
 0x3bd   :  { %8941 = vst [vmem:[#allocation43_spill] sm:$0xff] %v8281_v8  ;;  %v3458_v25 = vpop.f32.mrf.mxu0 }
 0x3be   :  { %v8283_v55 = vpop.f32.mrf.mxu1  ;;  %v8286_v45 = vadd.f32 %v3458_v25, %v8113_v47  ;;  %v8304_v25 = vadd.f32 %v8130_v46, %v7920_v29 }
 0x3bf   :  { %8942 = vst [vmem:[#allocation44_spill] sm:$0xff] %v8283_v55  ;;  %v3460_v51 = vpop.f32.mrf.mxu0 }
 0x3c0   :  { %v8290_v36 = vpop.f32.mrf.mxu1  ;;  %v8293_v34 = vadd.f32 %v3460_v51, %v8118_v37 }
 0x3c1   :  { %8943 = vst [vmem:[#allocation45_spill] sm:$0xff] %v8290_v36  ;;  %v3462_v18 = vpop.f32.mrf.mxu0 }
 0x3c2   :  { %v8297_v8 = vpop.f32.mrf.mxu1  ;;  %v8300_v55 = vadd.f32 %v3462_v18, %v8123_v22 }
 0x3c3   :  { %8944 = vst [vmem:[#allocation46_spill] sm:$0xff] %v8297_v8  ;;  %v3464_v47 = vpop.f32.mrf.mxu0 }
 0x3c4   :  { %v8308_v36 = vpop.f32.mrf.mxu1  ;;  %v8311_v37 = vadd.f32 %v3464_v47, %v8128_v54 }
 0x3c5   :  { %8945 = vst [vmem:[#allocation47_spill] sm:$0xff] %v8308_v36  ;;  %v3468_v51 = vpop.f32.mrf.mxu0 }
 0x3c6   :  { %v8315_v8 = vpop.f32.mrf.mxu1  ;;  %v8318_v22 = vadd.f32 %v3468_v51, %v8132_v26  ;;  %v8336_v51 = vadd.f32 %v8149_v61, %v7948_v41 }
 0x3c7   :  { %v3470_v18 = vpop.f32.mrf.mxu0 }
 0x3c8   :  { %v8322_v46 = vpop.f32.mrf.mxu1  ;;  %v8325_v38 = vadd.f32 %v3470_v18, %v8137_v15 }
 0x3c9   :  { %8946 = vst [vmem:[#allocation48_spill] sm:$0xff] %v8322_v46  ;;  %v3472_v54 = vpop.f32.mrf.mxu0 }
 0x3ca   :  { %v8329_v36 = vpop.f32.mrf.mxu1  ;;  %v8332_v13 = vadd.f32 %v3472_v54, %v8142_v17 }
 0x3cb   :  { %8947 = vst [vmem:[#allocation49_spill] sm:$0xff] %v8329_v36  ;;  %v3474_v26 = vpop.f32.mrf.mxu0 }
 0x3cc   :  { %v8340_v46 = vpop.f32.mrf.mxu1  ;;  %v8343_v15 = vadd.f32 %v3474_v26, %v8147_v39 }
 0x3cd   :  { %8948 = vst [vmem:[#allocation50_spill] sm:$0xff] %v8340_v46  ;;  %v3478_v18 = vpop.f32.mrf.mxu0 }
 0x3ce   :  { %v8347_v36 = vpop.f32.mrf.mxu1  ;;  %v8350_v17 = vadd.f32 %v3478_v18, %v8151_v58  ;;  %v8368_v18 = vadd.f32 %v8168_v24, %v7976_v60 }
 0x3cf   :  { %v3480_v54 = vpop.f32.mrf.mxu0 }
 0x3d0   :  { %8949 = vst [vmem:[#allocation51_spill] sm:$0xff] %v8350_v17  ;;  %v8354_v61 = vpop.f32.mrf.mxu1  ;;  %v8357_v29 = vadd.f32 %v3480_v54, %v8156_v63  ;;  %8954 = vst [vmem:[#allocation56_spill] sm:$0xff] %v8368_v18  ;;  %v8957_v63 = vld [vmem:[#allocation22_spill] sm:$0xff]  ;;  %v8975_v18 = vld [vmem:[#allocation28_spill] sm:$0xff] }
 0x3d1   :  { %8950 = vst [vmem:[#allocation52_spill] sm:$0xff] %v8354_v61  ;;  %v3482_v39 = vpop.f32.mrf.mxu0  ;;  %v8963_v61 = vld [vmem:[#allocation25_spill] sm:$0xff] }
 0x3d2   :  { %8951 = vst [vmem:[#allocation53_spill] sm:$0xff] %v8357_v29  ;;  %v8361_v46 = vpop.f32.mrf.mxu1  ;;  %v8364_v47 = vadd.f32 %v3482_v39, %v8161_v50  ;;  %v8960_v50 = vld [vmem:[#allocation23_spill] sm:$0xff] }
 0x3d3   :  { %8952 = vst [vmem:[#allocation54_spill] sm:$0xff] %v8361_v46  ;;  %v3484_v58 = vpop.f32.mrf.mxu0 }
 0x3d4   :  { %8953 = vst [vmem:[#allocation55_spill] sm:$0xff] %v8364_v47  ;;  %v8372_v17 = vpop.f32.mrf.mxu1  ;;  %v8375_v54 = vadd.f32 %v3484_v58, %v8957_v63 }
 0x3d5   :  { %8956 = vst [vmem:[#allocation57_spill] sm:$0xff] %v8372_v17  ;;  %v3488_v2 = vpop.f32.mrf.mxu0 }
 0x3d6   :  { %8958 = vst [vmem:[#allocation22_spill] sm:$0xff] %v8375_v54  ;;  %v8379_v46 = vpop.f32.mrf.mxu1  ;;  %v8382_v39 = vadd.f32 %v3488_v2, %v8960_v50  ;;  %v3777_v50 = vld [vmem:[%s8838_s6] sm:$0x3] }
 0x3d7   :  { %8959 = vst [vmem:[#allocation58_spill] sm:$0xff] %v8379_v46  ;;  %v3490_v29 = vpop.f32.mrf.mxu0 }
 0x3d8   :  { %8961 = vst [vmem:[#allocation23_spill] sm:$0xff] %v8382_v39  ;;  %v8386_v60 = vpop.f32.mrf.mxu1  ;;  %v8389_v17 = vadd.f32 %v3490_v29, %v8963_v61  ;;  %v8965_v39 = vld [vmem:[#allocation12_spill] sm:$0xff]  ;;  %v8966_v29 = vmax.f32 %v8013_v49, %v8183_v14 }
 0x3d9   :  { %8962 = vst [vmem:[#allocation59_spill] sm:$0xff] %v8386_v60  ;;  %v3492_v58 = vpop.f32.mrf.mxu0  ;;  %v3425_v60 = vadd.f32 %v8199_v23, %v8965_v39  ;;  %v8971_v23 = vld [vmem:[#allocation5_spill] sm:$0xff] }
 0x3da   :  { %8964 = vst [vmem:[#allocation25_spill] sm:$0xff] %v8389_v17  ;;  %v3603_v47 = vpop.f32.mrf.mxu1  ;;  %v8969_v17 = vld [vmem:[#allocation6_spill] sm:$0xff]  ;;  %v8413_v39 = vrot.slane %v3777_v50, %v8971_v23  ;;  %v8979_v23 = vld [vmem:[#allocation31_spill] sm:$0xff] }
 0x3db   :  { %v3493_v26 = vpop.f32.mrf.mxu0 }
 0x3dc   :  { %v3604_v54 = vpop.f32.mrf.mxu1  ;;  %v8967_v26 = vld [vmem:[#allocation7_spill] sm:$0xff] }
 0x3dd   :  { %v3640_v46 = vpop.f32.mrf.mxu0  ;;  %v8968_v54 = vld [vmem:[#allocation13_spill] sm:$0xff] }
 0x3de   :  { %v3641_v2 = vadd.f32 %v3640_v46, %v8180_v59  ;;  %v3203_v63 = vadd.f32 %v8968_v54, %v8967_v26  ;;  %v8406_v59 = vrot.slane %v3777_v50, %v8969_v17  ;;  %v8970_v46 = vmax.f32 %v8018_v3, %v8190_v10 }
 0x3df   :  { %v3642_v24 = vpop.f32.mrf.mxu0 }
 0x3e0   :  { %v3747_v61 = vmax.f32 %v8966_v29, %v3641_v2  ;;  %v3643_v58 = vadd.f32 %v3642_v24, %v8187_v31  ;;  %v3720_v14 = vmax.f32 %v3203_v63, %v3425_v60  ;;  %v8972_v2 = vld [vmem:[#allocation11_spill] sm:$0xff] }
 0x3e1   :  { %v3644_v47 = vpop.f32.mrf.mxu0  ;;  %v8973_v31 = vld [vmem:[#allocation27_spill] sm:$0xff] }
 0x3e2   :  { %v3748_v33 = vmax.f32 %v8970_v46, %v3643_v58  ;;  %v3645_v30 = vadd.f32 %v3644_v47, %v8194_v32  ;;  %v8974_v24 = vmax.f32 %v8972_v2, %v8973_v31  ;;  %v3789_v17 = vadd.f32 %v8406_v59, %v3747_v61  ;;  %v8976_v32 = vld [vmem:[#allocation14_spill] sm:$0xff]  ;;  %v8980_v2 = vld [vmem:[#allocation8_spill] sm:$0xff] }
 0x3e3   :  { %v3646_v49 = vpop.f32.mrf.mxu0  ;;  %v3435_v50 = vadd.f32 %v8227_v12, %v8976_v32 }
 0x3e4   :  { %v3749_v29 = vmax.f32 %v8974_v24, %v3645_v30  ;;  %v3647_v26 = vadd.f32 %v3646_v49, %v8975_v18  ;;  %v3790_v58 = vadd.f32 %v8413_v39, %v3748_v33  ;;  %v8977_v30 = vld [vmem:[#allocation30_spill] sm:$0xff]  ;;  %v8983_v24 = vld [vmem:[#allocation32_spill] sm:$0xff] }
 0x3e5   :  { %v3650_v54 = vpop.f32.mrf.mxu0  ;;  %v8978_v18 = vmax.f32 %v8041_v44, %v8977_v30  ;;  %v8984_v44 = vmax.f32 %v8060_v20, %v8225_v43  ;;  %v8987_v30 = vld [vmem:[#allocation29_spill] sm:$0xff] }
 0x3e6   :  { %v3791_v41 = vadd.f32 %v8406_v59, %v3749_v29  ;;  %v3750_v10 = vmax.f32 %v3720_v14, %v3647_v26  ;;  %v3651_v3 = vadd.f32 %v3650_v54, %v8207_v62  ;;  %v8981_v14 = vld [vmem:[#allocation15_spill] sm:$0xff]  ;;  %v8982_v62 = vmax.f32 %v8046_v19, %v8218_v40 }
 0x3e7   :  { %v3652_v60 = vpop.f32.mrf.mxu0  ;;  %v3213_v31 = vadd.f32 %v8981_v14, %v8980_v2  ;;  %v5714_v26 = vld [vmem:[#allocation2 + $0x30] sm:$0xff]   ;;  %v8991_v14 = vld [vmem:[#allocation36_spill] sm:$0xff] }
 0x3e8   :  { %v3819_v63 = vpack.c.bf16 %v3791_v41, %v3789_v17  ;;  %v3792_v47 = vadd.f32 %v8413_v39, %v3750_v10  ;;  %v3751_v46 = vmax.f32 %v8978_v18, %v3651_v3  ;;  %v3653_v61 = vadd.f32 %v3652_v60, %v8979_v23  ;;  %v8985_v10 = vld [vmem:[#allocation33_spill] sm:$0xff]  ;;  %v5715_v23 = vld [vmem:[#allocation2 + $0x28] sm:$0xff]  }
 0x3e9   :  { %v3654_v49 = vpop.f32.mrf.mxu0  ;;  %v3724_v54 = vmax.f32 %v3213_v31, %v3435_v50  ;;  %v8988_v50 = vld [vmem:[#allocation16_spill] sm:$0xff] }
 0x3ea   :  { %v3752_v12 = vmax.f32 %v8982_v62, %v3653_v61  ;;  %v3655_v33 = vadd.f32 %v3654_v49, %v8983_v24  ;;  %v3820_v29 = vpack.c.bf16 %v3792_v47, %v3790_v58  ;;  %v3793_v19 = vadd.f32 %v8406_v59, %v3751_v46  ;;  %v8986_v58 = vld [vmem:[#allocation34_spill] sm:$0xff]  ;;  %v8989_v46 = vld [vmem:[#allocation35_spill] sm:$0xff]  ;;  %v8992_v24 = vld [vmem:[#allocation9_spill] sm:$0xff] }
 0x3eb   :  { %v3656_v41 = vpop.f32.mrf.mxu0  ;;  %v3445_v20 = vadd.f32 %v8252_v1, %v8988_v50  ;;  %v8990_v49 = vmax.f32 %v8078_v42, %v8989_v46  ;;  %v8994_v1 = vmax.f32 %v8083_v6, %v8243_v56  ;;  %v8996_v42 = vmax.f32 %v8088_v11, %v8250_v0 }
 0x3ec   :  { %v3753_v17 = vmax.f32 %v8984_v44, %v3655_v33  ;;  %v3657_v3 = vadd.f32 %v3656_v41, %v8985_v10  ;;  %4187 = vmatprep.mubr.bf16.mxu1 %v3820_v29  ;;  %4298 = vmatprep.mubr.bf16.mxu0 %v3820_v29  ;;  %v3794_v43 = vadd.f32 %v8413_v39, %v3752_v12  ;;  %v8993_v33 = vld [vmem:[#allocation17_spill] sm:$0xff] }
 0x3ed   :  { %v3660_v32 = vpop.f32.mrf.mxu0  ;;  %4188 = vmatmul.mubr.bf16.vlgmr.msra.gmra.mxu1 %v3819_v63  ;;  %4299 = vmatmul.mubr.bf16.vlgmr.msra.gmra.mxu0 %v3819_v63  ;;  %v3223_v29 = vadd.f32 %v8993_v33, %v8992_v24  ;;  %v8995_v41 = vld [vmem:[#allocation37_spill] sm:$0xff] }
 0x3ee   :  { %v3795_v40 = vadd.f32 %v8406_v59, %v3753_v17  ;;  %v3754_v60 = vmax.f32 %v3724_v54, %v3657_v3  ;;  %v3661_v47 = vadd.f32 %v3660_v32, %v8986_v58  ;;  %5193 = vmatpush3.bf16.msra.mxu1 %v8987_v30  ;;  %v8997_v32 = vld [vmem:[#allocation38_spill] sm:$0xff] }
 0x3ef   :  { %v3662_v18 = vpop.f32.mrf.mxu0  ;;  %5194 = vmatprep.subr.bf16.mxu1 %v5714_v26  ;;  %v3728_v10 = vmax.f32 %v3223_v29, %v3445_v20 }
 0x3f0   :  { %v3821_v61 = vpack.c.bf16 %v3795_v40, %v3793_v19  ;;  %v3796_v63 = vadd.f32 %v8413_v39, %v3754_v60  ;;  %v3755_v2 = vmax.f32 %v8990_v49, %v3661_v47  ;;  %v3663_v31 = vadd.f32 %v3662_v18, %v8991_v14  ;;  %v8999_v47 = vld [vmem:[#allocation18_spill] sm:$0xff]  ;;  %v9004_v14 = vld [vmem:[#allocation19_spill] sm:$0xff] }
 0x3f1   :  { %v3664_v62 = vpop.f32.mrf.mxu0  ;;  %v3455_v30 = vadd.f32 %v8277_v48, %v8999_v47  ;;  %v9013_v47 = vld [vmem:[#allocation46_spill] sm:$0xff] }
 0x3f2   :  { %v3756_v12 = vmax.f32 %v8994_v1, %v3663_v31  ;;  %v3665_v54 = vadd.f32 %v3664_v62, %v8995_v41  ;;  %v3822_v44 = vpack.c.bf16 %v3796_v63, %v3794_v43  ;;  %5195 = vmatpush3.bf16.msra.mxu1 %v5714_v26  ;;  %v3797_v6 = vadd.f32 %v8406_v59, %v3755_v2  ;;  %v8998_v26 = vld [vmem:[#allocation39_spill] sm:$0xff]  ;;  %v9000_v43 = vld [vmem:[#allocation40_spill] sm:$0xff]  ;;  %v9002_v63 = vld [vmem:[#allocation41_spill] sm:$0xff] }
 0x3f3   :  { %v3666_v17 = vpop.f32.mrf.mxu0  ;;  %5196 = vmatprep.subr.bf16.mxu1 %v5715_v23  ;;  %v9001_v18 = vmax.f32 %v8097_v9, %v9000_v43  ;;  %v9003_v2 = vld [vmem:[#allocation10_spill] sm:$0xff]  ;;  %v9008_v41 = vld [vmem:[#allocation43_spill] sm:$0xff] }
 0x3f4   :  { %v3757_v3 = vmax.f32 %v8996_v42, %v3665_v54  ;;  %v3667_v19 = vadd.f32 %v3666_v17, %v8997_v32  ;;  %4197 = vmatprep.mubr.bf16.mxu1 %v3822_v44  ;;  %4306 = vmatprep.mubr.bf16.mxu0 %v3822_v44  ;;  %v3798_v11 = vadd.f32 %v8413_v39, %v3756_v12  ;;  %v9006_v62 = vld [vmem:[#allocation42_spill] sm:$0xff]  ;;  %v9015_v43 = vld [vmem:[#allocation47_spill] sm:$0xff] }
 0x3f5   :  { %v3670_v40 = vpop.f32.mrf.mxu0  ;;  %4198 = vmatmul.mubr.bf16.gmra.mxu1 %v3821_v61  ;;  %4307 = vmatmul.mubr.bf16.gmra.mxu0 %v3821_v61  ;;  %v3233_v31 = vadd.f32 %v9004_v14, %v9003_v2  ;;  %v9007_v12 = vmax.f32 %v8107_v53, %v8275_v4  ;;  %v9010_v4 = vmax.f32 %v8116_v57, %v8286_v45 }
 0x3f6   :  { %v3799_v56 = vadd.f32 %v8406_v59, %v3757_v3  ;;  %v3758_v60 = vmax.f32 %v3728_v10, %v3667_v19  ;;  %v3671_v58 = vadd.f32 %v3670_v40, %v8998_v26  ;;  %5197 = vmatpush3.bf16.msra.mxu1 %v5715_v23  ;;  %v9005_v23 = vmax.f32 %v8102_v27, %v8268_v52  ;;  %v9009_v10 = vld [vmem:[#allocation44_spill] sm:$0xff] }
 0x3f7   :  { %v3672_v0 = vpop.f32.mrf.mxu0  ;;  %v3732_v1 = vmax.f32 %v3233_v31, %v3455_v30  ;;  %v9012_v26 = vmax.f32 %v8121_v28, %v8293_v34  ;;  %v9016_v34 = vmax.f32 %v8304_v25, %v8311_v37  ;;  %v9017_v2 = vmax.f32 %v8135_v21, %v8318_v22  ;;  %v9018_v31 = vld [vmem:[#allocation48_spill] sm:$0xff]  ;;  %v9020_v37 = vld [vmem:[#allocation49_spill] sm:$0xff] }
 0x3f8   :  { %v3823_v50 = vpack.c.bf16 %v3799_v56, %v3797_v6  ;;  %v3800_v20 = vadd.f32 %v8413_v39, %v3758_v60  ;;  %v3759_v61 = vmax.f32 %v9001_v18, %v3671_v58  ;;  %v3673_v46 = vadd.f32 %v3672_v0, %v9002_v63  ;;  %v9011_v6 = vld [vmem:[#allocation45_spill] sm:$0xff] }
 0x3f9   :  { %v3674_v49 = vpop.f32.mrf.mxu0 }
 0x3fa   :  { %v3760_v48 = vmax.f32 %v9005_v23, %v3673_v46  ;;  %v3675_v24 = vadd.f32 %v3674_v49, %v9006_v62  ;;  %v3824_v33 = vpack.c.bf16 %v3800_v20, %v3798_v11  ;;  %v3801_v17 = vadd.f32 %v8406_v59, %v3759_v61 }
 0x3fb   :  { %v3676_v29 = vpop.f32.mrf.mxu0  ;;  %v9019_v62 = vmax.f32 %v8140_v16, %v8325_v38  ;;  %v9023_v38 = vmax.f32 %v8336_v51, %v8343_v15  ;;  %v9030_v15 = vld [vmem:[#allocation54_spill] sm:$0xff] }
 0x3fc   :  { %v3761_v9 = vmax.f32 %v9007_v12, %v3675_v24  ;;  %v3677_v54 = vadd.f32 %v3676_v29, %v9008_v41  ;;  %4207 = vmatprep.mubr.bf16.mxu1 %v3824_v33  ;;  %4314 = vmatprep.mubr.bf16.mxu0 %v3824_v33  ;;  %v3802_v3 = vadd.f32 %v8413_v39, %v3760_v48  ;;  %v9022_v12 = vld [vmem:[#allocation50_spill] sm:$0xff] }
 0x3fd   :  { %v3680_v44 = vpop.f32.mrf.mxu0  ;;  %4208 = vmatmul.mubr.bf16.gmra.mxu1 %v3823_v50  ;;  %4315 = vmatmul.mubr.bf16.gmra.mxu0 %v3823_v50  ;;  %v9014_v50 = vmax.f32 %v8126_v5, %v8300_v55  ;;  %v9021_v29 = vmax.f32 %v8145_v7, %v8332_v13 }
 0x3fe   :  { %v3803_v27 = vadd.f32 %v8406_v59, %v3761_v9  ;;  %v3762_v52 = vmax.f32 %v3732_v1, %v3677_v54  ;;  %v3681_v42 = vadd.f32 %v3680_v44, %v9009_v10 }
 0x3ff   :  { %v3682_v32 = vpop.f32.mrf.mxu0 }
 0x400   :  { %v3825_v19 = vpack.c.bf16 %v3803_v27, %v3801_v17  ;;  %v3804_v53 = vadd.f32 %v8413_v39, %v3762_v52  ;;  %v3763_v40 = vmax.f32 %v9010_v4, %v3681_v42  ;;  %v3683_v56 = vadd.f32 %v3682_v32, %v9011_v6  ;;  %v9024_v27 = vld [vmem:[#allocation20_spill] sm:$0xff]  ;;  %v9025_v52 = vld [vmem:[#allocation51_spill] sm:$0xff] }
 0x401   :  { %v3684_v60 = vpop.f32.mrf.mxu0  ;;  %v9026_v10 = vmax.f32 %v9024_v27, %v9025_v52  ;;  %v5786_v52 = vld [vmem:[%s8832_s0 + $0x28] sm:$0xff] }
 0x402   :  { %v3764_v58 = vmax.f32 %v9012_v26, %v3683_v56  ;;  %v3685_v30 = vadd.f32 %v3684_v60, %v9013_v47  ;;  %v3826_v11 = vpack.c.bf16 %v3804_v53, %v3802_v3  ;;  %v3805_v45 = vadd.f32 %v8406_v59, %v3763_v40  ;;  %v9027_v3 = vld [vmem:[#allocation52_spill] sm:$0xff]  ;;  %v9028_v53 = vld [vmem:[#allocation53_spill] sm:$0xff]  ;;  %v9032_v60 = vld [vmem:[#allocation55_spill] sm:$0xff] }
 0x403   :  { %v3686_v0 = vpop.f32.mrf.mxu0  ;;  %v9029_v4 = vmax.f32 %v8159_v35, %v9028_v53  ;;  %v9031_v56 = vld [vmem:[#allocation21_spill] sm:$0xff] }
 0x404   :  { %v3765_v20 = vmax.f32 %v9014_v50, %v3685_v30  ;;  %v3687_v18 = vadd.f32 %v3686_v0, %v9015_v43  ;;  %4217 = vmatprep.mubr.bf16.mxu1 %v3826_v11  ;;  %4322 = vmatprep.mubr.bf16.mxu0 %v3826_v11  ;;  %v3806_v5 = vadd.f32 %v8413_v39, %v3764_v58  ;;  %v9034_v47 = vld [vmem:[#allocation57_spill] sm:$0xff]  ;;  %v9035_v50 = vld [vmem:[#allocation56_spill] sm:$0xff] }
 0x405   :  { %v3690_v57 = vpop.f32.mrf.mxu0  ;;  %4218 = vmatmul.mubr.bf16.gmra.mxu1 %v3825_v19  ;;  %4323 = vmatmul.mubr.bf16.gmra.mxu0 %v3825_v19  ;;  %v9033_v26 = vmax.f32 %v9031_v56, %v9032_v60 }
 0x406   :  { %v3807_v28 = vadd.f32 %v8406_v59, %v3765_v20  ;;  %v3766_v61 = vmax.f32 %v9016_v34, %v3687_v18  ;;  %v3691_v63 = vadd.f32 %v3690_v57, %v8315_v8  ;;  %v9036_v20 = vld [vmem:[#allocation22_spill] sm:$0xff] }
 0x407   :  { %v3692_v55 = vpop.f32.mrf.mxu0  ;;  %v9037_v43 = vmax.f32 %v9035_v50, %v9036_v20  ;;  %v9038_v57 = vld [vmem:[#allocation58_spill] sm:$0xff] }
 0x408   :  { %v3827_v46 = vpack.c.bf16 %v3807_v28, %v3805_v45  ;;  %v3808_v49 = vadd.f32 %v8413_v39, %v3766_v61  ;;  %v3767_v14 = vmax.f32 %v9017_v2, %v3691_v63  ;;  %v3693_v23 = vadd.f32 %v3692_v55, %v9018_v31  ;;  %v9040_v55 = vld [vmem:[#allocation23_spill] sm:$0xff]  ;;  %v5793_v20 = vld [vmem:[%s8832_s0 + $0x68] sm:$0xff] }
 0x409   :  { %v3694_v48 = vpop.f32.mrf.mxu0  ;;  %v9042_v2 = vld [vmem:[#allocation59_spill] sm:$0xff] }
 0x40a   :  { %v3768_v25 = vmax.f32 %v9019_v62, %v3693_v23  ;;  %v3695_v24 = vadd.f32 %v3694_v48, %v9020_v37  ;;  %v3828_v8 = vpack.c.bf16 %v3808_v49, %v3806_v5  ;;  %v3809_v22 = vadd.f32 %v8406_v59, %v3767_v14  ;;  %v9039_v5 = vld [vmem:[#allocation24_spill] sm:$0xff]  ;;  %v9043_v23 = vld [vmem:[#allocation26_spill] sm:$0xff]  ;;  %v9044_v48 = vld [vmem:[#allocation25_spill] sm:$0xff] }
 0x40b   :  { %v3696_v33 = vpop.f32.mrf.mxu0  ;;  %v9045_v62 = vmax.f32 %v9043_v23, %v9044_v48  ;;  %v5799_v48 = vld [vmem:[%s8832_s0 + $0x80] sm:$0xff] }
 0x40c   :  { %v3769_v1 = vmax.f32 %v9021_v29, %v3695_v24  ;;  %v3697_v9 = vadd.f32 %v3696_v33, %v9022_v12  ;;  %4227 = vmatprep.mubr.bf16.mxu1 %v3828_v8  ;;  %4330 = vmatprep.mubr.bf16.mxu0 %v3828_v8  ;;  %v3810_v7 = vadd.f32 %v8413_v39, %v3768_v25  ;;  %v5716_v12 = vld [vmem:[#allocation2 + $0x20] sm:$0xff]  }
 0x40d   :  { %v3700_v21 = vpop.f32.mrf.mxu0  ;;  %4228 = vmatmul.mubr.bf16.gmra.mxu1 %v3827_v46  ;;  %4331 = vmatmul.mubr.bf16.gmra.mxu0 %v3827_v46  ;;  %v9041_v46 = vmax.f32 %v9039_v5, %v9040_v55  ;;  %v5796_v5 = vld [vmem:[%s8832_s0 + $0x70] sm:$0xff] }
 0x40e   :  { %v3811_v16 = vadd.f32 %v8406_v59, %v3769_v1  ;;  %v3770_v41 = vmax.f32 %v9023_v38, %v3697_v9  ;;  %v3701_v54 = vadd.f32 %v3700_v21, %v8347_v36  ;;  %5198 = vmatprep.subr.bf16.mxu1 %v5716_v12  ;;  %v5717_v9 = vld [vmem:[#allocation2 + $0x18] sm:$0xff]   ;;  %v5718_v21 = vld [vmem:[#allocation2 + $0x10] sm:$0xff]   ;;  %v5782_v38 = vld [vmem:[%s8832_s0 + $0x8] sm:$0xff]  ;;  %v100_v55 = vmul.f32 %v5796_v5, %v5796_v5 }
 0x40f   :  { %v3702_v13 = vpop.f32.mrf.mxu0  ;;  %5199 = vmatpush3.bf16.msra.mxu1 %v5716_v12 }
 0x410   :  { %v3829_v44 = vpack.c.bf16 %v3811_v16, %v3809_v22  ;;  %v3812_v17 = vadd.f32 %v8413_v39, %v3770_v41  ;;  %v3771_v42 = vmax.f32 %v9026_v10, %v3701_v54  ;;  %v3703_v32 = vadd.f32 %v3702_v13, %v9027_v3  ;;  %5200 = vmatprep.subr.bf16.mxu1 %v5717_v9  ;;  %v5720_v22 = vld [vmem:[#allocation2] sm:$0xff]   ;;  %v5783_v54 = vld [vmem:[%s8832_s0 + $0x10] sm:$0xff]  ;;  %v5784_v13 = vld [vmem:[%s8832_s0 + $0x18] sm:$0xff] }
 0x411   :  { %v3704_v19 = vpop.f32.mrf.mxu0  ;;  %v87_v41 = vmul.f32 %v5782_v38, %v5782_v38  ;;  %v91_v10 = vmul.f32 %v5786_v52, %v5786_v52  ;;  %v5804_v38 = vld [vmem:[%s8832_s0 + $0xb0] sm:$0xff]  ;;  %v5807_v52 = vld [vmem:[%s8832_s0 + $0xc0] sm:$0xff] }
 0x412   :  { %v3772_v51 = vmax.f32 %v9029_v4, %v3703_v32  ;;  %v3705_v40 = vadd.f32 %v3704_v19, %v9030_v15  ;;  %v3830_v36 = vpack.c.bf16 %v3812_v17, %v3810_v7  ;;  %v3813_v0 = vadd.f32 %v8406_v59, %v3771_v42  ;;  %v5785_v17 = vld [vmem:[%s8832_s0 + $0x20] sm:$0xff]  ;;  %v5787_v42 = vld [vmem:[%s8832_s0 + $0x30] sm:$0xff]  ;;  %v5788_v32 = vld [vmem:[%s8832_s0 + $0x38] sm:$0xff] }
 0x413   :  { %v3706_v6 = vpop.f32.mrf.mxu0  ;;  %5201 = vmatpush3.bf16.msra.mxu1 %v5717_v9  ;;  %v88_v7 = vmul.f32 %v5783_v54, %v5783_v54  ;;  %v90_v27 = vmul.f32 %v5785_v17, %v5785_v17  ;;  %v92_v3 = vmul.f32 %v5787_v42, %v5787_v42  ;;  %v93_v19 = vmul.f32 %v5788_v32, %v5788_v32  ;;  %v5802_v9 = vld [vmem:[%s8832_s0 + $0xb8] sm:$0xff]  ;;  %v5808_v32 = vld [vmem:[%s8832_s0 + $0xd0] sm:$0xff] }
 0x414   :  { %v3773_v58 = vmax.f32 %v9033_v26, %v3705_v40  ;;  %v3707_v30 = vadd.f32 %v3706_v6, %v9034_v47  ;;  %4237 = vmatprep.mubr.bf16.mxu1 %v3830_v36  ;;  %4338 = vmatprep.mubr.bf16.mxu0 %v3830_v36  ;;  %v3814_v28 = vadd.f32 %v8413_v39, %v3772_v51  ;;  %v117_v53 = vsel %vm116_vm0, %v87_v41, 0.0  ;;  %v5789_v51 = vld [vmem:[%s8832_s0 + $0x48] sm:$0xff]  ;;  %v5790_v26 = vld [vmem:[%s8832_s0 + $0x40] sm:$0xff]  ;;  %v5806_v17 = vld [vmem:[%s8832_s0 + $0xd8] sm:$0xff] }
 0x415   :  { %v3710_v11 = vpop.f32.mrf.mxu0  ;;  %4238 = vmatmul.mubr.bf16.gmra.mxu1 %v3829_v44  ;;  %4339 = vmatmul.mubr.bf16.gmra.mxu0 %v3829_v44  ;;  %v89_v44 = vmul.f32 %v5784_v13, %v5784_v13  ;;  %v95_v15 = vmul.f32 %v5789_v51, %v5789_v51  ;;  %v125_v6 = vsel %vm116_vm0, %v91_v10, 0.0  ;;  %v129_v56 = vsel %vm116_vm0, %v93_v19, 0.0  ;;  %v5805_v13 = vld [vmem:[%s8832_s0 + $0xc8] sm:$0xff] }
 0x416   :  { %v3815_v35 = vadd.f32 %v8406_v59, %v3773_v58  ;;  %v3774_v18 = vmax.f32 %v9037_v43, %v3707_v30  ;;  %v3711_v45 = vadd.f32 %v3710_v11, %v9038_v57  ;;  %5202 = vmatprep.subr.bf16.mxu1 %v5718_v21  ;;  %v126_v60 = vadd.f32 %v125_v6, %v90_v27  ;;  %v5791_v11 = vld [vmem:[%s8832_s0 + $0x50] sm:$0xff] }
 0x417   :  { %v3712_v34 = vpop.f32.mrf.mxu0  ;;  %5203 = vmatpush3.bf16.msra.mxu1 %v5718_v21  ;;  %v121_v4 = vsel %vm116_vm0, %v89_v44, 0.0  ;;  %v94_v58 = vmul.f32 %v5790_v26, %v5790_v26  ;;  %v130_v47 = vadd.f32 %v129_v56, %v92_v3  ;;  %v133_v30 = vsel %vm116_vm0, %v95_v15, 0.0 }
 0x418   :  { %v3831_v61 = vpack.c.bf16 %v3815_v35, %v3813_v0  ;;  %v3816_v63 = vadd.f32 %v8413_v39, %v3774_v18  ;;  %v3775_v49 = vmax.f32 %v9041_v46, %v3711_v45  ;;  %v3713_v14 = vadd.f32 %v3712_v34, %v9042_v2  ;;  %v5792_v35 = vld [vmem:[%s8832_s0 + $0x58] sm:$0xff]  ;;  %v5797_v2 = vld [vmem:[%s8832_s0 + $0x88] sm:$0xff] }
 0x419   :  { %v3714_v31 = vpop.f32.mrf.mxu0  ;;  %v122_v36 = vadd.f32 %v121_v4, %v88_v7  ;;  %v96_v0 = vmul.f32 %v5791_v11, %v5791_v11  ;;  %v97_v50 = vmul.f32 %v5792_v35, %v5792_v35  ;;  %v99_v43 = vmul.f32 %v5793_v20, %v5793_v20  ;;  %v5794_v18 = vld [vmem:[%s8832_s0 + $0x78] sm:$0xff]  ;;  %v5809_v4 = vld [vmem:[%s8832_s0 + $0xe8] sm:$0xff] }
 0x41a   :  { %v3776_v25 = vmax.f32 %v9045_v62, %v3713_v14  ;;  %v3832_v37 = vpack.c.bf16 %v3816_v63, %v3814_v28  ;;  %v3817_v29 = vadd.f32 %v8406_v59, %v3775_v49  ;;  %v5781_v59 = vld [vmem:[%s8832_s0] sm:$0xff]  ;;  %v101_v57 = vmul.f32 %v5794_v18, %v5794_v18  ;;  %v5798_v31 = vld [vmem:[%s8832_s0 + $0x98] sm:$0xff] }
 0x41b   :  { %v3715_v24 = vpop.f32.mrf.mxu0  ;;  %v86_v16 = vmul.f32 %v5781_v59, %v5781_v59  ;;  %123 = vadd.xlane.f32.xlu1 %v122_v36  ;;  %v137_v45 = vsel %vm116_vm0, %v97_v50, 0.0  ;;  %v134_v28 = vadd.f32 %v133_v30, %v94_v58  ;;  %v141_v46 = vsel %vm116_vm0, %v99_v43, 0.0  ;;  %v5810_v36 = vld [vmem:[%s8832_s0 + $0xe0] sm:$0xff] }
 0x41c   :  { %4247 = vmatprep.mubr.bf16.mxu1 %v3832_v37  ;;  %4346 = vmatprep.mubr.bf16.mxu0 %v3832_v37  ;;  %v3818_v8 = vadd.f32 %v8413_v39, %v3776_v25  ;;  %v3833_v1 = vpack.c.bf16 %v3817_v29, %v3817_v29  ;;  %v5719_v39 = vld [vmem:[#allocation2 + $0x8] sm:$0xff]   ;;  %v138_v34 = vadd.f32 %v137_v45, %v96_v0  ;;  %v145_v49 = vsel %vm116_vm0, %v101_v57, 0.0  ;;  %v5800_v24 = vld [vmem:[%s8832_s0 + $0x90] sm:$0xff] }
 0x41d   :  { %4248 = vmatmul.mubr.bf16.gmra.mxu1 %v3831_v61  ;;  %4347 = vmatmul.mubr.bf16.gmra.mxu0 %v3831_v61  ;;  %v118_v40 = vadd.f32 %v117_v53, %v86_v16  ;;  %v5795_v61 = vld [vmem:[%s8832_s0 + $0x60] sm:$0xff]  ;;  %v103_v14 = vmul.f32 %v5797_v2, %v5797_v2  ;;  %v105_v23 = vmul.f32 %v5798_v31, %v5798_v31 }
 0x41e   :  { %v3834_v33 = vpack.c.bf16 %v3818_v8, %v3818_v8  ;;  %5204 = vmatprep.subr.bf16.mxu1 %v5719_v39  ;;  %v98_v63 = vmul.f32 %v5795_v61, %v5795_v61  ;;  %v102_v62 = vmul.f32 %v5799_v48, %v5799_v48  ;;  %v146_v37 = vadd.f32 %v145_v49, %v100_v55 }
 0x41f   :  { %5205 = vmatpush3.bf16.msra.mxu1 %v5719_v39  ;;  %119 = vadd.xlane.f32.xlu0 %v118_v40  ;;  %v104_v8 = vmul.f32 %v5800_v24, %v5800_v24  ;;  %v153_v29 = vsel %vm116_vm0, %v105_v23, 0.0  ;;  %v109_v21 = vmul.f32 %v5802_v9, %v5802_v9  ;;  %v5803_v39 = vld [vmem:[%s8832_s0 + $0xa0] sm:$0xff]  ;;  %v108_v41 = vmul.f32 %v5804_v38, %v5804_v38 }
 0x420   :  { %4257 = vmatprep.mubr.bf16.mxu1 %v3834_v33  ;;  %4354 = vmatprep.mubr.bf16.mxu0 %v3834_v33  ;;  %v142_v25 = vadd.f32 %v141_v46, %v98_v63  ;;  %v149_v33 = vsel %vm116_vm0, %v103_v14, 0.0  ;;  %v111_v44 = vmul.f32 %v5805_v13, %v5805_v13  ;;  %v113_v27 = vmul.f32 %v5806_v17, %v5806_v17 }
 0x421   :  { %5206 = vmatprep.subr.bf16.mxu1 %v5720_v22  ;;  %131 = vadd.xlane.f32.xlu1 %v130_v47  ;;  %v150_v59 = vadd.f32 %v149_v33, %v102_v62  ;;  %v154_v16 = vadd.f32 %v153_v29, %v104_v8  ;;  %v161_v7 = vsel %vm116_vm0, %v109_v21, 0.0  ;;  %v110_v10 = vmul.f32 %v5807_v52, %v5807_v52 }
 0x422   :  { %v162_v3 = vadd.f32 %v161_v7, %v108_v41  ;;  %v112_v19 = vmul.f32 %v5808_v32, %v5808_v32  ;;  %v165_v53 = vsel %vm116_vm0, %v111_v44, 0.0  ;;  %v115_v51 = vmul.f32 %v5809_v4, %v5809_v4 }
 0x423   :  { %5207 = vmatpush3.bf16.msra.mxu1 %v5720_v22  ;;  %127 = vadd.xlane.f32.xlu0 %v126_v60  ;;  %v106_v22 = vmul.f32 %v5803_v39, %v5803_v39  ;;  %v169_v15 = vsel %vm116_vm0, %v113_v27, 0.0  ;;  %v166_v40 = vadd.f32 %v165_v53, %v110_v10  ;;  %v114_v6 = vmul.f32 %v5810_v36, %v5810_v36 }
 0x424   :  { %v170_v56 = vadd.f32 %v169_v15, %v112_v19  ;;  %v173_v60 = vsel %vm116_vm0, %v115_v51, 0.0 }
 0x425   :  { %4258 = vmatmul.mubr.bf16.gmra.mxu1 %v3833_v1  ;;  %4355 = vmatmul.mubr.bf16.gmra.mxu0 %v3833_v1  ;;  %v5801_v1 = vld [vmem:[%s8832_s0 + $0xa8] sm:$0xff]  ;;  %v174_v26 = vadd.f32 %v173_v60, %v114_v6 }
 0x426   :  { %139 = vadd.xlane.f32.xlu1 %v138_v34  ;;  %v107_v12 = vmul.f32 %v5801_v1, %v5801_v1  ;;  %v8665_v34 = vld [vmem:[%s8840_s8] ss:$0 sm:$0xff] }
 0x427   :  { %135 = vadd.xlane.f32.xlu0 %v134_v28 }
 0x428   :  { %v157_v54 = vsel %vm116_vm0, %v107_v12, 0.0 }
 0x429   :  { %v158_v42 = vadd.f32 %v157_v54, %v106_v22 }
 0x42a   :  { %147 = vadd.xlane.f32.xlu1 %v146_v37 }
 0x42b   :  { %143 = vadd.xlane.f32.xlu0 %v142_v25 }
 0x42e   :  { %155 = vadd.xlane.f32.xlu1 %v154_v16 }
 0x42f   :  { %151 = vadd.xlane.f32.xlu0 %v150_v59 }
 0x432   :  { %163 = vadd.xlane.f32.xlu1 %v162_v3 }
 0x433   :  { %159 = vadd.xlane.f32.xlu0 %v158_v42 }
 0x436   :  { %171 = vadd.xlane.f32.xlu1 %v170_v56 }
 0x437   :  { %167 = vadd.xlane.f32.xlu0 %v166_v40 }
 0x43b   :  { %175 = vadd.xlane.f32.xlu0 %v174_v26 }
 0x4ad   :  { %v4189_v58 = vpop.f32.mrf.mxu1  ;;  %v5128_v47 = vpop.f32.mrf.mxu0 }
 0x4af   :  { %v4191_v30 = vpop.f32.mrf.mxu1  ;;  %v5129_v11 = vpop.f32.mrf.mxu0 }
 0x4b0   :  { %v4362_v0 = vmax.f32 %v4189_v58, %v4191_v30  ;;  %v5130_v35 = vadd.f32 %v5129_v11, %v5128_v47 }
 0x4b1   :  { %v4193_v50 = vpop.f32.mrf.mxu1  ;;  %v5131_v20 = vpop.f32.mrf.mxu0 }
 0x4b2   :  { %v4377_v57 = vmax.f32 %v4362_v0, %v5130_v35 }
 0x4b3   :  { %v4195_v43 = vpop.f32.mrf.mxu1  ;;  %v5132_v18 = vpop.f32.mrf.mxu0 }
 0x4b4   :  { %v4363_v45 = vmax.f32 %v4193_v50, %v4195_v43  ;;  %v5133_v28 = vadd.f32 %v5132_v18, %v5131_v20  ;;  %v4399_v49 = vadd.f32 %v8665_v34, %v4377_v57 }
 0x4b5   :  { %v4199_v61 = vpop.f32.mrf.mxu1  ;;  %v5134_v63 = vpop.f32.mrf.mxu0 }
 0x4b6   :  { %v4378_v5 = vmax.f32 %v4363_v45, %v5133_v28 }
 0x4b7   :  { %v4201_v55 = vpop.f32.mrf.mxu1  ;;  %v5135_v46 = vpop.f32.mrf.mxu0 }
 0x4b8   :  { %v4400_v2 = vadd.f32 %v8665_v34, %v4378_v5  ;;  %v4364_v14 = vmax.f32 %v4199_v61, %v4201_v55  ;;  %v5136_v31 = vadd.f32 %v5135_v46, %v5134_v63 }
 0x4b9   :  { %v4203_v23 = vpop.f32.mrf.mxu1  ;;  %v5137_v48 = vpop.f32.mrf.mxu0 }
 0x4ba   :  { %v4414_v62 = vpack.c.bf16 %v4400_v2, %v4399_v49  ;;  %v4379_v24 = vmax.f32 %v4364_v14, %v5136_v31 }
 0x4bb   :  { %v4205_v25 = vpop.f32.mrf.mxu1  ;;  %v5138_v37 = vpop.f32.mrf.mxu0 }
 0x4bc   :  { %v4365_v8 = vmax.f32 %v4203_v23, %v4205_v25  ;;  %v5139_v33 = vadd.f32 %v5138_v37, %v5137_v48  ;;  %5208 = vmatprep.mubr.bf16.mxu1 %v4414_v62  ;;  %v4401_v39 = vadd.f32 %v8665_v34, %v4379_v24 }
 0x4bd   :  { %v4209_v29 = vpop.f32.mrf.mxu1  ;;  %v5140_v1 = vpop.f32.mrf.mxu0 }
 0x4be   :  { %v4380_v12 = vmax.f32 %v4365_v8, %v5139_v33 }
 0x4bf   :  { %v4211_v9 = vpop.f32.mrf.mxu1  ;;  %v5141_v21 = vpop.f32.mrf.mxu0 }
 0x4c0   :  { %v4402_v22 = vadd.f32 %v8665_v34, %v4380_v12  ;;  %v4366_v59 = vmax.f32 %v4209_v29, %v4211_v9  ;;  %v5142_v16 = vadd.f32 %v5141_v21, %v5140_v1 }
 0x4c1   :  { %v4213_v38 = vpop.f32.mrf.mxu1  ;;  %v5143_v41 = vpop.f32.mrf.mxu0 }
 0x4c2   :  { %v4415_v54 = vpack.c.bf16 %v4402_v22, %v4401_v39  ;;  %v4381_v44 = vmax.f32 %v4366_v59, %v5142_v16 }
 0x4c3   :  { %v4215_v7 = vpop.f32.mrf.mxu1  ;;  %v5144_v13 = vpop.f32.mrf.mxu0 }
 0x4c4   :  { %v4367_v17 = vmax.f32 %v4213_v38, %v4215_v7  ;;  %v5145_v27 = vadd.f32 %v5144_v13, %v5143_v41  ;;  %5209 = vmatmul.mubr.bf16.vlgmr.msra.gmra.mxu1 %v4415_v54  ;;  %v4403_v19 = vadd.f32 %v8665_v34, %v4381_v44 }
 0x4c5   :  { %v4219_v52 = vpop.f32.mrf.mxu1  ;;  %v5146_v10 = vpop.f32.mrf.mxu0 }
 0x4c6   :  { %v4382_v42 = vmax.f32 %v4367_v17, %v5145_v27 }
 0x4c7   :  { %v4221_v3 = vpop.f32.mrf.mxu1  ;;  %v5147_v32 = vpop.f32.mrf.mxu0 }
 0x4c8   :  { %v4404_v53 = vadd.f32 %v8665_v34, %v4382_v42  ;;  %v4368_v4 = vmax.f32 %v4219_v52, %v4221_v3  ;;  %v5148_v51 = vadd.f32 %v5147_v32, %v5146_v10 }
 0x4c9   :  { %v4223_v15 = vpop.f32.mrf.mxu1  ;;  %v5149_v40 = vpop.f32.mrf.mxu0 }
 0x4ca   :  { %v4416_v36 = vpack.c.bf16 %v4404_v53, %v4403_v19  ;;  %v4383_v60 = vmax.f32 %v4368_v4, %v5148_v51 }
 0x4cb   :  { %v4225_v6 = vpop.f32.mrf.mxu1  ;;  %v5150_v56 = vpop.f32.mrf.mxu0 }
 0x4cc   :  { %v4369_v26 = vmax.f32 %v4223_v15, %v4225_v6  ;;  %v5151_v58 = vadd.f32 %v5150_v56, %v5149_v40  ;;  %5212 = vmatprep.mubr.bf16.mxu1 %v4416_v36  ;;  %v4405_v50 = vadd.f32 %v8665_v34, %v4383_v60 }
 0x4cd   :  { %v4229_v47 = vpop.f32.mrf.mxu1  ;;  %v5152_v30 = vpop.f32.mrf.mxu0 }
 0x4ce   :  { %v4384_v11 = vmax.f32 %v4369_v26, %v5151_v58 }
 0x4cf   :  { %v4231_v0 = vpop.f32.mrf.mxu1  ;;  %v5153_v35 = vpop.f32.mrf.mxu0 }
 0x4d0   :  { %v4406_v20 = vadd.f32 %v8665_v34, %v4384_v11  ;;  %v4370_v43 = vmax.f32 %v4229_v47, %v4231_v0  ;;  %v5154_v18 = vadd.f32 %v5153_v35, %v5152_v30 }
 0x4d1   :  { %v4233_v57 = vpop.f32.mrf.mxu1  ;;  %v5155_v45 = vpop.f32.mrf.mxu0 }
 0x4d2   :  { %v4417_v28 = vpack.c.bf16 %v4406_v20, %v4405_v50  ;;  %v4385_v5 = vmax.f32 %v4370_v43, %v5154_v18  ;;  %v120_v50 = vpop.xlane.xlu0 %119  ;;  %v124_v20 = vpop.xlane.xlu1 %123  ;;  %v4440_v43 = vld [vmem:[%s8842_s10 + $0x10] sm:$0xff] }
 0x4d3   :  { %v4235_v61 = vpop.f32.mrf.mxu1  ;;  %v5156_v63 = vpop.f32.mrf.mxu0 }
 0x4d4   :  { %v4371_v55 = vmax.f32 %v4233_v57, %v4235_v61  ;;  %v5157_v46 = vadd.f32 %v5156_v63, %v5155_v45  ;;  %5213 = vmatmul.mubr.bf16.gmra.mxu1 %v4417_v28  ;;  %v4407_v48 = vadd.f32 %v8665_v34, %v4385_v5  ;;  %v4438_v57 = vld [vmem:[%s8842_s10] sm:$0xff]  ;;  %v4441_v28 = vld [vmem:[%s8842_s10 + $0x18] sm:$0xff]  ;;  %v4439_v63 = vld [vmem:[%s8842_s10 + $0x8] sm:$0xff] }
 0x4d5   :  { %v4239_v49 = vpop.f32.mrf.mxu1  ;;  %v5158_v2 = vpop.f32.mrf.mxu0  ;;  %v4453_v61 = vmul.f32 %v4438_v57, %v120_v50 }
 0x4d6   :  { %v4386_v14 = vmax.f32 %v4371_v55, %v5157_v46  ;;  %v128_v18 = vpop.xlane.xlu0 %127  ;;  %v4614_v55 = vld [vmem:[%s8843_s11 + $0x10] sm:$0xff] }
 0x4d7   :  { %v4241_v31 = vpop.f32.mrf.mxu1  ;;  %v5159_v23 = vpop.f32.mrf.mxu0  ;;  %v4455_v45 = vmul.f32 %v4440_v43, %v128_v18  ;;  %v4622_v18 = vld [vmem:[%s8843_s11 + $0x50] sm:$0xff] }
 0x4d8   :  { %v4408_v62 = vadd.f32 %v8665_v34, %v4386_v14  ;;  %v4372_v25 = vmax.f32 %v4239_v49, %v4241_v31  ;;  %v5160_v37 = vadd.f32 %v5159_v23, %v5158_v2  ;;  %v4612_v14 = vld [vmem:[%s8843_s11] sm:$0xff]  ;;  %v4454_v31 = vmul.f32 %v4439_v63, %v124_v20  ;;  %v4447_v20 = vld [vmem:[%s8842_s10 + $0x48] sm:$0xff] }
 0x4d9   :  { %v4243_v24 = vpop.f32.mrf.mxu1  ;;  %v5161_v8 = vpop.f32.mrf.mxu0 }
 0x4da   :  { %v4418_v33 = vpack.c.bf16 %v4408_v62, %v4407_v48  ;;  %v4387_v12 = vmax.f32 %v4372_v25, %v5160_v37  ;;  %v4615_v25 = vld [vmem:[%s8843_s11 + $0x18] sm:$0xff]  ;;  %v136_v37 = vpop.xlane.xlu0 %135 }
 0x4db   :  { %v4245_v29 = vpop.f32.mrf.mxu1  ;;  %v5162_v1 = vpop.f32.mrf.mxu0 }
 0x4dc   :  { %v4373_v9 = vmax.f32 %v4243_v24, %v4245_v29  ;;  %v5163_v21 = vadd.f32 %v5162_v1, %v5161_v8  ;;  %5216 = vmatprep.mubr.bf16.mxu1 %v4418_v33  ;;  %v4409_v41 = vadd.f32 %v8665_v34, %v4387_v12  ;;  %v4613_v29 = vld [vmem:[%s8843_s11 + $0x8] sm:$0xff] }
 0x4dd   :  { %v4249_v39 = vpop.f32.mrf.mxu1  ;;  %v5164_v22 = vpop.f32.mrf.mxu0 }
 0x4de   :  { %v4388_v59 = vmax.f32 %v4373_v9, %v5163_v21 }
 0x4df   :  { %v4251_v16 = vpop.f32.mrf.mxu1  ;;  %v5165_v38 = vpop.f32.mrf.mxu0 }
 0x4e0   :  { %v4410_v54 = vadd.f32 %v8665_v34, %v4388_v59  ;;  %v4374_v7 = vmax.f32 %v4249_v39, %v4251_v16  ;;  %v5166_v13 = vadd.f32 %v5165_v38, %v5164_v22  ;;  %v4444_v39 = vld [vmem:[%s8842_s10 + $0x30] sm:$0xff]  ;;  %v144_v22 = vpop.xlane.xlu0 %143  ;;  %v4442_v59 = vld [vmem:[%s8842_s10 + $0x20] sm:$0xff]  ;;  %v4445_v38 = vld [vmem:[%s8842_s10 + $0x38] sm:$0xff] }
 0x4e1   :  { %v4253_v44 = vpop.f32.mrf.mxu1  ;;  %v5167_v17 = vpop.f32.mrf.mxu0  ;;  %v4459_v16 = vmul.f32 %v4444_v39, %v144_v22 }
 0x4e2   :  { %v4419_v27 = vpack.c.bf16 %v4410_v54, %v4409_v41  ;;  %v4389_v42 = vmax.f32 %v4374_v7, %v5166_v13  ;;  %v4457_v54 = vmul.f32 %v4442_v59, %v136_v37  ;;  %v4443_v7 = vld [vmem:[%s8842_s10 + $0x28] sm:$0xff]  ;;  %v4624_v59 = vld [vmem:[%s8843_s11 + $0x60] sm:$0xff] }
 0x4e3   :  { %v4255_v52 = vpop.f32.mrf.mxu1  ;;  %v5168_v10 = vpop.f32.mrf.mxu0 }
 0x4e4   :  { %v4375_v3 = vmax.f32 %v4253_v44, %v4255_v52  ;;  %v5169_v32 = vadd.f32 %v5168_v10, %v5167_v17  ;;  %5217 = vmatmul.mubr.bf16.gmra.mxu1 %v4419_v27  ;;  %v4411_v40 = vadd.f32 %v8665_v34, %v4389_v42  ;;  %v4618_v44 = vld [vmem:[%s8843_s11 + $0x30] sm:$0xff]  ;;  %v4616_v10 = vld [vmem:[%s8843_s11 + $0x20] sm:$0xff] }
 0x4e5   :  { %v4259_v19 = vpop.f32.mrf.mxu1  ;;  %v5170_v53 = vpop.f32.mrf.mxu0 }
 0x4e6   :  { %v4390_v4 = vmax.f32 %v4375_v3, %v5169_v32 }
 0x4e7   :  { %v4261_v51 = vpop.f32.mrf.mxu1  ;;  %v5171_v15 = vpop.f32.mrf.mxu0 }
 0x4e8   :  { %v4412_v36 = vadd.f32 %v8665_v34, %v4390_v4  ;;  %v4376_v6 = vmax.f32 %v4259_v19, %v4261_v51  ;;  %v5172_v56 = vadd.f32 %v5171_v15, %v5170_v53  ;;  %v4619_v53 = vld [vmem:[%s8843_s11 + $0x38] sm:$0xff]  ;;  %v152_v4 = vpop.xlane.xlu0 %151 }
 0x4e9   :  { %v4263_v60 = vpop.f32.mrf.mxu1  ;;  %v5173_v26 = vpop.f32.mrf.mxu0 }
 0x4ea   :  { %v4391_v58 = vmax.f32 %v4376_v6, %v5172_v56  ;;  %v4420_v47 = vpack.c.bf16 %v4412_v36, %v4411_v40  ;;  %v4617_v36 = vld [vmem:[%s8843_s11 + $0x28] sm:$0xff] }
 0x4eb   :  { %v4264_v30 = vpop.f32.mrf.mxu1  ;;  %v5174_v11 = vpop.f32.mrf.mxu0 }
 0x4ec   :  { %v4413_v0 = vadd.f32 %v8665_v34, %v4391_v58  ;;  %5220 = vmatprep.mubr.bf16.mxu1 %v4420_v47  ;;  %v132_v34 = vpop.xlane.xlu1 %131  ;;  %v4448_v58 = vld [vmem:[%s8842_s10 + $0x50] sm:$0xff]  ;;  %v160_v47 = vpop.xlane.xlu0 %159  ;;  %v4446_v30 = vld [vmem:[%s8842_s10 + $0x40] sm:$0xff] }
 0x4ed   :  { %v4456_v49 = vmul.f32 %v4441_v28, %v132_v34  ;;  %v4463_v11 = vmul.f32 %v4448_v58, %v160_v47  ;;  %v4461_v50 = vmul.f32 %v4446_v30, %v152_v4 }
 0x4ee   :  { %v4421_v35 = vpack.c.bf16 %v4413_v0, %v4413_v0  ;;  %v4449_v0 = vld [vmem:[%s8842_s10 + $0x58] sm:$0xff] }
 0x4f0   :  { %5221 = vmatmul.mubr.bf16.gmra.mxu1 %v4421_v35  ;;  %v140_v9 = vpop.xlane.xlu1 %139  ;;  %v168_v57 = vpop.xlane.xlu0 %167 }
 0x4f1   :  { %v4458_v42 = vmul.f32 %v4443_v7, %v140_v9  ;;  %v4451_v9 = vld [vmem:[%s8842_s10 + $0x68] sm:$0xff] }
 0x4f4   :  { %v148_v41 = vpop.xlane.xlu1 %147 }
 0x4f5   :  { %v4460_v27 = vmul.f32 %v4445_v38, %v148_v41 }
 0x4f8   :  { %v156_v60 = vpop.xlane.xlu1 %155 }
 0x4f9   :  { %v4462_v63 = vmul.f32 %v4447_v20, %v156_v60 }
 0x4fc   :  { %v164_v35 = vpop.xlane.xlu1 %163 }
 0x4fd   :  { %v4464_v28 = vmul.f32 %v4449_v0, %v164_v35 }
 0x584   :  { %v5210_v5 = vpop.f32.mrf.mxu1 }
 0x585   :  { %v4559_v46 = vadd.f32 %v5210_v5, %v4455_v45 }
 0x586   :  { %v4550_v2 = vpop.f32.mrf.mxu1 }
 0x587   :  { %v4629_v23 = vadd.f32 %v4614_v55, %v4559_v46  ;;  %v4551_v48 = vadd.f32 %v4550_v2, %v4453_v61  ;;  %v4620_v61 = vld [vmem:[%s8843_s11 + $0x40] sm:$0xff] }
 0x588   :  { %v5211_v62 = vpop.f32.mrf.mxu1 }
 0x589   :  { %4645 = vst.msk [vmem:[%s8844_s12 + $0x10] sm:$0xff] %vm4642_vm3, %v4629_v23  ;;  %v4627_v24 = vadd.f32 %v4612_v14, %v4551_v48  ;;  %v4562_v8 = vadd.f32 %v5211_v62, %v4456_v49  ;;  %v4623_v49 = vld [vmem:[%s8843_s11 + $0x58] sm:$0xff]  ;;  %v4621_v23 = vld [vmem:[%s8843_s11 + $0x48] sm:$0xff]  ;;  %v4452_v48 = vld [vmem:[%s8842_s10 + $0x70] sm:$0xff]  ;;  %v176_v62 = vpop.xlane.xlu0 %175 }
 0x58a   :  { %v4553_v33 = vpop.f32.mrf.mxu1 }
 0x58b   :  { %4643 = vst.msk [vmem:[%s8844_s12] sm:$0xff] %vm4642_vm3, %v4627_v24  ;;  %v4630_v1 = vadd.f32 %v4615_v25, %v4562_v8  ;;  %v4554_v12 = vadd.f32 %v4553_v33, %v4454_v31  ;;  %v4450_v24 = vld [vmem:[%s8842_s10 + $0x60] sm:$0xff]  ;;  %v4467_v33 = vmul.f32 %v4452_v48, %v176_v62 }
 0x58d   :  { %4646 = vst.msk [vmem:[%s8844_s12 + $0x18] sm:$0xff] %vm4642_vm3, %v4630_v1  ;;  %v4628_v21 = vadd.f32 %v4613_v29, %v4554_v12  ;;  %v4465_v29 = vmul.f32 %v4450_v24, %v168_v57  ;;  %v4626_v12 = vld [vmem:[%s8843_s11 + $0x70] sm:$0xff] }
 0x58f   :  { %4644 = vst.msk [vmem:[%s8844_s12 + $0x8] sm:$0xff] %vm4642_vm3, %v4628_v21  ;;  %v172_v21 = vpop.xlane.xlu1 %171 }
 0x590   :  { %v4466_v41 = vmul.f32 %v4451_v9, %v172_v21 }
 0x594   :  { %v5214_v13 = vpop.f32.mrf.mxu1 }
 0x595   :  { %v4575_v17 = vadd.f32 %v5214_v13, %v4459_v16 }
 0x596   :  { %v4566_v52 = vpop.f32.mrf.mxu1 }
 0x597   :  { %v4633_v3 = vadd.f32 %v4618_v44, %v4575_v17  ;;  %v4567_v32 = vadd.f32 %v4566_v52, %v4457_v54  ;;  %v4625_v44 = vld [vmem:[%s8843_s11 + $0x68] sm:$0xff] }
 0x598   :  { %v5215_v19 = vpop.f32.mrf.mxu1 }
 0x599   :  { %4649 = vst.msk [vmem:[%s8844_s12 + $0x30] sm:$0xff] %vm4642_vm3, %v4633_v3  ;;  %v4631_v51 = vadd.f32 %v4616_v10, %v4567_v32  ;;  %v4578_v15 = vadd.f32 %v5215_v19, %v4460_v27 }
 0x59a   :  { %v4569_v40 = vpop.f32.mrf.mxu1 }
 0x59b   :  { %4647 = vst.msk [vmem:[%s8844_s12 + $0x20] sm:$0xff] %vm4642_vm3, %v4631_v51  ;;  %v4634_v6 = vadd.f32 %v4619_v53, %v4578_v15  ;;  %v4570_v56 = vadd.f32 %v4569_v40, %v4458_v42 }
 0x59d   :  { %4650 = vst.msk [vmem:[%s8844_s12 + $0x38] sm:$0xff] %vm4642_vm3, %v4634_v6  ;;  %v4632_v26 = vadd.f32 %v4617_v36, %v4570_v56 }
 0x59f   :  { %4648 = vst.msk [vmem:[%s8844_s12 + $0x28] sm:$0xff] %vm4642_vm3, %v4632_v26 }
 0x5a4   :  { %v5218_v43 = vpop.f32.mrf.mxu1 }
 0x5a5   :  { %v4591_v45 = vadd.f32 %v5218_v43, %v4463_v11 }
 0x5a6   :  { %v4582_v34 = vpop.f32.mrf.mxu1 }
 0x5a7   :  { %v4637_v5 = vadd.f32 %v4622_v18, %v4591_v45  ;;  %v4583_v55 = vadd.f32 %v4582_v34, %v4461_v50 }
 0x5a8   :  { %v5219_v46 = vpop.f32.mrf.mxu1 }
 0x5a9   :  { %4653 = vst.msk [vmem:[%s8844_s12 + $0x50] sm:$0xff] %vm4642_vm3, %v4637_v5  ;;  %v4635_v2 = vadd.f32 %v4620_v61, %v4583_v55  ;;  %v4594_v14 = vadd.f32 %v5219_v46, %v4464_v28 }
 0x5aa   :  { %v4585_v31 = vpop.f32.mrf.mxu1 }
 0x5ab   :  { %4651 = vst.msk [vmem:[%s8844_s12 + $0x40] sm:$0xff] %vm4642_vm3, %v4635_v2  ;;  %v4638_v25 = vadd.f32 %v4623_v49, %v4594_v14  ;;  %v4586_v37 = vadd.f32 %v4585_v31, %v4462_v63 }
 0x5ad   :  { %4654 = vst.msk [vmem:[%s8844_s12 + $0x58] sm:$0xff] %vm4642_vm3, %v4638_v25  ;;  %v4636_v8 = vadd.f32 %v4621_v23, %v4586_v37 }
 0x5af   :  { %4652 = vst.msk [vmem:[%s8844_s12 + $0x48] sm:$0xff] %vm4642_vm3, %v4636_v8 }
 0x5b0   :  { %v5222_v1 = vpop.f32.mrf.mxu1 }
 0x5b1   :  { %v4607_v39 = vadd.f32 %v5222_v1, %v4467_v33 }
 0x5b2   :  { %v4598_v22 = vpop.f32.mrf.mxu1 }
 0x5b3   :  { %v4641_v16 = vadd.f32 %v4626_v12, %v4607_v39  ;;  %v4599_v38 = vadd.f32 %v4598_v22, %v4465_v29 }
 0x5b4   :  { %v5223_v54 = vpop.f32.mrf.mxu1 }
 0x5b5   :  { %4657 = vst.msk [vmem:[%s8844_s12 + $0x70] sm:$0xff] %vm4642_vm3, %v4641_v16  ;;  %v4639_v7 = vadd.f32 %v4624_v59, %v4599_v38 }
 0x5b6   :  { %v4601_v13 = vpop.f32.mrf.mxu1 }
 0x5b7   :  { %4655 = vst.msk [vmem:[%s8844_s12 + $0x60] sm:$0xff] %vm4642_vm3, %v4639_v7  ;;  %v4602_v17 = vadd.f32 %v4601_v13, %v4466_v41 }
 0x5b9   :  { %v4640_v27 = vadd.f32 %v4625_v44, %v4602_v17 }
 0x5bb   :  { %4656 = vst.msk [vmem:[%s8844_s12 + $0x68] sm:$0xff] %vm4642_vm3, %v4640_v27 }
 0x5bc   :  { %4662 = vsyncpa [#allocation3], 1 }

</bundles_post_ra>
